<compile_context>
chip_gen: v6e
topology: v6e:2x2x1
jax: 0.10.0
libtpu: 0.0.40
codegen_flags: <defaults>
</compile_context>

<pallas_src>
import functools

import jax
import jax.numpy as jnp
from jax.experimental import pallas as pl
from jax.experimental.pallas import tpu as pltpu

PRIMITIVES = [
    "none", "max_pool_3x3", "avg_pool_3x3", "skip_connect",
    "sep_conv_3x3", "sep_conv_5x5", "dil_conv_3x3", "dil_conv_5x5",
]
PRIMITIVES_POOL = ["max_pool_3x3", "avg_pool_3x3"]

# Small synthetic configuration
C_INIT = 4
NUM_CLASSES = 10
LAYERS = 1
STEPS = 2
MULTIPLIER = 2
STEM_MULT = 2
BN_EPS = 1e-5
NEG_BIG = 1e30


# ----------------------------------------------------------------------------
# Pallas kernels (all activations are (C, M) with M = N*H*W on the lane axis)
# ----------------------------------------------------------------------------

def _conv_bn_kernel(p_ref, w_ref, o_ref, *, relu):
    """[optional ReLU] -> matmul (conv via im2col) -> BatchNorm, fused."""
    p = p_ref[...]                                   # (K, M)
    if relu:
        p = jnp.maximum(p, 0.0)
    y = jnp.dot(w_ref[...], p, preferred_element_type=jnp.float32)   # (Cout, M)
    mean = jnp.mean(y, axis=1, keepdims=True)
    var = jnp.mean(jnp.square(y - mean), axis=1, keepdims=True)
    o_ref[...] = (y - mean) * jax.lax.rsqrt(var + BN_EPS)


def conv_bn(patches2d, w, relu):
    K, M = patches2d.shape
    Cout = w.shape[0]
    return pl.pallas_call(
        functools.partial(_conv_bn_kernel, relu=relu),
        out_shape=jax.ShapeDtypeStruct((Cout, M), jnp.float32),
    )(patches2d, w)


def _edge_kernel(aw_ref, x_ref, pp_ref, pm_ref, pc_ref,
                 s3_ref, s5_ref, d3_ref, d5_ref,
                 w3_ref, w5_ref, wd3_ref, wd5_ref, o_ref):
    """One full MixedOp edge: pools + skip + sep3/5 stage-2 + dil3/5 + weighted sum."""
    x = x_ref[...]                                   # (C, M)
    T = pp_ref.shape[0]

    # 3x3 stride-1 pools from shared zero-padded patches (mask marks valid taps)
    mx = None
    sm = None
    for t in range(T):
        pt = pp_ref[t]                               # (C, M)
        neg = (pm_ref[t] - 1.0) * NEG_BIG            # (1, M): 0 valid, -BIG padded
        cand = pt + neg
        mx = cand if mx is None else jnp.maximum(mx, cand)
        sm = pt if sm is None else sm + pt
    avgp = sm * pc_ref[...]                          # count_include_pad=False

    def _rconv_bn(p_ref_, w_ref_):
        y = jnp.dot(w_ref_[...], jnp.maximum(p_ref_[...], 0.0),
                    preferred_element_type=jnp.float32)
        mean = jnp.mean(y, axis=1, keepdims=True)
        var = jnp.mean(jnp.square(y - mean), axis=1, keepdims=True)
        return (y - mean) * jax.lax.rsqrt(var + BN_EPS)

    sep3 = _rconv_bn(s3_ref, w3_ref)                 # SepConv 3x3, stage 2
    sep5 = _rconv_bn(s5_ref, w5_ref)                 # SepConv 5x5, stage 2
    dil3 = _rconv_bn(d3_ref, wd3_ref)                # DilConv 3x3
    dil5 = _rconv_bn(d5_ref, wd5_ref)                # DilConv 5x5

    # PRIMITIVES order: none(skip), max, avg, skip, sep3, sep5, dil3, dil5
    o_ref[...] = (aw_ref[1] * mx + aw_ref[2] * avgp + aw_ref[3] * x
                  + aw_ref[4] * sep3 + aw_ref[5] * sep5
                  + aw_ref[6] * dil3 + aw_ref[7] * dil5)


def _choose_pool_kernel(aw_ref, pp_ref, pm_ref, pc_ref, o_ref):
    T = pp_ref.shape[0]
    mx = None
    sm = None
    for t in range(T):
        pt = pp_ref[t]
        neg = (pm_ref[t] - 1.0) * NEG_BIG
        cand = pt + neg
        mx = cand if mx is None else jnp.maximum(mx, cand)
        sm = pt if sm is None else sm + pt
    avgp = sm * pc_ref[...]
    # PRIMITIVES_POOL order: max_pool_3x3, avg_pool_3x3
    o_ref[...] = aw_ref[0] * mx + aw_ref[1] * avgp


def _head_kernel(x_ref, p_ref, w_ref, b_ref, o_ref):
    """Global average pool (as matmul with pooling matrix) + linear classifier."""
    pooled = jnp.dot(x_ref[...], p_ref[...], preferred_element_type=jnp.float32)  # (C, N)
    o_ref[...] = (jnp.dot(w_ref[...], pooled, preferred_element_type=jnp.float32)
                  + b_ref[...])                                                    # (cls, N)


# ----------------------------------------------------------------------------
# Glue (channel-major im2col, weight merging, layer compositions)
# ----------------------------------------------------------------------------

def extract_patches_cm(x, k, stride, pad, dilation=1):
    """x: (C, N, H, W) -> patches (k*k, C, N*Ho*Wo), plus (Ho, Wo). Zero padding."""
    C, N, H, W = x.shape
    xp = jnp.pad(x, ((0, 0), (0, 0), (pad, pad), (pad, pad)))
    Ho = (H + 2 * pad - dilation * (k - 1) - 1) // stride + 1
    Wo = (W + 2 * pad - dilation * (k - 1) - 1) // stride + 1
    taps = []
    for i in range(k):
        for j in range(k):
            taps.append(
                xp[:, :,
                   i * dilation: i * dilation + (Ho - 1) * stride + 1: stride,
                   j * dilation: j * dilation + (Wo - 1) * stride + 1: stride]
            )
    p = jnp.stack(taps, axis=0)                      # (T, C, N, Ho, Wo)
    return p.reshape(k * k, C, N * Ho * Wo), (Ho, Wo)


def pool_aux(N, H, W, k, stride, pad):
    """Validity mask (T,1,M) and 1/count (1,M) for pooling; constant per shape config."""
    ones = jnp.ones((1, N, H, W), jnp.float32)
    mask, _ = extract_patches_cm(ones, k, stride, pad)
    inv_cnt = 1.0 / jnp.sum(mask, axis=0)
    return mask, inv_cnt


def merge_dw_pw(dw, pw):
    """Fold depthwise (T, Cin) followed by pointwise (Cout, Cin) into (Cout, T*Cin)."""
    T, Cin = dw.shape
    Cout = pw.shape[0]
    return (pw[:, None, :] * dw[None, :, :]).reshape(Cout, T * Cin)


def relu_conv_bn_1x1(x, w):
    Cin, N, H, W = x.shape
    y = conv_bn(x.reshape(Cin, N * H * W), w, relu=True)
    return y.reshape(w.shape[0], N, H, W)


def factorized_reduce(x, w1, w2):
    """ReLU -> two stride-2 1x1 convs -> concat -> BN, as one fused matmul+BN kernel."""
    Cin, N, H, W = x.shape
    xa = x[:, :, ::2, ::2]
    xb = x[:, :, 1::2, 1::2]
    Ho, Wo = xa.shape[2], xa.shape[3]
    x_cat = jnp.concatenate([xa, xb], axis=0).reshape(2 * Cin, N * Ho * Wo)
    C1, C2 = w1.shape[0], w2.shape[0]
    w_blk = jnp.zeros((C1 + C2, 2 * Cin), jnp.float32)
    w_blk = w_blk.at[:C1, :Cin].set(w1)
    w_blk = w_blk.at[C1:, Cin:].set(w2)
    y = conv_bn(x_cat, w_blk, relu=True)
    return y.reshape(C1 + C2, N, Ho, Wo)


def mixed_edge(x, p, aw, pool_mask, pool_inv_cnt):
    """One MixedOp edge: 2 fused sep-conv stage-1 calls + 1 fused edge kernel."""
    C, N, H, W = x.shape
    M = N * H * W
    x2 = x.reshape(C, M)

    # im2col views of x (shared: p3 also serves as the 3x3 pool patches)
    p3, _ = extract_patches_cm(x, 3, 1, 1)                       # (9,  C, M)
    p5, _ = extract_patches_cm(x, 5, 1, 2)                       # (25, C, M)
    d3, _ = extract_patches_cm(x, 3, 1, 2, dilation=2)
    d5, _ = extract_patches_cm(x, 5, 1, 4, dilation=2)

    # SepConv stage 1: ReLU -> merged dw1*pw1 conv -> BN (one call each)
    s3_mid = conv_bn(p3.reshape(9 * C, M),
                     merge_dw_pw(p["sep3"]["dw1"], p["sep3"]["pw1"]), relu=True)
    s5_mid = conv_bn(p5.reshape(25 * C, M),
                     merge_dw_pw(p["sep5"]["dw1"], p["sep5"]["pw1"]), relu=True)

    # Stage-2 patches of the intermediates
    s3_p2, _ = extract_patches_cm(s3_mid.reshape(C, N, H, W), 3, 1, 1)
    s5_p2, _ = extract_patches_cm(s5_mid.reshape(C, N, H, W), 5, 1, 2)

    out = pl.pallas_call(
        _edge_kernel,
        out_shape=jax.ShapeDtypeStruct((C, M), jnp.float32),
        in_specs=[pl.BlockSpec(memory_space=pltpu.MemorySpace.SMEM)]
        + [pl.BlockSpec(memory_space=pltpu.MemorySpace.VMEM)] * 12,
        out_specs=pl.BlockSpec(memory_space=pltpu.MemorySpace.VMEM),
    )(aw, x2, p3, pool_mask, pool_inv_cnt,
      s3_p2.reshape(9 * C, M), s5_p2.reshape(25 * C, M),
      d3.reshape(9 * C, M), d5.reshape(25 * C, M),
      merge_dw_pw(p["sep3"]["dw2"], p["sep3"]["pw2"]),
      merge_dw_pw(p["sep5"]["dw2"], p["sep5"]["pw2"]),
      merge_dw_pw(p["dil3"]["dw"], p["dil3"]["pw"]),
      merge_dw_pw(p["dil5"]["dw"], p["dil5"]["pw"]))
    return out.reshape(C, N, H, W)


def choose_pool(x, aw):
    C, N, H, W = x.shape
    pp, (Ho, Wo) = extract_patches_cm(x, 3, 2, 1)
    pm, pic = pool_aux(N, H, W, 3, 2, 1)
    Mo = N * Ho * Wo
    out = pl.pallas_call(
        _choose_pool_kernel,
        out_shape=jax.ShapeDtypeStruct((C, Mo), jnp.float32),
        in_specs=[pl.BlockSpec(memory_space=pltpu.MemorySpace.SMEM)]
        + [pl.BlockSpec(memory_space=pltpu.MemorySpace.VMEM)] * 3,
        out_specs=pl.BlockSpec(memory_space=pltpu.MemorySpace.VMEM),
    )(aw, pp, pm, pic)
    return out.reshape(C, N, Ho, Wo)


def cell_forward(s0, s1, cp, weights, weights_pool, steps, multiplier):
    s0 = factorized_reduce(s0, cp["fr_w1"], cp["fr_w2"])
    s1 = relu_conv_bn_1x1(s1, cp["pre1_w"])

    C, N, H, W = s0.shape
    pm, pic = pool_aux(N, H, W, 3, 1, 1)   # shared by all stride-1 3x3 pools

    states = [s0, s1]
    offset = 0
    for _ in range(steps):
        acc = None
        for j, h in enumerate(states):
            e = mixed_edge(h, cp["ops"][offset + j], weights[offset + j], pm, pic)
            acc = e if acc is None else acc + e
        offset += len(states)
        states.append(acc)

    final = jnp.concatenate(states[-multiplier:], axis=0)   # channel concat (axis 0 = C)
    return choose_pool(final, weights_pool[0])


def network_forward(params, input1, input2):
    # NCHW -> CNHW (channel-major so flattened lane axis = N*H*W, lane-dense)
    x1 = jnp.transpose(input1, (1, 0, 2, 3))
    x2 = jnp.transpose(input2, (1, 0, 2, 3))

    C1, N, H1, W1 = x1.shape
    C2, _, H2, W2 = x2.shape
    p1, _ = extract_patches_cm(x1, 3, 1, 1)
    s0 = conv_bn(p1.reshape(9 * C1, N * H1 * W1), params["stem1_w"], relu=False)
    s0 = s0.reshape(-1, N, H1, W1)
    p2, _ = extract_patches_cm(x2, 3, 1, 1)
    s1 = conv_bn(p2.reshape(9 * C2, N * H2 * W2), params["stem2_w"], relu=False)
    s1 = s1.reshape(-1, N, H2, W2)

    weights = jax.nn.softmax(params["alphas"], axis=-1)
    weights_pool = jax.nn.softmax(params["alphas_pool"], axis=-1)
    for cp in params["cells"]:
        s0, s1 = s1, cell_forward(s0, s1, cp, weights, weights_pool, STEPS, MULTIPLIER)

    # Head: GAP + dropout(identity at eval) + linear, one fused kernel.
    # TODO(synk): train-mode dropout (p=0.25) RNG not replicated.
    Cf, N, Hp, Wp = s1.shape
    HW = Hp * Wp
    pmat = jnp.repeat(jnp.eye(N, dtype=jnp.float32), HW, axis=0) * (1.0 / HW)  # (N*HW, N)
    logits_t = pl.pallas_call(
        _head_kernel,
        out_shape=jax.ShapeDtypeStruct((params["cls_w"].shape[0], N), jnp.float32),
    )(s1.reshape(Cf, N * HW), pmat, params["cls_w"], params["cls_b"])
    return logits_t.T                                       # (N, num_classes)


# ----------------------------------------------------------------------------
# Deterministic parameter init (synthetic weights, no checkpoint)
# ----------------------------------------------------------------------------

def _nrm(key, shape, scale=0.1):
    return scale * jax.random.normal(key, shape, jnp.float32)


def init_mixed_op_params(key, C):
    ks = jax.random.split(key, 12)
    return {
        "sep3": {"dw1": _nrm(ks[0], (9, C)), "pw1": _nrm(ks[1], (C, C)),
                 "dw2": _nrm(ks[2], (9, C)), "pw2": _nrm(ks[3], (C, C))},
        "sep5": {"dw1": _nrm(ks[4], (25, C)), "pw1": _nrm(ks[5], (C, C)),
                 "dw2": _nrm(ks[6], (25, C)), "pw2": _nrm(ks[7], (C, C))},
        "dil3": {"dw": _nrm(ks[8], (9, C)), "pw": _nrm(ks[9], (C, C))},
        "dil5": {"dw": _nrm(ks[10], (25, C)), "pw": _nrm(ks[11], (C, C))},
    }


def init_cell_params(key, C_pp, C_p, C, steps):
    n_edges = sum(2 + i for i in range(steps))
    ks = jax.random.split(key, 3 + n_edges)
    return {
        "fr_w1": _nrm(ks[0], (C // 2, C_pp)),
        "fr_w2": _nrm(ks[1], (C - C // 2, C_pp)),
        "pre1_w": _nrm(ks[2], (C, C_p)),
        "ops": [init_mixed_op_params(ks[3 + e], C) for e in range(n_edges)],
    }


def init_network_params(key, C, num_classes, layers, steps, multiplier, stem_mult):
    C_curr = stem_mult * C
    ks = jax.random.split(key, 5 + layers)
    params = {
        "stem1_w": _nrm(ks[0], (C_curr, 9 * 128)),   # (Cout, T*Cin), (t, ci) ordering
        "stem2_w": _nrm(ks[1], (C_curr, 9 * 256)),
    }
    cells = []
    C_pp, C_p, C_c = C_curr, C_curr, C
    for i in range(layers):
        cells.append(init_cell_params(ks[2 + i], C_pp, C_p, C_c, steps))
        C_pp, C_p = C_p, multiplier * C_c
    params["cells"] = cells
    params["cls_w"] = _nrm(ks[2 + layers], (num_classes, C_p))
    params["cls_b"] = jnp.zeros((num_classes, 1), jnp.float32)
    k_edges = sum(2 + i for i in range(steps))
    params["alphas"] = 0.001 * jax.random.normal(
        ks[3 + layers], (k_edges, len(PRIMITIVES)), jnp.float32)
    params["alphas_pool"] = 0.001 * jax.random.normal(
        ks[4 + layers], (1, 2), jnp.float32)
    return params


if __name__ == "__main__":
    key = jax.random.PRNGKey(0)
    k_in1, k_in2, k_par = jax.random.split(key, 3)
    # input1 has 2x the spatial resolution of input2 (required by the always-applied
    # FactorizedReduce preprocess on s0 vs the stride-2 cell reductions).
    input1 = jax.random.normal(k_in1, (2, 128, 16, 16), jnp.float32)  # NCHW
    input2 = jax.random.normal(k_in2, (2, 256, 8, 8), jnp.float32)    # NCHW
    params = init_network_params(
        k_par, C_INIT, NUM_CLASSES, LAYERS, STEPS, MULTIPLIER, STEM_MULT
    )

    fwd = jax.jit(network_forward)
    logits = jax.block_until_ready(fwd(params, input1, input2))

    assert logits.shape == (2, NUM_CLASSES), logits.shape
    assert bool(jnp.all(jnp.isfinite(logits)))
    print("KERNEL_OK")
</pallas_src>

<mosaic_0001>
module attributes {stable_mosaic.version = 11 : i64} {
  func.func @_conv_bn_kernel(%arg0: memref<1152x512xf32, #tpu.memory_space<vmem>>, %arg1: memref<8x1152xf32, #tpu.memory_space<vmem>>, %arg2: memref<8x512xf32, #tpu.memory_space<vmem>>) attributes {dimension_semantics = [], scalar_prefetch = 0 : i64, scratch_operands = 0 : i64, tpu.core_type = #tpu.core_type<tc>} {
    %c0 = arith.constant 0 : index
    %c0_0 = arith.constant 0 : index
    %0 = vector.load %arg0[%c0, %c0_0] : memref<1152x512xf32, #tpu.memory_space<vmem>>, vector<1152x512xf32>
    %c0_1 = arith.constant 0 : index
    %c0_2 = arith.constant 0 : index
    %1 = vector.load %arg1[%c0_1, %c0_2] : memref<8x1152xf32, #tpu.memory_space<vmem>>, vector<8x1152xf32>
    %cst = arith.constant dense<0.000000e+00> : vector<8x512xf32>
    %2 = tpu.matmul %1, %0, %cst {dimension_numbers = #tpu.dot_dimension_numbers<[1], [0], [0], [1], [0, 0, 1, 1], [], []>} : vector<8x1152xf32>, vector<1152x512xf32>, vector<8x512xf32> -> vector<8x512xf32>
    %cst_3 = arith.constant dense<0.000000e+00> : vector<8xf32>
    %3 = vector.multi_reduction <add>, %2, %cst_3 [1] : vector<8x512xf32> to vector<8xf32>
    %4 = vector.shape_cast %3 : vector<8xf32> to vector<8x1xf32>
    %cst_4 = arith.constant 5.120000e+02 : f32
    %5 = vector.broadcast %cst_4 : f32 to vector<8x1xf32>
    %6 = arith.divf %4, %5 : vector<8x1xf32>
    %7 = vector.broadcast %6 : vector<8x1xf32> to vector<8x512xf32>
    %8 = arith.subf %2, %7 : vector<8x512xf32>
    %9 = arith.mulf %8, %8 : vector<8x512xf32>
    %cst_5 = arith.constant dense<0.000000e+00> : vector<8xf32>
    %10 = vector.multi_reduction <add>, %9, %cst_5 [1] : vector<8x512xf32> to vector<8xf32>
    %11 = vector.shape_cast %10 : vector<8xf32> to vector<8x1xf32>
    %cst_6 = arith.constant 5.120000e+02 : f32
    %12 = vector.broadcast %cst_6 : f32 to vector<8x1xf32>
    %13 = arith.divf %11, %12 : vector<8x1xf32>
    %14 = vector.broadcast %6 : vector<8x1xf32> to vector<8x512xf32>
    %15 = arith.subf %2, %14 : vector<8x512xf32>
    %cst_7 = arith.constant 9.99999974E-6 : f32
    %16 = vector.broadcast %cst_7 : f32 to vector<8x1xf32>
    %17 = arith.addf %13, %16 : vector<8x1xf32>
    %18 = math.rsqrt %17 : vector<8x1xf32>
    %19 = vector.broadcast %18 : vector<8x1xf32> to vector<8x512xf32>
    %20 = arith.mulf %15, %19 : vector<8x512xf32>
    %c0_8 = arith.constant 0 : index
    %c0_9 = arith.constant 0 : index
    %21 = vector.load %arg2[%c0_8, %c0_9] : memref<8x512xf32, #tpu.memory_space<vmem>>, vector<8x512xf32>
    tpu.vector_store %arg2[%c0_8, %c0_9], %20 {strides = array<i32>} : memref<8x512xf32, #tpu.memory_space<vmem>>, vector<8x512xf32>,
    return
  }
}

module attributes {stable_mosaic.version = 11 : i64} {
  func.func @_conv_bn_kernel(%arg0: memref<16x128xf32, #tpu.memory_space<vmem>>, %arg1: memref<4x16xf32, #tpu.memory_space<vmem>>, %arg2: memref<4x128xf32, #tpu.memory_space<vmem>>) attributes {dimension_semantics = [], scalar_prefetch = 0 : i64, scratch_operands = 0 : i64, tpu.core_type = #tpu.core_type<tc>} {
    %c0 = arith.constant 0 : index
    %c0_0 = arith.constant 0 : index
    %0 = vector.load %arg0[%c0, %c0_0] : memref<16x128xf32, #tpu.memory_space<vmem>>, vector<16x128xf32>
    %cst = arith.constant 0.000000e+00 : f32
    %1 = vector.broadcast %cst : f32 to vector<16x128xf32>
    %2 = arith.maximumf %0, %1 : vector<16x128xf32>
    %c0_1 = arith.constant 0 : index
    %c0_2 = arith.constant 0 : index
    %3 = vector.load %arg1[%c0_1, %c0_2] : memref<4x16xf32, #tpu.memory_space<vmem>>, vector<4x16xf32>
    %cst_3 = arith.constant dense<0.000000e+00> : vector<4x128xf32>
    %4 = tpu.matmul %3, %2, %cst_3 {dimension_numbers = #tpu.dot_dimension_numbers<[1], [0], [0], [1], [0, 0, 1, 1], [], []>} : vector<4x16xf32>, vector<16x128xf32>, vector<4x128xf32> -> vector<4x128xf32>
    %cst_4 = arith.constant dense<0.000000e+00> : vector<4xf32>
    %5 = vector.multi_reduction <add>, %4, %cst_4 [1] : vector<4x128xf32> to vector<4xf32>
    %6 = vector.shape_cast %5 : vector<4xf32> to vector<4x1xf32>
    %cst_5 = arith.constant 1.280000e+02 : f32
    %7 = vector.broadcast %cst_5 : f32 to vector<4x1xf32>
    %8 = arith.divf %6, %7 : vector<4x1xf32>
    %9 = vector.broadcast %8 : vector<4x1xf32> to vector<4x128xf32>
    %10 = arith.subf %4, %9 : vector<4x128xf32>
    %11 = arith.mulf %10, %10 : vector<4x128xf32>
    %cst_6 = arith.constant dense<0.000000e+00> : vector<4xf32>
    %12 = vector.multi_reduction <add>, %11, %cst_6 [1] : vector<4x128xf32> to vector<4xf32>
    %13 = vector.shape_cast %12 : vector<4xf32> to vector<4x1xf32>
    %cst_7 = arith.constant 1.280000e+02 : f32
    %14 = vector.broadcast %cst_7 : f32 to vector<4x1xf32>
    %15 = arith.divf %13, %14 : vector<4x1xf32>
    %16 = vector.broadcast %8 : vector<4x1xf32> to vector<4x128xf32>
    %17 = arith.subf %4, %16 : vector<4x128xf32>
    %cst_8 = arith.constant 9.99999974E-6 : f32
    %18 = vector.broadcast %cst_8 : f32 to vector<4x1xf32>
    %19 = arith.addf %15, %18 : vector<4x1xf32>
    %20 = math.rsqrt %19 : vector<4x1xf32>
    %21 = vector.broadcast %20 : vector<4x1xf32> to vector<4x128xf32>
    %22 = arith.mulf %17, %21 : vector<4x128xf32>
    %c0_9 = arith.constant 0 : index
    %c0_10 = arith.constant 0 : index
    %23 = vector.load %arg2[%c0_9, %c0_10] : memref<4x128xf32, #tpu.memory_space<vmem>>, vector<4x128xf32>
    tpu.vector_store %arg2[%c0_9, %c0_10], %22 {strides = array<i32>} : memref<4x128xf32, #tpu.memory_space<vmem>>, vector<4x128xf32>,
    return
  }
}

module attributes {stable_mosaic.version = 11 : i64} {
  func.func @_conv_bn_kernel(%arg0: memref<36x128xf32, #tpu.memory_space<vmem>>, %arg1: memref<4x36xf32, #tpu.memory_space<vmem>>, %arg2: memref<4x128xf32, #tpu.memory_space<vmem>>) attributes {dimension_semantics = [], scalar_prefetch = 0 : i64, scratch_operands = 0 : i64, tpu.core_type = #tpu.core_type<tc>} {
    %c0 = arith.constant 0 : index
    %c0_0 = arith.constant 0 : index
    %0 = vector.load %arg0[%c0, %c0_0] : memref<36x128xf32, #tpu.memory_space<vmem>>, vector<36x128xf32>
    %cst = arith.constant 0.000000e+00 : f32
    %1 = vector.broadcast %cst : f32 to vector<36x128xf32>
    %2 = arith.maximumf %0, %1 : vector<36x128xf32>
    %c0_1 = arith.constant 0 : index
    %c0_2 = arith.constant 0 : index
    %3 = vector.load %arg1[%c0_1, %c0_2] : memref<4x36xf32, #tpu.memory_space<vmem>>, vector<4x36xf32>
    %cst_3 = arith.constant dense<0.000000e+00> : vector<4x128xf32>
    %4 = tpu.matmul %3, %2, %cst_3 {dimension_numbers = #tpu.dot_dimension_numbers<[1], [0], [0], [1], [0, 0, 1, 1], [], []>} : vector<4x36xf32>, vector<36x128xf32>, vector<4x128xf32> -> vector<4x128xf32>
    %cst_4 = arith.constant dense<0.000000e+00> : vector<4xf32>
    %5 = vector.multi_reduction <add>, %4, %cst_4 [1] : vector<4x128xf32> to vector<4xf32>
    %6 = vector.shape_cast %5 : vector<4xf32> to vector<4x1xf32>
    %cst_5 = arith.constant 1.280000e+02 : f32
    %7 = vector.broadcast %cst_5 : f32 to vector<4x1xf32>
    %8 = arith.divf %6, %7 : vector<4x1xf32>
    %9 = vector.broadcast %8 : vector<4x1xf32> to vector<4x128xf32>
    %10 = arith.subf %4, %9 : vector<4x128xf32>
    %11 = arith.mulf %10, %10 : vector<4x128xf32>
    %cst_6 = arith.constant dense<0.000000e+00> : vector<4xf32>
    %12 = vector.multi_reduction <add>, %11, %cst_6 [1] : vector<4x128xf32> to vector<4xf32>
    %13 = vector.shape_cast %12 : vector<4xf32> to vector<4x1xf32>
    %cst_7 = arith.constant 1.280000e+02 : f32
    %14 = vector.broadcast %cst_7 : f32 to vector<4x1xf32>
    %15 = arith.divf %13, %14 : vector<4x1xf32>
    %16 = vector.broadcast %8 : vector<4x1xf32> to vector<4x128xf32>
    %17 = arith.subf %4, %16 : vector<4x128xf32>
    %cst_8 = arith.constant 9.99999974E-6 : f32
    %18 = vector.broadcast %cst_8 : f32 to vector<4x1xf32>
    %19 = arith.addf %15, %18 : vector<4x1xf32>
    %20 = math.rsqrt %19 : vector<4x1xf32>
    %21 = vector.broadcast %20 : vector<4x1xf32> to vector<4x128xf32>
    %22 = arith.mulf %17, %21 : vector<4x128xf32>
    %c0_9 = arith.constant 0 : index
    %c0_10 = arith.constant 0 : index
    %23 = vector.load %arg2[%c0_9, %c0_10] : memref<4x128xf32, #tpu.memory_space<vmem>>, vector<4x128xf32>
    tpu.vector_store %arg2[%c0_9, %c0_10], %22 {strides = array<i32>} : memref<4x128xf32, #tpu.memory_space<vmem>>, vector<4x128xf32>,
    return
  }
}

module attributes {stable_mosaic.version = 11 : i64} {
  func.func @_conv_bn_kernel(%arg0: memref<100x128xf32, #tpu.memory_space<vmem>>, %arg1: memref<4x100xf32, #tpu.memory_space<vmem>>, %arg2: memref<4x128xf32, #tpu.memory_space<vmem>>) attributes {dimension_semantics = [], scalar_prefetch = 0 : i64, scratch_operands = 0 : i64, tpu.core_type = #tpu.core_type<tc>} {
    %c0 = arith.constant 0 : index
    %c0_0 = arith.constant 0 : index
    %0 = vector.load %arg0[%c0, %c0_0] : memref<100x128xf32, #tpu.memory_space<vmem>>, vector<100x128xf32>
    %cst = arith.constant 0.000000e+00 : f32
    %1 = vector.broadcast %cst : f32 to vector<100x128xf32>
    %2 = arith.maximumf %0, %1 : vector<100x128xf32>
    %c0_1 = arith.constant 0 : index
    %c0_2 = arith.constant 0 : index
    %3 = vector.load %arg1[%c0_1, %c0_2] : memref<4x100xf32, #tpu.memory_space<vmem>>, vector<4x100xf32>
    %cst_3 = arith.constant dense<0.000000e+00> : vector<4x128xf32>
    %4 = tpu.matmul %3, %2, %cst_3 {dimension_numbers = #tpu.dot_dimension_numbers<[1], [0], [0], [1], [0, 0, 1, 1], [], []>} : vector<4x100xf32>, vector<100x128xf32>, vector<4x128xf32> -> vector<4x128xf32>
    %cst_4 = arith.constant dense<0.000000e+00> : vector<4xf32>
    %5 = vector.multi_reduction <add>, %4, %cst_4 [1] : vector<4x128xf32> to vector<4xf32>
    %6 = vector.shape_cast %5 : vector<4xf32> to vector<4x1xf32>
    %cst_5 = arith.constant 1.280000e+02 : f32
    %7 = vector.broadcast %cst_5 : f32 to vector<4x1xf32>
    %8 = arith.divf %6, %7 : vector<4x1xf32>
    %9 = vector.broadcast %8 : vector<4x1xf32> to vector<4x128xf32>
    %10 = arith.subf %4, %9 : vector<4x128xf32>
    %11 = arith.mulf %10, %10 : vector<4x128xf32>
    %cst_6 = arith.constant dense<0.000000e+00> : vector<4xf32>
    %12 = vector.multi_reduction <add>, %11, %cst_6 [1] : vector<4x128xf32> to vector<4xf32>
    %13 = vector.shape_cast %12 : vector<4xf32> to vector<4x1xf32>
    %cst_7 = arith.constant 1.280000e+02 : f32
    %14 = vector.broadcast %cst_7 : f32 to vector<4x1xf32>
    %15 = arith.divf %13, %14 : vector<4x1xf32>
    %16 = vector.broadcast %8 : vector<4x1xf32> to vector<4x128xf32>
    %17 = arith.subf %4, %16 : vector<4x128xf32>
    %cst_8 = arith.constant 9.99999974E-6 : f32
    %18 = vector.broadcast %cst_8 : f32 to vector<4x1xf32>
    %19 = arith.addf %15, %18 : vector<4x1xf32>
    %20 = math.rsqrt %19 : vector<4x1xf32>
    %21 = vector.broadcast %20 : vector<4x1xf32> to vector<4x128xf32>
    %22 = arith.mulf %17, %21 : vector<4x128xf32>
    %c0_9 = arith.constant 0 : index
    %c0_10 = arith.constant 0 : index
    %23 = vector.load %arg2[%c0_9, %c0_10] : memref<4x128xf32, #tpu.memory_space<vmem>>, vector<4x128xf32>
    tpu.vector_store %arg2[%c0_9, %c0_10], %22 {strides = array<i32>} : memref<4x128xf32, #tpu.memory_space<vmem>>, vector<4x128xf32>,
    return
  }
}

module attributes {stable_mosaic.version = 11 : i64} {
  func.func @_edge_kernel(%arg0: memref<8xf32, #tpu.memory_space<smem>>, %arg1: memref<4x128xf32, #tpu.memory_space<vmem>>, %arg2: memref<9x4x128xf32, #tpu.memory_space<vmem>>, %arg3: memref<9x1x128xf32, #tpu.memory_space<vmem>>, %arg4: memref<1x128xf32, #tpu.memory_space<vmem>>, %arg5: memref<36x128xf32, #tpu.memory_space<vmem>>, %arg6: memref<100x128xf32, #tpu.memory_space<vmem>>, %arg7: memref<36x128xf32, #tpu.memory_space<vmem>>, %arg8: memref<100x128xf32, #tpu.memory_space<vmem>>, %arg9: memref<4x36xf32, #tpu.memory_space<vmem>>, %arg10: memref<4x100xf32, #tpu.memory_space<vmem>>, %arg11: memref<4x36xf32, #tpu.memory_space<vmem>>, %arg12: memref<4x100xf32, #tpu.memory_space<vmem>>, %arg13: memref<4x128xf32, #tpu.memory_space<vmem>>) attributes {dimension_semantics = [], scalar_prefetch = 0 : i64, scratch_operands = 0 : i64, tpu.core_type = #tpu.core_type<tc>} {
    %c0 = arith.constant 0 : index
    %c0_0 = arith.constant 0 : index
    %0 = vector.load %arg1[%c0, %c0_0] : memref<4x128xf32, #tpu.memory_space<vmem>>, vector<4x128xf32>
    %c0_1 = arith.constant 0 : index
    %c0_2 = arith.constant 0 : index
    %c0_3 = arith.constant 0 : index
    %1 = vector.load %arg2[%c0_1, %c0_2, %c0_3] : memref<9x4x128xf32, #tpu.memory_space<vmem>>, vector<1x4x128xf32>
    %2 = vector.shape_cast %1 : vector<1x4x128xf32> to vector<4x128xf32>
    %c0_4 = arith.constant 0 : index
    %c0_5 = arith.constant 0 : index
    %c0_6 = arith.constant 0 : index
    %3 = vector.load %arg3[%c0_4, %c0_5, %c0_6] : memref<9x1x128xf32, #tpu.memory_space<vmem>>, vector<1x1x128xf32>
    %4 = vector.shape_cast %3 : vector<1x1x128xf32> to vector<1x128xf32>
    %cst = arith.constant 1.000000e+00 : f32
    %5 = vector.broadcast %cst : f32 to vector<1x128xf32>
    %6 = arith.subf %4, %5 : vector<1x128xf32>
    %cst_7 = arith.constant 1.000000e+30 : f32
    %7 = vector.broadcast %cst_7 : f32 to vector<1x128xf32>
    %8 = arith.mulf %6, %7 : vector<1x128xf32>
    %9 = vector.broadcast %8 : vector<1x128xf32> to vector<4x128xf32>
    %10 = arith.addf %2, %9 : vector<4x128xf32>
    %c1 = arith.constant 1 : index
    %c0_8 = arith.constant 0 : index
    %c0_9 = arith.constant 0 : index
    %11 = vector.load %arg2[%c1, %c0_8, %c0_9] : memref<9x4x128xf32, #tpu.memory_space<vmem>>, vector<1x4x128xf32>
    %12 = vector.shape_cast %11 : vector<1x4x128xf32> to vector<4x128xf32>
    %c1_10 = arith.constant 1 : index
    %c0_11 = arith.constant 0 : index
    %c0_12 = arith.constant 0 : index
    %13 = vector.load %arg3[%c1_10, %c0_11, %c0_12] : memref<9x1x128xf32, #tpu.memory_space<vmem>>, vector<1x1x128xf32>
    %14 = vector.shape_cast %13 : vector<1x1x128xf32> to vector<1x128xf32>
    %cst_13 = arith.constant 1.000000e+00 : f32
    %15 = vector.broadcast %cst_13 : f32 to vector<1x128xf32>
    %16 = arith.subf %14, %15 : vector<1x128xf32>
    %cst_14 = arith.constant 1.000000e+30 : f32
    %17 = vector.broadcast %cst_14 : f32 to vector<1x128xf32>
    %18 = arith.mulf %16, %17 : vector<1x128xf32>
    %19 = vector.broadcast %18 : vector<1x128xf32> to vector<4x128xf32>
    %20 = arith.addf %12, %19 : vector<4x128xf32>
    %21 = arith.maximumf %10, %20 : vector<4x128xf32>
    %22 = arith.addf %2, %12 : vector<4x128xf32>
    %c2 = arith.constant 2 : index
    %c0_15 = arith.constant 0 : index
    %c0_16 = arith.constant 0 : index
    %23 = vector.load %arg2[%c2, %c0_15, %c0_16] : memref<9x4x128xf32, #tpu.memory_space<vmem>>, vector<1x4x128xf32>
    %24 = vector.shape_cast %23 : vector<1x4x128xf32> to vector<4x128xf32>
    %c2_17 = arith.constant 2 : index
    %c0_18 = arith.constant 0 : index
    %c0_19 = arith.constant 0 : index
    %25 = vector.load %arg3[%c2_17, %c0_18, %c0_19] : memref<9x1x128xf32, #tpu.memory_space<vmem>>, vector<1x1x128xf32>
    %26 = vector.shape_cast %25 : vector<1x1x128xf32> to vector<1x128xf32>
    %cst_20 = arith.constant 1.000000e+00 : f32
    %27 = vector.broadcast %cst_20 : f32 to vector<1x128xf32>
    %28 = arith.subf %26, %27 : vector<1x128xf32>
    %cst_21 = arith.constant 1.000000e+30 : f32
    %29 = vector.broadcast %cst_21 : f32 to vector<1x128xf32>
    %30 = arith.mulf %28, %29 : vector<1x128xf32>
    %31 = vector.broadcast %30 : vector<1x128xf32> to vector<4x128xf32>
    %32 = arith.addf %24, %31 : vector<4x128xf32>
    %33 = arith.maximumf %21, %32 : vector<4x128xf32>
    %34 = arith.addf %22, %24 : vector<4x128xf32>
    %c3 = arith.constant 3 : index
    %c0_22 = arith.constant 0 : index
    %c0_23 = arith.constant 0 : index
    %35 = vector.load %arg2[%c3, %c0_22, %c0_23] : memref<9x4x128xf32, #tpu.memory_space<vmem>>, vector<1x4x128xf32>
    %36 = vector.shape_cast %35 : vector<1x4x128xf32> to vector<4x128xf32>
    %c3_24 = arith.constant 3 : index
    %c0_25 = arith.constant 0 : index
    %c0_26 = arith.constant 0 : index
    %37 = vector.load %arg3[%c3_24, %c0_25, %c0_26] : memref<9x1x128xf32, #tpu.memory_space<vmem>>, vector<1x1x128xf32>
    %38 = vector.shape_cast %37 : vector<1x1x128xf32> to vector<1x128xf32>
    %cst_27 = arith.constant 1.000000e+00 : f32
    %39 = vector.broadcast %cst_27 : f32 to vector<1x128xf32>
    %40 = arith.subf %38, %39 : vector<1x128xf32>
    %cst_28 = arith.constant 1.000000e+30 : f32
    %41 = vector.broadcast %cst_28 : f32 to vector<1x128xf32>
    %42 = arith.mulf %40, %41 : vector<1x128xf32>
    %43 = vector.broadcast %42 : vector<1x128xf32> to vector<4x128xf32>
    %44 = arith.addf %36, %43 : vector<4x128xf32>
    %45 = arith.maximumf %33, %44 : vector<4x128xf32>
    %46 = arith.addf %34, %36 : vector<4x128xf32>
    %c4 = arith.constant 4 : index
    %c0_29 = arith.constant 0 : index
    %c0_30 = arith.constant 0 : index
    %47 = vector.load %arg2[%c4, %c0_29, %c0_30] : memref<9x4x128xf32, #tpu.memory_space<vmem>>, vector<1x4x128xf32>
    %48 = vector.shape_cast %47 : vector<1x4x128xf32> to vector<4x128xf32>
    %c4_31 = arith.constant 4 : index
    %c0_32 = arith.constant 0 : index
    %c0_33 = arith.constant 0 : index
    %49 = vector.load %arg3[%c4_31, %c0_32, %c0_33] : memref<9x1x128xf32, #tpu.memory_space<vmem>>, vector<1x1x128xf32>
    %50 = vector.shape_cast %49 : vector<1x1x128xf32> to vector<1x128xf32>
    %cst_34 = arith.constant 1.000000e+00 : f32
    %51 = vector.broadcast %cst_34 : f32 to vector<1x128xf32>
    %52 = arith.subf %50, %51 : vector<1x128xf32>
    %cst_35 = arith.constant 1.000000e+30 : f32
    %53 = vector.broadcast %cst_35 : f32 to vector<1x128xf32>
    %54 = arith.mulf %52, %53 : vector<1x128xf32>
    %55 = vector.broadcast %54 : vector<1x128xf32> to vector<4x128xf32>
    %56 = arith.addf %48, %55 : vector<4x128xf32>
    %57 = arith.maximumf %45, %56 : vector<4x128xf32>
    %58 = arith.addf %46, %48 : vector<4x128xf32>
    %c5 = arith.constant 5 : index
    %c0_36 = arith.constant 0 : index
    %c0_37 = arith.constant 0 : index
    %59 = vector.load %arg2[%c5, %c0_36, %c0_37] : memref<9x4x128xf32, #tpu.memory_space<vmem>>, vector<1x4x128xf32>
    %60 = vector.shape_cast %59 : vector<1x4x128xf32> to vector<4x128xf32>
    %c5_38 = arith.constant 5 : index
    %c0_39 = arith.constant 0 : index
    %c0_40 = arith.constant 0 : index
    %61 = vector.load %arg3[%c5_38, %c0_39, %c0_40] : memref<9x1x128xf32, #tpu.memory_space<vmem>>, vector<1x1x128xf32>
    %62 = vector.shape_cast %61 : vector<1x1x128xf32> to vector<1x128xf32>
    %cst_41 = arith.constant 1.000000e+00 : f32
    %63 = vector.broadcast %cst_41 : f32 to vector<1x128xf32>
    %64 = arith.subf %62, %63 : vector<1x128xf32>
    %cst_42 = arith.constant 1.000000e+30 : f32
    %65 = vector.broadcast %cst_42 : f32 to vector<1x128xf32>
    %66 = arith.mulf %64, %65 : vector<1x128xf32>
    %67 = vector.broadcast %66 : vector<1x128xf32> to vector<4x128xf32>
    %68 = arith.addf %60, %67 : vector<4x128xf32>
    %69 = arith.maximumf %57, %68 : vector<4x128xf32>
    %70 = arith.addf %58, %60 : vector<4x128xf32>
    %c6 = arith.constant 6 : index
    %c0_43 = arith.constant 0 : index
    %c0_44 = arith.constant 0 : index
    %71 = vector.load %arg2[%c6, %c0_43, %c0_44] : memref<9x4x128xf32, #tpu.memory_space<vmem>>, vector<1x4x128xf32>
    %72 = vector.shape_cast %71 : vector<1x4x128xf32> to vector<4x128xf32>
    %c6_45 = arith.constant 6 : index
    %c0_46 = arith.constant 0 : index
    %c0_47 = arith.constant 0 : index
    %73 = vector.load %arg3[%c6_45, %c0_46, %c0_47] : memref<9x1x128xf32, #tpu.memory_space<vmem>>, vector<1x1x128xf32>
    %74 = vector.shape_cast %73 : vector<1x1x128xf32> to vector<1x128xf32>
    %cst_48 = arith.constant 1.000000e+00 : f32
    %75 = vector.broadcast %cst_48 : f32 to vector<1x128xf32>
    %76 = arith.subf %74, %75 : vector<1x128xf32>
    %cst_49 = arith.constant 1.000000e+30 : f32
    %77 = vector.broadcast %cst_49 : f32 to vector<1x128xf32>
    %78 = arith.mulf %76, %77 : vector<1x128xf32>
    %79 = vector.broadcast %78 : vector<1x128xf32> to vector<4x128xf32>
    %80 = arith.addf %72, %79 : vector<4x128xf32>
    %81 = arith.maximumf %69, %80 : vector<4x128xf32>
    %82 = arith.addf %70, %72 : vector<4x128xf32>
    %c7 = arith.constant 7 : index
    %c0_50 = arith.constant 0 : index
    %c0_51 = arith.constant 0 : index
    %83 = vector.load %arg2[%c7, %c0_50, %c0_51] : memref<9x4x128xf32, #tpu.memory_space<vmem>>, vector<1x4x128xf32>
    %84 = vector.shape_cast %83 : vector<1x4x128xf32> to vector<4x128xf32>
    %c7_52 = arith.constant 7 : index
    %c0_53 = arith.constant 0 : index
    %c0_54 = arith.constant 0 : index
    %85 = vector.load %arg3[%c7_52, %c0_53, %c0_54] : memref<9x1x128xf32, #tpu.memory_space<vmem>>, vector<1x1x128xf32>
    %86 = vector.shape_cast %85 : vector<1x1x128xf32> to vector<1x128xf32>
    %cst_55 = arith.constant 1.000000e+00 : f32
    %87 = vector.broadcast %cst_55 : f32 to vector<1x128xf32>
    %88 = arith.subf %86, %87 : vector<1x128xf32>
    %cst_56 = arith.constant 1.000000e+30 : f32
    %89 = vector.broadcast %cst_56 : f32 to vector<1x128xf32>
    %90 = arith.mulf %88, %89 : vector<1x128xf32>
    %91 = vector.broadcast %90 : vector<1x128xf32> to vector<4x128xf32>
    %92 = arith.addf %84, %91 : vector<4x128xf32>
    %93 = arith.maximumf %81, %92 : vector<4x128xf32>
    %94 = arith.addf %82, %84 : vector<4x128xf32>
    %c8 = arith.constant 8 : index
    %c0_57 = arith.constant 0 : index
    %c0_58 = arith.constant 0 : index
    %95 = vector.load %arg2[%c8, %c0_57, %c0_58] : memref<9x4x128xf32, #tpu.memory_space<vmem>>, vector<1x4x128xf32>
    %96 = vector.shape_cast %95 : vector<1x4x128xf32> to vector<4x128xf32>
    %c8_59 = arith.constant 8 : index
    %c0_60 = arith.constant 0 : index
    %c0_61 = arith.constant 0 : index
    %97 = vector.load %arg3[%c8_59, %c0_60, %c0_61] : memref<9x1x128xf32, #tpu.memory_space<vmem>>, vector<1x1x128xf32>
    %98 = vector.shape_cast %97 : vector<1x1x128xf32> to vector<1x128xf32>
    %cst_62 = arith.constant 1.000000e+00 : f32
    %99 = vector.broadcast %cst_62 : f32 to vector<1x128xf32>
    %100 = arith.subf %98, %99 : vector<1x128xf32>
    %cst_63 = arith.constant 1.000000e+30 : f32
    %101 = vector.broadcast %cst_63 : f32 to vector<1x128xf32>
    %102 = arith.mulf %100, %101 : vector<1x128xf32>
    %103 = vector.broadcast %102 : vector<1x128xf32> to vector<4x128xf32>
    %104 = arith.addf %96, %103 : vector<4x128xf32>
    %105 = arith.maximumf %93, %104 : vector<4x128xf32>
    %106 = arith.addf %94, %96 : vector<4x128xf32>
    %c0_64 = arith.constant 0 : index
    %c0_65 = arith.constant 0 : index
    %107 = vector.load %arg4[%c0_64, %c0_65] : memref<1x128xf32, #tpu.memory_space<vmem>>, vector<1x128xf32>
    %108 = vector.broadcast %107 : vector<1x128xf32> to vector<4x128xf32>
    %109 = arith.mulf %106, %108 : vector<4x128xf32>
    %c0_66 = arith.constant 0 : index
    %c0_67 = arith.constant 0 : index
    %110 = vector.load %arg9[%c0_66, %c0_67] : memref<4x36xf32, #tpu.memory_space<vmem>>, vector<4x36xf32>
    %c0_68 = arith.constant 0 : index
    %c0_69 = arith.constant 0 : index
    %111 = vector.load %arg5[%c0_68, %c0_69] : memref<36x128xf32, #tpu.memory_space<vmem>>, vector<36x128xf32>
    %cst_70 = arith.constant 0.000000e+00 : f32
    %112 = vector.broadcast %cst_70 : f32 to vector<36x128xf32>
    %113 = arith.maximumf %111, %112 : vector<36x128xf32>
    %cst_71 = arith.constant dense<0.000000e+00> : vector<4x128xf32>
    %114 = tpu.matmul %110, %113, %cst_71 {dimension_numbers = #tpu.dot_dimension_numbers<[1], [0], [0], [1], [0, 0, 1, 1], [], []>} : vector<4x36xf32>, vector<36x128xf32>, vector<4x128xf32> -> vector<4x128xf32>
    %cst_72 = arith.constant dense<0.000000e+00> : vector<4xf32>
    %115 = vector.multi_reduction <add>, %114, %cst_72 [1] : vector<4x128xf32> to vector<4xf32>
    %116 = vector.shape_cast %115 : vector<4xf32> to vector<4x1xf32>
    %cst_73 = arith.constant 1.280000e+02 : f32
    %117 = vector.broadcast %cst_73 : f32 to vector<4x1xf32>
    %118 = arith.divf %116, %117 : vector<4x1xf32>
    %119 = vector.broadcast %118 : vector<4x1xf32> to vector<4x128xf32>
    %120 = arith.subf %114, %119 : vector<4x128xf32>
    %121 = arith.mulf %120, %120 : vector<4x128xf32>
    %cst_74 = arith.constant dense<0.000000e+00> : vector<4xf32>
    %122 = vector.multi_reduction <add>, %121, %cst_74 [1] : vector<4x128xf32> to vector<4xf32>
    %123 = vector.shape_cast %122 : vector<4xf32> to vector<4x1xf32>
    %cst_75 = arith.constant 1.280000e+02 : f32
    %124 = vector.broadcast %cst_75 : f32 to vector<4x1xf32>
    %125 = arith.divf %123, %124 : vector<4x1xf32>
    %126 = vector.broadcast %118 : vector<4x1xf32> to vector<4x128xf32>
    %127 = arith.subf %114, %126 : vector<4x128xf32>
    %cst_76 = arith.constant 9.99999974E-6 : f32
    %128 = vector.broadcast %cst_76 : f32 to vector<4x1xf32>
    %129 = arith.addf %125, %128 : vector<4x1xf32>
    %130 = math.rsqrt %129 : vector<4x1xf32>
    %131 = vector.broadcast %130 : vector<4x1xf32> to vector<4x128xf32>
    %132 = arith.mulf %127, %131 : vector<4x128xf32>
    %c0_77 = arith.constant 0 : index
    %c0_78 = arith.constant 0 : index
    %133 = vector.load %arg10[%c0_77, %c0_78] : memref<4x100xf32, #tpu.memory_space<vmem>>, vector<4x100xf32>
    %c0_79 = arith.constant 0 : index
    %c0_80 = arith.constant 0 : index
    %134 = vector.load %arg6[%c0_79, %c0_80] : memref<100x128xf32, #tpu.memory_space<vmem>>, vector<100x128xf32>
    %cst_81 = arith.constant 0.000000e+00 : f32
    %135 = vector.broadcast %cst_81 : f32 to vector<100x128xf32>
    %136 = arith.maximumf %134, %135 : vector<100x128xf32>
    %cst_82 = arith.constant dense<0.000000e+00> : vector<4x128xf32>
    %137 = tpu.matmul %133, %136, %cst_82 {dimension_numbers = #tpu.dot_dimension_numbers<[1], [0], [0], [1], [0, 0, 1, 1], [], []>} : vector<4x100xf32>, vector<100x128xf32>, vector<4x128xf32> -> vector<4x128xf32>
    %cst_83 = arith.constant dense<0.000000e+00> : vector<4xf32>
    %138 = vector.multi_reduction <add>, %137, %cst_83 [1] : vector<4x128xf32> to vector<4xf32>
    %139 = vector.shape_cast %138 : vector<4xf32> to vector<4x1xf32>
    %cst_84 = arith.constant 1.280000e+02 : f32
    %140 = vector.broadcast %cst_84 : f32 to vector<4x1xf32>
    %141 = arith.divf %139, %140 : vector<4x1xf32>
    %142 = vector.broadcast %141 : vector<4x1xf32> to vector<4x128xf32>
    %143 = arith.subf %137, %142 : vector<4x128xf32>
    %144 = arith.mulf %143, %143 : vector<4x128xf32>
    %cst_85 = arith.constant dense<0.000000e+00> : vector<4xf32>
    %145 = vector.multi_reduction <add>, %144, %cst_85 [1] : vector<4x128xf32> to vector<4xf32>
    %146 = vector.shape_cast %145 : vector<4xf32> to vector<4x1xf32>
    %cst_86 = arith.constant 1.280000e+02 : f32
    %147 = vector.broadcast %cst_86 : f32 to vector<4x1xf32>
    %148 = arith.divf %146, %147 : vector<4x1xf32>
    %149 = vector.broadcast %141 : vector<4x1xf32> to vector<4x128xf32>
    %150 = arith.subf %137, %149 : vector<4x128xf32>
    %cst_87 = arith.constant 9.99999974E-6 : f32
    %151 = vector.broadcast %cst_87 : f32 to vector<4x1xf32>
    %152 = arith.addf %148, %151 : vector<4x1xf32>
    %153 = math.rsqrt %152 : vector<4x1xf32>
    %154 = vector.broadcast %153 : vector<4x1xf32> to vector<4x128xf32>
    %155 = arith.mulf %150, %154 : vector<4x128xf32>
    %c0_88 = arith.constant 0 : index
    %c0_89 = arith.constant 0 : index
    %156 = vector.load %arg11[%c0_88, %c0_89] : memref<4x36xf32, #tpu.memory_space<vmem>>, vector<4x36xf32>
    %c0_90 = arith.constant 0 : index
    %c0_91 = arith.constant 0 : index
    %157 = vector.load %arg7[%c0_90, %c0_91] : memref<36x128xf32, #tpu.memory_space<vmem>>, vector<36x128xf32>
    %cst_92 = arith.constant 0.000000e+00 : f32
    %158 = vector.broadcast %cst_92 : f32 to vector<36x128xf32>
    %159 = arith.maximumf %157, %158 : vector<36x128xf32>
    %cst_93 = arith.constant dense<0.000000e+00> : vector<4x128xf32>
    %160 = tpu.matmul %156, %159, %cst_93 {dimension_numbers = #tpu.dot_dimension_numbers<[1], [0], [0], [1], [0, 0, 1, 1], [], []>} : vector<4x36xf32>, vector<36x128xf32>, vector<4x128xf32> -> vector<4x128xf32>
    %cst_94 = arith.constant dense<0.000000e+00> : vector<4xf32>
    %161 = vector.multi_reduction <add>, %160, %cst_94 [1] : vector<4x128xf32> to vector<4xf32>
    %162 = vector.shape_cast %161 : vector<4xf32> to vector<4x1xf32>
    %cst_95 = arith.constant 1.280000e+02 : f32
    %163 = vector.broadcast %cst_95 : f32 to vector<4x1xf32>
    %164 = arith.divf %162, %163 : vector<4x1xf32>
    %165 = vector.broadcast %164 : vector<4x1xf32> to vector<4x128xf32>
    %166 = arith.subf %160, %165 : vector<4x128xf32>
    %167 = arith.mulf %166, %166 : vector<4x128xf32>
    %cst_96 = arith.constant dense<0.000000e+00> : vector<4xf32>
    %168 = vector.multi_reduction <add>, %167, %cst_96 [1] : vector<4x128xf32> to vector<4xf32>
    %169 = vector.shape_cast %168 : vector<4xf32> to vector<4x1xf32>
    %cst_97 = arith.constant 1.280000e+02 : f32
    %170 = vector.broadcast %cst_97 : f32 to vector<4x1xf32>
    %171 = arith.divf %169, %170 : vector<4x1xf32>
    %172 = vector.broadcast %164 : vector<4x1xf32> to vector<4x128xf32>
    %173 = arith.subf %160, %172 : vector<4x128xf32>
    %cst_98 = arith.constant 9.99999974E-6 : f32
    %174 = vector.broadcast %cst_98 : f32 to vector<4x1xf32>
    %175 = arith.addf %171, %174 : vector<4x1xf32>
    %176 = math.rsqrt %175 : vector<4x1xf32>
    %177 = vector.broadcast %176 : vector<4x1xf32> to vector<4x128xf32>
    %178 = arith.mulf %173, %177 : vector<4x128xf32>
    %c0_99 = arith.constant 0 : index
    %c0_100 = arith.constant 0 : index
    %179 = vector.load %arg12[%c0_99, %c0_100] : memref<4x100xf32, #tpu.memory_space<vmem>>, vector<4x100xf32>
    %c0_101 = arith.constant 0 : index
    %c0_102 = arith.constant 0 : index
    %180 = vector.load %arg8[%c0_101, %c0_102] : memref<100x128xf32, #tpu.memory_space<vmem>>, vector<100x128xf32>
    %cst_103 = arith.constant 0.000000e+00 : f32
    %181 = vector.broadcast %cst_103 : f32 to vector<100x128xf32>
    %182 = arith.maximumf %180, %181 : vector<100x128xf32>
    %cst_104 = arith.constant dense<0.000000e+00> : vector<4x128xf32>
    %183 = tpu.matmul %179, %182, %cst_104 {dimension_numbers = #tpu.dot_dimension_numbers<[1], [0], [0], [1], [0, 0, 1, 1], [], []>} : vector<4x100xf32>, vector<100x128xf32>, vector<4x128xf32> -> vector<4x128xf32>
    %cst_105 = arith.constant dense<0.000000e+00> : vector<4xf32>
    %184 = vector.multi_reduction <add>, %183, %cst_105 [1] : vector<4x128xf32> to vector<4xf32>
    %185 = vector.shape_cast %184 : vector<4xf32> to vector<4x1xf32>
    %cst_106 = arith.constant 1.280000e+02 : f32
    %186 = vector.broadcast %cst_106 : f32 to vector<4x1xf32>
    %187 = arith.divf %185, %186 : vector<4x1xf32>
    %188 = vector.broadcast %187 : vector<4x1xf32> to vector<4x128xf32>
    %189 = arith.subf %183, %188 : vector<4x128xf32>
    %190 = arith.mulf %189, %189 : vector<4x128xf32>
    %cst_107 = arith.constant dense<0.000000e+00> : vector<4xf32>
    %191 = vector.multi_reduction <add>, %190, %cst_107 [1] : vector<4x128xf32> to vector<4xf32>
    %192 = vector.shape_cast %191 : vector<4xf32> to vector<4x1xf32>
    %cst_108 = arith.constant 1.280000e+02 : f32
    %193 = vector.broadcast %cst_108 : f32 to vector<4x1xf32>
    %194 = arith.divf %192, %193 : vector<4x1xf32>
    %195 = vector.broadcast %187 : vector<4x1xf32> to vector<4x128xf32>
    %196 = arith.subf %183, %195 : vector<4x128xf32>
    %cst_109 = arith.constant 9.99999974E-6 : f32
    %197 = vector.broadcast %cst_109 : f32 to vector<4x1xf32>
    %198 = arith.addf %194, %197 : vector<4x1xf32>
    %199 = math.rsqrt %198 : vector<4x1xf32>
    %200 = vector.broadcast %199 : vector<4x1xf32> to vector<4x128xf32>
    %201 = arith.mulf %196, %200 : vector<4x128xf32>
    %c1_110 = arith.constant 1 : index
    %202 = memref.load %arg0[%c1_110] : memref<8xf32, #tpu.memory_space<smem>>
    %203 = vector.broadcast %202 : f32 to vector<4x128xf32>
    %204 = arith.mulf %203, %105 : vector<4x128xf32>
    %c2_111 = arith.constant 2 : index
    %205 = memref.load %arg0[%c2_111] : memref<8xf32, #tpu.memory_space<smem>>
    %206 = vector.broadcast %205 : f32 to vector<4x128xf32>
    %207 = arith.mulf %206, %109 : vector<4x128xf32>
    %208 = arith.addf %204, %207 : vector<4x128xf32>
    %c3_112 = arith.constant 3 : index
    %209 = memref.load %arg0[%c3_112] : memref<8xf32, #tpu.memory_space<smem>>
    %210 = vector.broadcast %209 : f32 to vector<4x128xf32>
    %211 = arith.mulf %210, %0 : vector<4x128xf32>
    %212 = arith.addf %208, %211 : vector<4x128xf32>
    %c4_113 = arith.constant 4 : index
    %213 = memref.load %arg0[%c4_113] : memref<8xf32, #tpu.memory_space<smem>>
    %214 = vector.broadcast %213 : f32 to vector<4x128xf32>
    %215 = arith.mulf %214, %132 : vector<4x128xf32>
    %216 = arith.addf %212, %215 : vector<4x128xf32>
    %c5_114 = arith.constant 5 : index
    %217 = memref.load %arg0[%c5_114] : memref<8xf32, #tpu.memory_space<smem>>
    %218 = vector.broadcast %217 : f32 to vector<4x128xf32>
    %219 = arith.mulf %218, %155 : vector<4x128xf32>
    %220 = arith.addf %216, %219 : vector<4x128xf32>
    %c6_115 = arith.constant 6 : index
    %221 = memref.load %arg0[%c6_115] : memref<8xf32, #tpu.memory_space<smem>>
    %222 = vector.broadcast %221 : f32 to vector<4x128xf32>
    %223 = arith.mulf %222, %178 : vector<4x128xf32>
    %224 = arith.addf %220, %223 : vector<4x128xf32>
    %c7_116 = arith.constant 7 : index
    %225 = memref.load %arg0[%c7_116] : memref<8xf32, #tpu.memory_space<smem>>
    %226 = vector.broadcast %225 : f32 to vector<4x128xf32>
    %227 = arith.mulf %226, %201 : vector<4x128xf32>
    %228 = arith.addf %224, %227 : vector<4x128xf32>
    %c0_117 = arith.constant 0 : index
    %c0_118 = arith.constant 0 : index
    %229 = vector.load %arg13[%c0_117, %c0_118] : memref<4x128xf32, #tpu.memory_space<vmem>>, vector<4x128xf32>
    tpu.vector_store %arg13[%c0_117, %c0_118], %228 {strides = array<i32>} : memref<4x128xf32, #tpu.memory_space<vmem>>, vector<4x128xf32>,
    return
  }
}

module attributes {stable_mosaic.version = 11 : i64} {
  func.func @_conv_bn_kernel(%arg0: memref<2304x128xf32, #tpu.memory_space<vmem>>, %arg1: memref<8x2304xf32, #tpu.memory_space<vmem>>, %arg2: memref<8x128xf32, #tpu.memory_space<vmem>>) attributes {dimension_semantics = [], scalar_prefetch = 0 : i64, scratch_operands = 0 : i64, tpu.core_type = #tpu.core_type<tc>} {
    %c0 = arith.constant 0 : index
    %c0_0 = arith.constant 0 : index
    %0 = vector.load %arg0[%c0, %c0_0] : memref<2304x128xf32, #tpu.memory_space<vmem>>, vector<2304x128xf32>
    %c0_1 = arith.constant 0 : index
    %c0_2 = arith.constant 0 : index
    %1 = vector.load %arg1[%c0_1, %c0_2] : memref<8x2304xf32, #tpu.memory_space<vmem>>, vector<8x2304xf32>
    %cst = arith.constant dense<0.000000e+00> : vector<8x128xf32>
    %2 = tpu.matmul %1, %0, %cst {dimension_numbers = #tpu.dot_dimension_numbers<[1], [0], [0], [1], [0, 0, 1, 1], [], []>} : vector<8x2304xf32>, vector<2304x128xf32>, vector<8x128xf32> -> vector<8x128xf32>
    %cst_3 = arith.constant dense<0.000000e+00> : vector<8xf32>
    %3 = vector.multi_reduction <add>, %2, %cst_3 [1] : vector<8x128xf32> to vector<8xf32>
    %4 = vector.shape_cast %3 : vector<8xf32> to vector<8x1xf32>
    %cst_4 = arith.constant 1.280000e+02 : f32
    %5 = vector.broadcast %cst_4 : f32 to vector<8x1xf32>
    %6 = arith.divf %4, %5 : vector<8x1xf32>
    %7 = vector.broadcast %6 : vector<8x1xf32> to vector<8x128xf32>
    %8 = arith.subf %2, %7 : vector<8x128xf32>
    %9 = arith.mulf %8, %8 : vector<8x128xf32>
    %cst_5 = arith.constant dense<0.000000e+00> : vector<8xf32>
    %10 = vector.multi_reduction <add>, %9, %cst_5 [1] : vector<8x128xf32> to vector<8xf32>
    %11 = vector.shape_cast %10 : vector<8xf32> to vector<8x1xf32>
    %cst_6 = arith.constant 1.280000e+02 : f32
    %12 = vector.broadcast %cst_6 : f32 to vector<8x1xf32>
    %13 = arith.divf %11, %12 : vector<8x1xf32>
    %14 = vector.broadcast %6 : vector<8x1xf32> to vector<8x128xf32>
    %15 = arith.subf %2, %14 : vector<8x128xf32>
    %cst_7 = arith.constant 9.99999974E-6 : f32
    %16 = vector.broadcast %cst_7 : f32 to vector<8x1xf32>
    %17 = arith.addf %13, %16 : vector<8x1xf32>
    %18 = math.rsqrt %17 : vector<8x1xf32>
    %19 = vector.broadcast %18 : vector<8x1xf32> to vector<8x128xf32>
    %20 = arith.mulf %15, %19 : vector<8x128xf32>
    %c0_8 = arith.constant 0 : index
    %c0_9 = arith.constant 0 : index
    %21 = vector.load %arg2[%c0_8, %c0_9] : memref<8x128xf32, #tpu.memory_space<vmem>>, vector<8x128xf32>
    tpu.vector_store %arg2[%c0_8, %c0_9], %20 {strides = array<i32>} : memref<8x128xf32, #tpu.memory_space<vmem>>, vector<8x128xf32>,
    return
  }
}

module attributes {stable_mosaic.version = 11 : i64} {
  func.func @_conv_bn_kernel(%arg0: memref<8x128xf32, #tpu.memory_space<vmem>>, %arg1: memref<4x8xf32, #tpu.memory_space<vmem>>, %arg2: memref<4x128xf32, #tpu.memory_space<vmem>>) attributes {dimension_semantics = [], scalar_prefetch = 0 : i64, scratch_operands = 0 : i64, tpu.core_type = #tpu.core_type<tc>} {
    %c0 = arith.constant 0 : index
    %c0_0 = arith.constant 0 : index
    %0 = vector.load %arg0[%c0, %c0_0] : memref<8x128xf32, #tpu.memory_space<vmem>>, vector<8x128xf32>
    %cst = arith.constant 0.000000e+00 : f32
    %1 = vector.broadcast %cst : f32 to vector<8x128xf32>
    %2 = arith.maximumf %0, %1 : vector<8x128xf32>
    %c0_1 = arith.constant 0 : index
    %c0_2 = arith.constant 0 : index
    %3 = vector.load %arg1[%c0_1, %c0_2] : memref<4x8xf32, #tpu.memory_space<vmem>>, vector<4x8xf32>
    %cst_3 = arith.constant dense<0.000000e+00> : vector<4x128xf32>
    %4 = tpu.matmul %3, %2, %cst_3 {dimension_numbers = #tpu.dot_dimension_numbers<[1], [0], [0], [1], [0, 0, 1, 1], [], []>} : vector<4x8xf32>, vector<8x128xf32>, vector<4x128xf32> -> vector<4x128xf32>
    %cst_4 = arith.constant dense<0.000000e+00> : vector<4xf32>
    %5 = vector.multi_reduction <add>, %4, %cst_4 [1] : vector<4x128xf32> to vector<4xf32>
    %6 = vector.shape_cast %5 : vector<4xf32> to vector<4x1xf32>
    %cst_5 = arith.constant 1.280000e+02 : f32
    %7 = vector.broadcast %cst_5 : f32 to vector<4x1xf32>
    %8 = arith.divf %6, %7 : vector<4x1xf32>
    %9 = vector.broadcast %8 : vector<4x1xf32> to vector<4x128xf32>
    %10 = arith.subf %4, %9 : vector<4x128xf32>
    %11 = arith.mulf %10, %10 : vector<4x128xf32>
    %cst_6 = arith.constant dense<0.000000e+00> : vector<4xf32>
    %12 = vector.multi_reduction <add>, %11, %cst_6 [1] : vector<4x128xf32> to vector<4xf32>
    %13 = vector.shape_cast %12 : vector<4xf32> to vector<4x1xf32>
    %cst_7 = arith.constant 1.280000e+02 : f32
    %14 = vector.broadcast %cst_7 : f32 to vector<4x1xf32>
    %15 = arith.divf %13, %14 : vector<4x1xf32>
    %16 = vector.broadcast %8 : vector<4x1xf32> to vector<4x128xf32>
    %17 = arith.subf %4, %16 : vector<4x128xf32>
    %cst_8 = arith.constant 9.99999974E-6 : f32
    %18 = vector.broadcast %cst_8 : f32 to vector<4x1xf32>
    %19 = arith.addf %15, %18 : vector<4x1xf32>
    %20 = math.rsqrt %19 : vector<4x1xf32>
    %21 = vector.broadcast %20 : vector<4x1xf32> to vector<4x128xf32>
    %22 = arith.mulf %17, %21 : vector<4x128xf32>
    %c0_9 = arith.constant 0 : index
    %c0_10 = arith.constant 0 : index
    %23 = vector.load %arg2[%c0_9, %c0_10] : memref<4x128xf32, #tpu.memory_space<vmem>>, vector<4x128xf32>
    tpu.vector_store %arg2[%c0_9, %c0_10], %22 {strides = array<i32>} : memref<4x128xf32, #tpu.memory_space<vmem>>, vector<4x128xf32>,
    return
  }
}

module attributes {stable_mosaic.version = 11 : i64} {
  func.func @_choose_pool_kernel(%arg0: memref<2xf32, #tpu.memory_space<smem>>, %arg1: memref<9x8x32xf32, #tpu.memory_space<vmem>>, %arg2: memref<9x1x32xf32, #tpu.memory_space<vmem>>, %arg3: memref<1x32xf32, #tpu.memory_space<vmem>>, %arg4: memref<8x32xf32, #tpu.memory_space<vmem>>) attributes {dimension_semantics = [], scalar_prefetch = 0 : i64, scratch_operands = 0 : i64, tpu.core_type = #tpu.core_type<tc>} {
    %c0 = arith.constant 0 : index
    %c0_0 = arith.constant 0 : index
    %c0_1 = arith.constant 0 : index
    %0 = vector.load %arg1[%c0, %c0_0, %c0_1] : memref<9x8x32xf32, #tpu.memory_space<vmem>>, vector<1x8x32xf32>
    %1 = vector.shape_cast %0 : vector<1x8x32xf32> to vector<8x32xf32>
    %c0_2 = arith.constant 0 : index
    %c0_3 = arith.constant 0 : index
    %c0_4 = arith.constant 0 : index
    %2 = vector.load %arg2[%c0_2, %c0_3, %c0_4] : memref<9x1x32xf32, #tpu.memory_space<vmem>>, vector<1x1x32xf32>
    %3 = vector.shape_cast %2 : vector<1x1x32xf32> to vector<1x32xf32>
    %cst = arith.constant 1.000000e+00 : f32
    %4 = vector.broadcast %cst : f32 to vector<1x32xf32>
    %5 = arith.subf %3, %4 : vector<1x32xf32>
    %cst_5 = arith.constant 1.000000e+30 : f32
    %6 = vector.broadcast %cst_5 : f32 to vector<1x32xf32>
    %7 = arith.mulf %5, %6 : vector<1x32xf32>
    %8 = vector.broadcast %7 : vector<1x32xf32> to vector<8x32xf32>
    %9 = arith.addf %1, %8 : vector<8x32xf32>
    %c1 = arith.constant 1 : index
    %c0_6 = arith.constant 0 : index
    %c0_7 = arith.constant 0 : index
    %10 = vector.load %arg1[%c1, %c0_6, %c0_7] : memref<9x8x32xf32, #tpu.memory_space<vmem>>, vector<1x8x32xf32>
    %11 = vector.shape_cast %10 : vector<1x8x32xf32> to vector<8x32xf32>
    %c1_8 = arith.constant 1 : index
    %c0_9 = arith.constant 0 : index
    %c0_10 = arith.constant 0 : index
    %12 = vector.load %arg2[%c1_8, %c0_9, %c0_10] : memref<9x1x32xf32, #tpu.memory_space<vmem>>, vector<1x1x32xf32>
    %13 = vector.shape_cast %12 : vector<1x1x32xf32> to vector<1x32xf32>
    %cst_11 = arith.constant 1.000000e+00 : f32
    %14 = vector.broadcast %cst_11 : f32 to vector<1x32xf32>
    %15 = arith.subf %13, %14 : vector<1x32xf32>
    %cst_12 = arith.constant 1.000000e+30 : f32
    %16 = vector.broadcast %cst_12 : f32 to vector<1x32xf32>
    %17 = arith.mulf %15, %16 : vector<1x32xf32>
    %18 = vector.broadcast %17 : vector<1x32xf32> to vector<8x32xf32>
    %19 = arith.addf %11, %18 : vector<8x32xf32>
    %20 = arith.maximumf %9, %19 : vector<8x32xf32>
    %21 = arith.addf %1, %11 : vector<8x32xf32>
    %c2 = arith.constant 2 : index
    %c0_13 = arith.constant 0 : index
    %c0_14 = arith.constant 0 : index
    %22 = vector.load %arg1[%c2, %c0_13, %c0_14] : memref<9x8x32xf32, #tpu.memory_space<vmem>>, vector<1x8x32xf32>
    %23 = vector.shape_cast %22 : vector<1x8x32xf32> to vector<8x32xf32>
    %c2_15 = arith.constant 2 : index
    %c0_16 = arith.constant 0 : index
    %c0_17 = arith.constant 0 : index
    %24 = vector.load %arg2[%c2_15, %c0_16, %c0_17] : memref<9x1x32xf32, #tpu.memory_space<vmem>>, vector<1x1x32xf32>
    %25 = vector.shape_cast %24 : vector<1x1x32xf32> to vector<1x32xf32>
    %cst_18 = arith.constant 1.000000e+00 : f32
    %26 = vector.broadcast %cst_18 : f32 to vector<1x32xf32>
    %27 = arith.subf %25, %26 : vector<1x32xf32>
    %cst_19 = arith.constant 1.000000e+30 : f32
    %28 = vector.broadcast %cst_19 : f32 to vector<1x32xf32>
    %29 = arith.mulf %27, %28 : vector<1x32xf32>
    %30 = vector.broadcast %29 : vector<1x32xf32> to vector<8x32xf32>
    %31 = arith.addf %23, %30 : vector<8x32xf32>
    %32 = arith.maximumf %20, %31 : vector<8x32xf32>
    %33 = arith.addf %21, %23 : vector<8x32xf32>
    %c3 = arith.constant 3 : index
    %c0_20 = arith.constant 0 : index
    %c0_21 = arith.constant 0 : index
    %34 = vector.load %arg1[%c3, %c0_20, %c0_21] : memref<9x8x32xf32, #tpu.memory_space<vmem>>, vector<1x8x32xf32>
    %35 = vector.shape_cast %34 : vector<1x8x32xf32> to vector<8x32xf32>
    %c3_22 = arith.constant 3 : index
    %c0_23 = arith.constant 0 : index
    %c0_24 = arith.constant 0 : index
    %36 = vector.load %arg2[%c3_22, %c0_23, %c0_24] : memref<9x1x32xf32, #tpu.memory_space<vmem>>, vector<1x1x32xf32>
    %37 = vector.shape_cast %36 : vector<1x1x32xf32> to vector<1x32xf32>
    %cst_25 = arith.constant 1.000000e+00 : f32
    %38 = vector.broadcast %cst_25 : f32 to vector<1x32xf32>
    %39 = arith.subf %37, %38 : vector<1x32xf32>
    %cst_26 = arith.constant 1.000000e+30 : f32
    %40 = vector.broadcast %cst_26 : f32 to vector<1x32xf32>
    %41 = arith.mulf %39, %40 : vector<1x32xf32>
    %42 = vector.broadcast %41 : vector<1x32xf32> to vector<8x32xf32>
    %43 = arith.addf %35, %42 : vector<8x32xf32>
    %44 = arith.maximumf %32, %43 : vector<8x32xf32>
    %45 = arith.addf %33, %35 : vector<8x32xf32>
    %c4 = arith.constant 4 : index
    %c0_27 = arith.constant 0 : index
    %c0_28 = arith.constant 0 : index
    %46 = vector.load %arg1[%c4, %c0_27, %c0_28] : memref<9x8x32xf32, #tpu.memory_space<vmem>>, vector<1x8x32xf32>
    %47 = vector.shape_cast %46 : vector<1x8x32xf32> to vector<8x32xf32>
    %c4_29 = arith.constant 4 : index
    %c0_30 = arith.constant 0 : index
    %c0_31 = arith.constant 0 : index
    %48 = vector.load %arg2[%c4_29, %c0_30, %c0_31] : memref<9x1x32xf32, #tpu.memory_space<vmem>>, vector<1x1x32xf32>
    %49 = vector.shape_cast %48 : vector<1x1x32xf32> to vector<1x32xf32>
    %cst_32 = arith.constant 1.000000e+00 : f32
    %50 = vector.broadcast %cst_32 : f32 to vector<1x32xf32>
    %51 = arith.subf %49, %50 : vector<1x32xf32>
    %cst_33 = arith.constant 1.000000e+30 : f32
    %52 = vector.broadcast %cst_33 : f32 to vector<1x32xf32>
    %53 = arith.mulf %51, %52 : vector<1x32xf32>
    %54 = vector.broadcast %53 : vector<1x32xf32> to vector<8x32xf32>
    %55 = arith.addf %47, %54 : vector<8x32xf32>
    %56 = arith.maximumf %44, %55 : vector<8x32xf32>
    %57 = arith.addf %45, %47 : vector<8x32xf32>
    %c5 = arith.constant 5 : index
    %c0_34 = arith.constant 0 : index
    %c0_35 = arith.constant 0 : index
    %58 = vector.load %arg1[%c5, %c0_34, %c0_35] : memref<9x8x32xf32, #tpu.memory_space<vmem>>, vector<1x8x32xf32>
    %59 = vector.shape_cast %58 : vector<1x8x32xf32> to vector<8x32xf32>
    %c5_36 = arith.constant 5 : index
    %c0_37 = arith.constant 0 : index
    %c0_38 = arith.constant 0 : index
    %60 = vector.load %arg2[%c5_36, %c0_37, %c0_38] : memref<9x1x32xf32, #tpu.memory_space<vmem>>, vector<1x1x32xf32>
    %61 = vector.shape_cast %60 : vector<1x1x32xf32> to vector<1x32xf32>
    %cst_39 = arith.constant 1.000000e+00 : f32
    %62 = vector.broadcast %cst_39 : f32 to vector<1x32xf32>
    %63 = arith.subf %61, %62 : vector<1x32xf32>
    %cst_40 = arith.constant 1.000000e+30 : f32
    %64 = vector.broadcast %cst_40 : f32 to vector<1x32xf32>
    %65 = arith.mulf %63, %64 : vector<1x32xf32>
    %66 = vector.broadcast %65 : vector<1x32xf32> to vector<8x32xf32>
    %67 = arith.addf %59, %66 : vector<8x32xf32>
    %68 = arith.maximumf %56, %67 : vector<8x32xf32>
    %69 = arith.addf %57, %59 : vector<8x32xf32>
    %c6 = arith.constant 6 : index
    %c0_41 = arith.constant 0 : index
    %c0_42 = arith.constant 0 : index
    %70 = vector.load %arg1[%c6, %c0_41, %c0_42] : memref<9x8x32xf32, #tpu.memory_space<vmem>>, vector<1x8x32xf32>
    %71 = vector.shape_cast %70 : vector<1x8x32xf32> to vector<8x32xf32>
    %c6_43 = arith.constant 6 : index
    %c0_44 = arith.constant 0 : index
    %c0_45 = arith.constant 0 : index
    %72 = vector.load %arg2[%c6_43, %c0_44, %c0_45] : memref<9x1x32xf32, #tpu.memory_space<vmem>>, vector<1x1x32xf32>
    %73 = vector.shape_cast %72 : vector<1x1x32xf32> to vector<1x32xf32>
    %cst_46 = arith.constant 1.000000e+00 : f32
    %74 = vector.broadcast %cst_46 : f32 to vector<1x32xf32>
    %75 = arith.subf %73, %74 : vector<1x32xf32>
    %cst_47 = arith.constant 1.000000e+30 : f32
    %76 = vector.broadcast %cst_47 : f32 to vector<1x32xf32>
    %77 = arith.mulf %75, %76 : vector<1x32xf32>
    %78 = vector.broadcast %77 : vector<1x32xf32> to vector<8x32xf32>
    %79 = arith.addf %71, %78 : vector<8x32xf32>
    %80 = arith.maximumf %68, %79 : vector<8x32xf32>
    %81 = arith.addf %69, %71 : vector<8x32xf32>
    %c7 = arith.constant 7 : index
    %c0_48 = arith.constant 0 : index
    %c0_49 = arith.constant 0 : index
    %82 = vector.load %arg1[%c7, %c0_48, %c0_49] : memref<9x8x32xf32, #tpu.memory_space<vmem>>, vector<1x8x32xf32>
    %83 = vector.shape_cast %82 : vector<1x8x32xf32> to vector<8x32xf32>
    %c7_50 = arith.constant 7 : index
    %c0_51 = arith.constant 0 : index
    %c0_52 = arith.constant 0 : index
    %84 = vector.load %arg2[%c7_50, %c0_51, %c0_52] : memref<9x1x32xf32, #tpu.memory_space<vmem>>, vector<1x1x32xf32>
    %85 = vector.shape_cast %84 : vector<1x1x32xf32> to vector<1x32xf32>
    %cst_53 = arith.constant 1.000000e+00 : f32
    %86 = vector.broadcast %cst_53 : f32 to vector<1x32xf32>
    %87 = arith.subf %85, %86 : vector<1x32xf32>
    %cst_54 = arith.constant 1.000000e+30 : f32
    %88 = vector.broadcast %cst_54 : f32 to vector<1x32xf32>
    %89 = arith.mulf %87, %88 : vector<1x32xf32>
    %90 = vector.broadcast %89 : vector<1x32xf32> to vector<8x32xf32>
    %91 = arith.addf %83, %90 : vector<8x32xf32>
    %92 = arith.maximumf %80, %91 : vector<8x32xf32>
    %93 = arith.addf %81, %83 : vector<8x32xf32>
    %c8 = arith.constant 8 : index
    %c0_55 = arith.constant 0 : index
    %c0_56 = arith.constant 0 : index
    %94 = vector.load %arg1[%c8, %c0_55, %c0_56] : memref<9x8x32xf32, #tpu.memory_space<vmem>>, vector<1x8x32xf32>
    %95 = vector.shape_cast %94 : vector<1x8x32xf32> to vector<8x32xf32>
    %c8_57 = arith.constant 8 : index
    %c0_58 = arith.constant 0 : index
    %c0_59 = arith.constant 0 : index
    %96 = vector.load %arg2[%c8_57, %c0_58, %c0_59] : memref<9x1x32xf32, #tpu.memory_space<vmem>>, vector<1x1x32xf32>
    %97 = vector.shape_cast %96 : vector<1x1x32xf32> to vector<1x32xf32>
    %cst_60 = arith.constant 1.000000e+00 : f32
    %98 = vector.broadcast %cst_60 : f32 to vector<1x32xf32>
    %99 = arith.subf %97, %98 : vector<1x32xf32>
    %cst_61 = arith.constant 1.000000e+30 : f32
    %100 = vector.broadcast %cst_61 : f32 to vector<1x32xf32>
    %101 = arith.mulf %99, %100 : vector<1x32xf32>
    %102 = vector.broadcast %101 : vector<1x32xf32> to vector<8x32xf32>
    %103 = arith.addf %95, %102 : vector<8x32xf32>
    %104 = arith.maximumf %92, %103 : vector<8x32xf32>
    %105 = arith.addf %93, %95 : vector<8x32xf32>
    %c0_62 = arith.constant 0 : index
    %c0_63 = arith.constant 0 : index
    %106 = vector.load %arg3[%c0_62, %c0_63] : memref<1x32xf32, #tpu.memory_space<vmem>>, vector<1x32xf32>
    %107 = vector.broadcast %106 : vector<1x32xf32> to vector<8x32xf32>
    %108 = arith.mulf %105, %107 : vector<8x32xf32>
    %c0_64 = arith.constant 0 : index
    %109 = memref.load %arg0[%c0_64] : memref<2xf32, #tpu.memory_space<smem>>
    %110 = vector.broadcast %109 : f32 to vector<8x32xf32>
    %111 = arith.mulf %110, %104 : vector<8x32xf32>
    %c1_65 = arith.constant 1 : index
    %112 = memref.load %arg0[%c1_65] : memref<2xf32, #tpu.memory_space<smem>>
    %113 = vector.broadcast %112 : f32 to vector<8x32xf32>
    %114 = arith.mulf %113, %108 : vector<8x32xf32>
    %115 = arith.addf %111, %114 : vector<8x32xf32>
    %c0_66 = arith.constant 0 : index
    %c0_67 = arith.constant 0 : index
    %116 = vector.load %arg4[%c0_66, %c0_67] : memref<8x32xf32, #tpu.memory_space<vmem>>, vector<8x32xf32>
    tpu.vector_store %arg4[%c0_66, %c0_67], %115 {strides = array<i32>} : memref<8x32xf32, #tpu.memory_space<vmem>>, vector<8x32xf32>,
    return
  }
}

module attributes {stable_mosaic.version = 11 : i64} {
  func.func @_head_kernel(%arg0: memref<8x32xf32, #tpu.memory_space<vmem>>, %arg1: memref<32x2xf32, #tpu.memory_space<vmem>>, %arg2: memref<10x8xf32, #tpu.memory_space<vmem>>, %arg3: memref<10x1xf32, #tpu.memory_space<vmem>>, %arg4: memref<10x2xf32, #tpu.memory_space<vmem>>) attributes {dimension_semantics = [], scalar_prefetch = 0 : i64, scratch_operands = 0 : i64, tpu.core_type = #tpu.core_type<tc>} {
    %c0 = arith.constant 0 : index
    %c0_0 = arith.constant 0 : index
    %0 = vector.load %arg0[%c0, %c0_0] : memref<8x32xf32, #tpu.memory_space<vmem>>, vector<8x32xf32>
    %c0_1 = arith.constant 0 : index
    %c0_2 = arith.constant 0 : index
    %1 = vector.load %arg1[%c0_1, %c0_2] : memref<32x2xf32, #tpu.memory_space<vmem>>, vector<32x2xf32>
    %cst = arith.constant dense<0.000000e+00> : vector<8x2xf32>
    %2 = tpu.matmul %0, %1, %cst {dimension_numbers = #tpu.dot_dimension_numbers<[1], [0], [0], [1], [0, 0, 1, 1], [], []>} : vector<8x32xf32>, vector<32x2xf32>, vector<8x2xf32> -> vector<8x2xf32>
    %c0_3 = arith.constant 0 : index
    %c0_4 = arith.constant 0 : index
    %3 = vector.load %arg2[%c0_3, %c0_4] : memref<10x8xf32, #tpu.memory_space<vmem>>, vector<10x8xf32>
    %cst_5 = arith.constant dense<0.000000e+00> : vector<10x2xf32>
    %4 = tpu.matmul %3, %2, %cst_5 {dimension_numbers = #tpu.dot_dimension_numbers<[1], [0], [0], [1], [0, 0, 1, 1], [], []>} : vector<10x8xf32>, vector<8x2xf32>, vector<10x2xf32> -> vector<10x2xf32>
    %c0_6 = arith.constant 0 : index
    %c0_7 = arith.constant 0 : index
    %5 = vector.load %arg3[%c0_6, %c0_7] : memref<10x1xf32, #tpu.memory_space<vmem>>, vector<10x1xf32>
    %6 = vector.broadcast %5 : vector<10x1xf32> to vector<10x2xf32>
    %7 = arith.addf %4, %6 : vector<10x2xf32>
    %c0_8 = arith.constant 0 : index
    %c0_9 = arith.constant 0 : index
    %8 = vector.load %arg4[%c0_8, %c0_9] : memref<10x2xf32, #tpu.memory_space<vmem>>, vector<10x2xf32>
    tpu.vector_store %arg4[%c0_8, %c0_9], %7 {strides = array<i32>} : memref<10x2xf32, #tpu.memory_space<vmem>>, vector<10x2xf32>,
    return
  }
}

</mosaic_0001>

<bundles_post_ra>
// kernel: network_forward.21
= control target key start
LH: loop header
LB: loop body
LE: loop exit
PB: predicated region body
PF: predicated region fallthrough
CT: control target
= control target key end

     0   :  { %s3165_s0 = inlined_call_operand.vmem [shape: f32[1152,512], index: 0, kind: input, shape index: {}]   ;;  %s3166_s1 = inlined_call_operand.vmem [shape: f32[8,1152], index: 1, kind: input, shape index: {}]   ;;  %s3167_s2 = inlined_call_operand.vmem [shape: f32[8,512], index: 2, kind: output, shape index: {}]  }
   0x1   :  { %v72_v0 = vld [vmem:[%s3165_s0 + $0x1e8] sm:$0xff]  ;;  %v71_v2 = vld [vmem:[%s3165_s0 + $0x1e0] sm:$0xff] }
   0x2   :  { %v200_v1 = vld [vmem:[%s3165_s0 + $0x5e8] sm:$0xff]  ;;  %596 = vmatprep.subr.mxu0 %v72_v0  ;;  %v199_v3 = vld [vmem:[%s3165_s0 + $0x5e0] sm:$0xff] }
   0x3   :  { %667 = vmatprep.subr.mxu1 %v200_v1  ;;  %v68_v4 = vld [vmem:[%s3165_s0 + $0x1c8] sm:$0xff]  ;;  %597 = vmatpush1.msra.mxu0 %v71_v2  ;;  %v67_v6 = vld [vmem:[%s3165_s0 + $0x1c0] sm:$0xff] }
   0x4   :  { %v196_v5 = vld [vmem:[%s3165_s0 + $0x5c8] sm:$0xff]  ;;  %668 = vmatpush1.msra.mxu1 %v199_v3  ;;  %v195_v7 = vld [vmem:[%s3165_s0 + $0x5c0] sm:$0xff]  ;;  %598 = vmatprep.subr.mxu0 %v68_v4 }
   0x5   :  { %v64_v8 = vld [vmem:[%s3165_s0 + $0x1a8] sm:$0xff]  ;;  %669 = vmatprep.subr.mxu1 %v196_v5  ;;  %v63_v10 = vld [vmem:[%s3165_s0 + $0x1a0] sm:$0xff]  ;;  %599 = vmatpush1.msra.mxu0 %v67_v6 }
   0x6   :  { %v192_v9 = vld [vmem:[%s3165_s0 + $0x5a8] sm:$0xff]  ;;  %v191_v11 = vld [vmem:[%s3165_s0 + $0x5a0] sm:$0xff]  ;;  %670 = vmatpush1.msra.mxu1 %v195_v7  ;;  %600 = vmatprep.subr.mxu0 %v64_v8 }
   0x7   :  { %v60_v12 = vld [vmem:[%s3165_s0 + $0x188] sm:$0xff]  ;;  %671 = vmatprep.subr.mxu1 %v192_v9  ;;  %v59_v14 = vld [vmem:[%s3165_s0 + $0x180] sm:$0xff]  ;;  %601 = vmatpush1.msra.mxu0 %v63_v10 }
   0x8   :  { %v188_v13 = vld [vmem:[%s3165_s0 + $0x588] sm:$0xff]  ;;  %v187_v15 = vld [vmem:[%s3165_s0 + $0x580] sm:$0xff]  ;;  %672 = vmatpush1.msra.mxu1 %v191_v11  ;;  %602 = vmatprep.subr.mxu0 %v60_v12 }
   0x9   :  { %v56_v16 = vld [vmem:[%s3165_s0 + $0x168] sm:$0xff]  ;;  %673 = vmatprep.subr.mxu1 %v188_v13  ;;  %v55_v18 = vld [vmem:[%s3165_s0 + $0x160] sm:$0xff]  ;;  %603 = vmatpush1.msra.mxu0 %v59_v14 }
   0xa   :  { %v184_v17 = vld [vmem:[%s3165_s0 + $0x568] sm:$0xff]  ;;  %v183_v19 = vld [vmem:[%s3165_s0 + $0x560] sm:$0xff]  ;;  %674 = vmatpush1.msra.mxu1 %v187_v15  ;;  %604 = vmatprep.subr.mxu0 %v56_v16 }
   0xb   :  { %v52_v20 = vld [vmem:[%s3165_s0 + $0x148] sm:$0xff]  ;;  %675 = vmatprep.subr.mxu1 %v184_v17  ;;  %v51_v22 = vld [vmem:[%s3165_s0 + $0x140] sm:$0xff]  ;;  %605 = vmatpush1.msra.mxu0 %v55_v18 }
   0xc   :  { %v180_v21 = vld [vmem:[%s3165_s0 + $0x548] sm:$0xff]  ;;  %v179_v23 = vld [vmem:[%s3165_s0 + $0x540] sm:$0xff]  ;;  %676 = vmatpush1.msra.mxu1 %v183_v19  ;;  %606 = vmatprep.subr.mxu0 %v52_v20 }
   0xd   :  { %v48_v24 = vld [vmem:[%s3165_s0 + $0x128] sm:$0xff]  ;;  %677 = vmatprep.subr.mxu1 %v180_v21  ;;  %v47_v26 = vld [vmem:[%s3165_s0 + $0x120] sm:$0xff]  ;;  %607 = vmatpush1.msra.mxu0 %v51_v22 }
   0xe   :  { %v176_v25 = vld [vmem:[%s3165_s0 + $0x528] sm:$0xff]  ;;  %v175_v27 = vld [vmem:[%s3165_s0 + $0x520] sm:$0xff]  ;;  %678 = vmatpush1.msra.mxu1 %v179_v23  ;;  %608 = vmatprep.subr.mxu0 %v48_v24 }
   0xf   :  { %v44_v28 = vld [vmem:[%s3165_s0 + $0x108] sm:$0xff]  ;;  %679 = vmatprep.subr.mxu1 %v176_v25  ;;  %v43_v30 = vld [vmem:[%s3165_s0 + $0x100] sm:$0xff]  ;;  %609 = vmatpush1.msra.mxu0 %v47_v26 }
  0x10   :  { %v172_v29 = vld [vmem:[%s3165_s0 + $0x508] sm:$0xff]  ;;  %v171_v31 = vld [vmem:[%s3165_s0 + $0x500] sm:$0xff]  ;;  %680 = vmatpush1.msra.mxu1 %v175_v27  ;;  %610 = vmatprep.subr.mxu0 %v44_v28 }
  0x11   :  { %v40_v32 = vld [vmem:[%s3165_s0 + $0xe8] sm:$0xff]  ;;  %681 = vmatprep.subr.mxu1 %v172_v29  ;;  %v39_v34 = vld [vmem:[%s3165_s0 + $0xe0] sm:$0xff]  ;;  %611 = vmatpush1.msra.mxu0 %v43_v30 }
  0x12   :  { %v168_v33 = vld [vmem:[%s3165_s0 + $0x4e8] sm:$0xff]  ;;  %v167_v35 = vld [vmem:[%s3165_s0 + $0x4e0] sm:$0xff]  ;;  %682 = vmatpush1.msra.mxu1 %v171_v31  ;;  %612 = vmatprep.subr.mxu0 %v40_v32 }
  0x13   :  { %v36_v36 = vld [vmem:[%s3165_s0 + $0xc8] sm:$0xff]  ;;  %683 = vmatprep.subr.mxu1 %v168_v33  ;;  %v35_v38 = vld [vmem:[%s3165_s0 + $0xc0] sm:$0xff]  ;;  %613 = vmatpush1.msra.mxu0 %v39_v34 }
  0x14   :  { %v164_v37 = vld [vmem:[%s3165_s0 + $0x4c8] sm:$0xff]  ;;  %v163_v39 = vld [vmem:[%s3165_s0 + $0x4c0] sm:$0xff]  ;;  %684 = vmatpush1.msra.mxu1 %v167_v35  ;;  %614 = vmatprep.subr.mxu0 %v36_v36 }
  0x15   :  { %v32_v40 = vld [vmem:[%s3165_s0 + $0xa8] sm:$0xff]  ;;  %685 = vmatprep.subr.mxu1 %v164_v37  ;;  %v31_v42 = vld [vmem:[%s3165_s0 + $0xa0] sm:$0xff]  ;;  %615 = vmatpush1.msra.mxu0 %v35_v38 }
  0x16   :  { %v160_v41 = vld [vmem:[%s3165_s0 + $0x4a8] sm:$0xff]  ;;  %v159_v43 = vld [vmem:[%s3165_s0 + $0x4a0] sm:$0xff]  ;;  %686 = vmatpush1.msra.mxu1 %v163_v39  ;;  %616 = vmatprep.subr.mxu0 %v32_v40 }
  0x17   :  { %v28_v44 = vld [vmem:[%s3165_s0 + $0x88] sm:$0xff]  ;;  %687 = vmatprep.subr.mxu1 %v160_v41  ;;  %v27_v46 = vld [vmem:[%s3165_s0 + $0x80] sm:$0xff]  ;;  %617 = vmatpush1.msra.mxu0 %v31_v42 }
  0x18   :  { %v156_v45 = vld [vmem:[%s3165_s0 + $0x488] sm:$0xff]  ;;  %v155_v47 = vld [vmem:[%s3165_s0 + $0x480] sm:$0xff]  ;;  %688 = vmatpush1.msra.mxu1 %v159_v43  ;;  %618 = vmatprep.subr.mxu0 %v28_v44 }
  0x19   :  { %v24_v48 = vld [vmem:[%s3165_s0 + $0x68] sm:$0xff]  ;;  %689 = vmatprep.subr.mxu1 %v156_v45  ;;  %v23_v50 = vld [vmem:[%s3165_s0 + $0x60] sm:$0xff]  ;;  %619 = vmatpush1.msra.mxu0 %v27_v46 }
  0x1a   :  { %v152_v49 = vld [vmem:[%s3165_s0 + $0x468] sm:$0xff]  ;;  %v151_v51 = vld [vmem:[%s3165_s0 + $0x460] sm:$0xff]  ;;  %690 = vmatpush1.msra.mxu1 %v155_v47  ;;  %620 = vmatprep.subr.mxu0 %v24_v48 }
  0x1b   :  { %v20_v52 = vld [vmem:[%s3165_s0 + $0x48] sm:$0xff]  ;;  %691 = vmatprep.subr.mxu1 %v152_v49  ;;  %v19_v54 = vld [vmem:[%s3165_s0 + $0x40] sm:$0xff]  ;;  %621 = vmatpush1.msra.mxu0 %v23_v50 }
  0x1c   :  { %v148_v53 = vld [vmem:[%s3165_s0 + $0x448] sm:$0xff]  ;;  %v147_v55 = vld [vmem:[%s3165_s0 + $0x440] sm:$0xff]  ;;  %692 = vmatpush1.msra.mxu1 %v151_v51  ;;  %622 = vmatprep.subr.mxu0 %v20_v52 }
  0x1d   :  { %v16_v56 = vld [vmem:[%s3165_s0 + $0x28] sm:$0xff]  ;;  %693 = vmatprep.subr.mxu1 %v148_v53  ;;  %v15_v58 = vld [vmem:[%s3165_s0 + $0x20] sm:$0xff]  ;;  %623 = vmatpush1.msra.mxu0 %v19_v54 }
  0x1e   :  { %v144_v57 = vld [vmem:[%s3165_s0 + $0x428] sm:$0xff]  ;;  %v143_v59 = vld [vmem:[%s3165_s0 + $0x420] sm:$0xff]  ;;  %694 = vmatpush1.msra.mxu1 %v147_v55  ;;  %624 = vmatprep.subr.mxu0 %v16_v56 }
  0x1f   :  { %v12_v60 = vld [vmem:[%s3165_s0 + $0x8] sm:$0xff]  ;;  %695 = vmatprep.subr.mxu1 %v144_v57  ;;  %v11_v62 = vld [vmem:[%s3165_s0] sm:$0xff]  ;;  %625 = vmatpush1.msra.mxu0 %v15_v58 }
  0x20   :  { %v140_v61 = vld [vmem:[%s3165_s0 + $0x408] sm:$0xff]  ;;  %v139_v63 = vld [vmem:[%s3165_s0 + $0x400] sm:$0xff]  ;;  %696 = vmatpush1.msra.mxu1 %v143_v59  ;;  %626 = vmatprep.subr.mxu0 %v12_v60 }
  0x21   :  { %v136_v0 = vld [vmem:[%s3165_s0 + $0x3e8] sm:$0xff]  ;;  %697 = vmatprep.subr.mxu1 %v140_v61  ;;  %v135_v2 = vld [vmem:[%s3165_s0 + $0x3e0] sm:$0xff]  ;;  %627 = vmatpush1.msra.mxu0 %v11_v62 }
  0x22   :  { %v264_v1 = vld [vmem:[%s3165_s0 + $0x7e8] sm:$0xff]  ;;  %v263_v3 = vld [vmem:[%s3165_s0 + $0x7e0] sm:$0xff]  ;;  %698 = vmatpush1.msra.mxu1 %v139_v63  ;;  %628 = vmatprep.subr.mxu0 %v136_v0 }
  0x23   :  { %v132_v4 = vld [vmem:[%s3165_s0 + $0x3c8] sm:$0xff]  ;;  %699 = vmatprep.subr.mxu1 %v264_v1  ;;  %v131_v6 = vld [vmem:[%s3165_s0 + $0x3c0] sm:$0xff]  ;;  %629 = vmatpush2.msra.mxu0 %v135_v2  ;;  %v590_v1 = vld [vmem:[%s3166_s1 + $0x18] sm:$0xff] }
  0x24   :  { %v260_v5 = vld [vmem:[%s3165_s0 + $0x7c8] sm:$0xff]  ;;  %v259_v7 = vld [vmem:[%s3165_s0 + $0x7c0] sm:$0xff]  ;;  %700 = vmatpush2.msra.mxu1 %v263_v3  ;;  %630 = vmatprep.subr.mxu0 %v132_v4  ;;  %v589_v3 = vld [vmem:[%s3166_s1 + $0x10] sm:$0xff] }
  0x25   :  { %v128_v8 = vld [vmem:[%s3165_s0 + $0x3a8] sm:$0xff]  ;;  %701 = vmatprep.subr.mxu1 %v260_v5  ;;  %v127_v10 = vld [vmem:[%s3165_s0 + $0x3a0] sm:$0xff]  ;;  %631 = vmatpush2.msra.mxu0 %v131_v6 }
  0x26   :  { %v256_v9 = vld [vmem:[%s3165_s0 + $0x7a8] sm:$0xff]  ;;  %v255_v11 = vld [vmem:[%s3165_s0 + $0x7a0] sm:$0xff]  ;;  %702 = vmatpush2.msra.mxu1 %v259_v7  ;;  %632 = vmatprep.subr.mxu0 %v128_v8 }
  0x27   :  { %v124_v12 = vld [vmem:[%s3165_s0 + $0x388] sm:$0xff]  ;;  %703 = vmatprep.subr.mxu1 %v256_v9  ;;  %v123_v14 = vld [vmem:[%s3165_s0 + $0x380] sm:$0xff]  ;;  %633 = vmatpush2.msra.mxu0 %v127_v10 }
  0x28   :  { %v252_v13 = vld [vmem:[%s3165_s0 + $0x788] sm:$0xff]  ;;  %v251_v15 = vld [vmem:[%s3165_s0 + $0x780] sm:$0xff]  ;;  %704 = vmatpush2.msra.mxu1 %v255_v11  ;;  %634 = vmatprep.subr.mxu0 %v124_v12 }
  0x29   :  { %v120_v16 = vld [vmem:[%s3165_s0 + $0x368] sm:$0xff]  ;;  %705 = vmatprep.subr.mxu1 %v252_v13  ;;  %v119_v18 = vld [vmem:[%s3165_s0 + $0x360] sm:$0xff]  ;;  %635 = vmatpush2.msra.mxu0 %v123_v14 }
  0x2a   :  { %v248_v17 = vld [vmem:[%s3165_s0 + $0x768] sm:$0xff]  ;;  %v247_v19 = vld [vmem:[%s3165_s0 + $0x760] sm:$0xff]  ;;  %706 = vmatpush2.msra.mxu1 %v251_v15  ;;  %636 = vmatprep.subr.mxu0 %v120_v16 }
  0x2b   :  { %v116_v20 = vld [vmem:[%s3165_s0 + $0x348] sm:$0xff]  ;;  %707 = vmatprep.subr.mxu1 %v248_v17  ;;  %v115_v22 = vld [vmem:[%s3165_s0 + $0x340] sm:$0xff]  ;;  %637 = vmatpush2.msra.mxu0 %v119_v18 }
  0x2c   :  { %v244_v21 = vld [vmem:[%s3165_s0 + $0x748] sm:$0xff]  ;;  %v243_v23 = vld [vmem:[%s3165_s0 + $0x740] sm:$0xff]  ;;  %708 = vmatpush2.msra.mxu1 %v247_v19  ;;  %638 = vmatprep.subr.mxu0 %v116_v20 }
  0x2d   :  { %v112_v24 = vld [vmem:[%s3165_s0 + $0x328] sm:$0xff]  ;;  %709 = vmatprep.subr.mxu1 %v244_v21  ;;  %v111_v26 = vld [vmem:[%s3165_s0 + $0x320] sm:$0xff]  ;;  %639 = vmatpush2.msra.mxu0 %v115_v22 }
  0x2e   :  { %v240_v25 = vld [vmem:[%s3165_s0 + $0x728] sm:$0xff]  ;;  %v239_v27 = vld [vmem:[%s3165_s0 + $0x720] sm:$0xff]  ;;  %710 = vmatpush2.msra.mxu1 %v243_v23  ;;  %640 = vmatprep.subr.mxu0 %v112_v24 }
  0x2f   :  { %v108_v28 = vld [vmem:[%s3165_s0 + $0x308] sm:$0xff]  ;;  %711 = vmatprep.subr.mxu1 %v240_v25  ;;  %v107_v30 = vld [vmem:[%s3165_s0 + $0x300] sm:$0xff]  ;;  %641 = vmatpush2.msra.mxu0 %v111_v26 }
  0x30   :  { %v236_v29 = vld [vmem:[%s3165_s0 + $0x708] sm:$0xff]  ;;  %v235_v31 = vld [vmem:[%s3165_s0 + $0x700] sm:$0xff]  ;;  %712 = vmatpush2.msra.mxu1 %v239_v27  ;;  %642 = vmatprep.subr.mxu0 %v108_v28 }
  0x31   :  { %v104_v32 = vld [vmem:[%s3165_s0 + $0x2e8] sm:$0xff]  ;;  %713 = vmatprep.subr.mxu1 %v236_v29  ;;  %v103_v34 = vld [vmem:[%s3165_s0 + $0x2e0] sm:$0xff]  ;;  %643 = vmatpush2.msra.mxu0 %v107_v30 }
  0x32   :  { %v232_v33 = vld [vmem:[%s3165_s0 + $0x6e8] sm:$0xff]  ;;  %v231_v35 = vld [vmem:[%s3165_s0 + $0x6e0] sm:$0xff]  ;;  %714 = vmatpush2.msra.mxu1 %v235_v31  ;;  %644 = vmatprep.subr.mxu0 %v104_v32 }
  0x33   :  { %v100_v36 = vld [vmem:[%s3165_s0 + $0x2c8] sm:$0xff]  ;;  %715 = vmatprep.subr.mxu1 %v232_v33  ;;  %v99_v38 = vld [vmem:[%s3165_s0 + $0x2c0] sm:$0xff]  ;;  %645 = vmatpush2.msra.mxu0 %v103_v34 }
  0x34   :  { %v228_v37 = vld [vmem:[%s3165_s0 + $0x6c8] sm:$0xff]  ;;  %v227_v39 = vld [vmem:[%s3165_s0 + $0x6c0] sm:$0xff]  ;;  %716 = vmatpush2.msra.mxu1 %v231_v35  ;;  %646 = vmatprep.subr.mxu0 %v100_v36 }
  0x35   :  { %v96_v40 = vld [vmem:[%s3165_s0 + $0x2a8] sm:$0xff]  ;;  %717 = vmatprep.subr.mxu1 %v228_v37  ;;  %v95_v42 = vld [vmem:[%s3165_s0 + $0x2a0] sm:$0xff]  ;;  %647 = vmatpush2.msra.mxu0 %v99_v38 }
  0x36   :  { %v224_v41 = vld [vmem:[%s3165_s0 + $0x6a8] sm:$0xff]  ;;  %v223_v43 = vld [vmem:[%s3165_s0 + $0x6a0] sm:$0xff]  ;;  %718 = vmatpush2.msra.mxu1 %v227_v39  ;;  %648 = vmatprep.subr.mxu0 %v96_v40 }
  0x37   :  { %v92_v44 = vld [vmem:[%s3165_s0 + $0x288] sm:$0xff]  ;;  %719 = vmatprep.subr.mxu1 %v224_v41  ;;  %v91_v46 = vld [vmem:[%s3165_s0 + $0x280] sm:$0xff]  ;;  %649 = vmatpush2.msra.mxu0 %v95_v42 }
  0x38   :  { %v220_v45 = vld [vmem:[%s3165_s0 + $0x688] sm:$0xff]  ;;  %v219_v47 = vld [vmem:[%s3165_s0 + $0x680] sm:$0xff]  ;;  %720 = vmatpush2.msra.mxu1 %v223_v43  ;;  %650 = vmatprep.subr.mxu0 %v92_v44 }
  0x39   :  { %v88_v48 = vld [vmem:[%s3165_s0 + $0x268] sm:$0xff]  ;;  %721 = vmatprep.subr.mxu1 %v220_v45  ;;  %v87_v50 = vld [vmem:[%s3165_s0 + $0x260] sm:$0xff]  ;;  %651 = vmatpush2.msra.mxu0 %v91_v46 }
  0x3a   :  { %v216_v49 = vld [vmem:[%s3165_s0 + $0x668] sm:$0xff]  ;;  %v215_v51 = vld [vmem:[%s3165_s0 + $0x660] sm:$0xff]  ;;  %722 = vmatpush2.msra.mxu1 %v219_v47  ;;  %652 = vmatprep.subr.mxu0 %v88_v48 }
  0x3b   :  { %v84_v52 = vld [vmem:[%s3165_s0 + $0x248] sm:$0xff]  ;;  %723 = vmatprep.subr.mxu1 %v216_v49  ;;  %v83_v54 = vld [vmem:[%s3165_s0 + $0x240] sm:$0xff]  ;;  %653 = vmatpush2.msra.mxu0 %v87_v50 }
  0x3c   :  { %v212_v53 = vld [vmem:[%s3165_s0 + $0x648] sm:$0xff]  ;;  %v211_v55 = vld [vmem:[%s3165_s0 + $0x640] sm:$0xff]  ;;  %724 = vmatpush2.msra.mxu1 %v215_v51  ;;  %654 = vmatprep.subr.mxu0 %v84_v52 }
  0x3d   :  { %v80_v56 = vld [vmem:[%s3165_s0 + $0x228] sm:$0xff]  ;;  %725 = vmatprep.subr.mxu1 %v212_v53  ;;  %v79_v58 = vld [vmem:[%s3165_s0 + $0x220] sm:$0xff]  ;;  %655 = vmatpush2.msra.mxu0 %v83_v54 }
  0x3e   :  { %v208_v57 = vld [vmem:[%s3165_s0 + $0x628] sm:$0xff]  ;;  %v207_v59 = vld [vmem:[%s3165_s0 + $0x620] sm:$0xff]  ;;  %726 = vmatpush2.msra.mxu1 %v211_v55  ;;  %656 = vmatprep.subr.mxu0 %v80_v56 }
  0x3f   :  { %v76_v60 = vld [vmem:[%s3165_s0 + $0x208] sm:$0xff]  ;;  %727 = vmatprep.subr.mxu1 %v208_v57  ;;  %v75_v62 = vld [vmem:[%s3165_s0 + $0x200] sm:$0xff]  ;;  %657 = vmatpush2.msra.mxu0 %v79_v58 }
  0x40   :  { %v204_v61 = vld [vmem:[%s3165_s0 + $0x608] sm:$0xff]  ;;  %728 = vmatpush2.msra.mxu1 %v207_v59  ;;  %v203_v0 = vld [vmem:[%s3165_s0 + $0x600] sm:$0xff]  ;;  %658 = vmatprep.subr.mxu0 %v76_v60 }
  0x41   :  { %v588_v63 = vld [vmem:[%s3166_s1 + $0x8] sm:$0xff]  ;;  %729 = vmatprep.subr.mxu1 %v204_v61  ;;  %v587_v2 = vld [vmem:[%s3166_s1] sm:$0xff]  ;;  %659 = vmatpush2.msra.mxu0 %v75_v62 }
  0x42   :  { %660 = vmatprep.mubr.f32.mxu0 %v588_v63  ;;  %v328_v4 = vld [vmem:[%s3165_s0 + $0x9e8] sm:$0xff]  ;;  %730 = vmatpush2.msra.mxu1 %v203_v0  ;;  %v327_v6 = vld [vmem:[%s3165_s0 + $0x9e0] sm:$0xff] }
  0x43   :  { %v456_v5 = vld [vmem:[%s3165_s0 + $0xde8] sm:$0xff]  ;;  %731 = vmatprep.mubr.f32.mxu1 %v590_v1  ;;  %v455_v7 = vld [vmem:[%s3165_s0 + $0xde0] sm:$0xff]  ;;  %661 = vmatmul.mubr.f32.vlgmr.msra.gmra.mxu0 %v587_v2 }
  0x44   :  { %732 = vmatmul.mubr.f32.vlgmr.msra.gmra.mxu1 %v589_v3  ;;  %v324_v8 = vld [vmem:[%s3165_s0 + $0x9c8] sm:$0xff]  ;;  %738 = vmatprep.subr.mxu0 %v328_v4  ;;  %v323_v10 = vld [vmem:[%s3165_s0 + $0x9c0] sm:$0xff] }
  0x45   :  { %v452_v9 = vld [vmem:[%s3165_s0 + $0xdc8] sm:$0xff]  ;;  %809 = vmatprep.subr.mxu1 %v456_v5  ;;  %v451_v11 = vld [vmem:[%s3165_s0 + $0xdc0] sm:$0xff]  ;;  %739 = vmatpush1.msra.mxu0 %v327_v6 }
  0x46   :  { %810 = vmatpush1.msra.mxu1 %v455_v7  ;;  %v320_v12 = vld [vmem:[%s3165_s0 + $0x9a8] sm:$0xff]  ;;  %740 = vmatprep.subr.mxu0 %v324_v8  ;;  %v319_v14 = vld [vmem:[%s3165_s0 + $0x9a0] sm:$0xff] }
  0x47   :  { %v448_v13 = vld [vmem:[%s3165_s0 + $0xda8] sm:$0xff]  ;;  %811 = vmatprep.subr.mxu1 %v452_v9  ;;  %v447_v15 = vld [vmem:[%s3165_s0 + $0xda0] sm:$0xff]  ;;  %741 = vmatpush1.msra.mxu0 %v323_v10 }
  0x48   :  { %812 = vmatpush1.msra.mxu1 %v451_v11  ;;  %v316_v16 = vld [vmem:[%s3165_s0 + $0x988] sm:$0xff]  ;;  %742 = vmatprep.subr.mxu0 %v320_v12  ;;  %v315_v18 = vld [vmem:[%s3165_s0 + $0x980] sm:$0xff] }
  0x49   :  { %v444_v17 = vld [vmem:[%s3165_s0 + $0xd88] sm:$0xff]  ;;  %813 = vmatprep.subr.mxu1 %v448_v13  ;;  %v443_v19 = vld [vmem:[%s3165_s0 + $0xd80] sm:$0xff]  ;;  %743 = vmatpush1.msra.mxu0 %v319_v14 }
  0x4a   :  { %814 = vmatpush1.msra.mxu1 %v447_v15  ;;  %v312_v20 = vld [vmem:[%s3165_s0 + $0x968] sm:$0xff]  ;;  %744 = vmatprep.subr.mxu0 %v316_v16  ;;  %v311_v22 = vld [vmem:[%s3165_s0 + $0x960] sm:$0xff] }
  0x4b   :  { %v440_v21 = vld [vmem:[%s3165_s0 + $0xd68] sm:$0xff]  ;;  %815 = vmatprep.subr.mxu1 %v444_v17  ;;  %v439_v23 = vld [vmem:[%s3165_s0 + $0xd60] sm:$0xff]  ;;  %745 = vmatpush1.msra.mxu0 %v315_v18 }
  0x4c   :  { %816 = vmatpush1.msra.mxu1 %v443_v19  ;;  %v308_v24 = vld [vmem:[%s3165_s0 + $0x948] sm:$0xff]  ;;  %746 = vmatprep.subr.mxu0 %v312_v20  ;;  %v307_v26 = vld [vmem:[%s3165_s0 + $0x940] sm:$0xff] }
  0x4d   :  { %v436_v25 = vld [vmem:[%s3165_s0 + $0xd48] sm:$0xff]  ;;  %817 = vmatprep.subr.mxu1 %v440_v21  ;;  %v435_v27 = vld [vmem:[%s3165_s0 + $0xd40] sm:$0xff]  ;;  %747 = vmatpush1.msra.mxu0 %v311_v22 }
  0x4e   :  { %818 = vmatpush1.msra.mxu1 %v439_v23  ;;  %v304_v28 = vld [vmem:[%s3165_s0 + $0x928] sm:$0xff]  ;;  %748 = vmatprep.subr.mxu0 %v308_v24  ;;  %v303_v30 = vld [vmem:[%s3165_s0 + $0x920] sm:$0xff] }
  0x4f   :  { %v432_v29 = vld [vmem:[%s3165_s0 + $0xd28] sm:$0xff]  ;;  %819 = vmatprep.subr.mxu1 %v436_v25  ;;  %v431_v31 = vld [vmem:[%s3165_s0 + $0xd20] sm:$0xff]  ;;  %749 = vmatpush1.msra.mxu0 %v307_v26 }
  0x50   :  { %820 = vmatpush1.msra.mxu1 %v435_v27  ;;  %v300_v32 = vld [vmem:[%s3165_s0 + $0x908] sm:$0xff]  ;;  %750 = vmatprep.subr.mxu0 %v304_v28  ;;  %v299_v34 = vld [vmem:[%s3165_s0 + $0x900] sm:$0xff] }
  0x51   :  { %v428_v33 = vld [vmem:[%s3165_s0 + $0xd08] sm:$0xff]  ;;  %821 = vmatprep.subr.mxu1 %v432_v29  ;;  %v427_v35 = vld [vmem:[%s3165_s0 + $0xd00] sm:$0xff]  ;;  %751 = vmatpush1.msra.mxu0 %v303_v30 }
  0x52   :  { %822 = vmatpush1.msra.mxu1 %v431_v31  ;;  %v296_v36 = vld [vmem:[%s3165_s0 + $0x8e8] sm:$0xff]  ;;  %752 = vmatprep.subr.mxu0 %v300_v32  ;;  %v295_v38 = vld [vmem:[%s3165_s0 + $0x8e0] sm:$0xff] }
  0x53   :  { %v424_v37 = vld [vmem:[%s3165_s0 + $0xce8] sm:$0xff]  ;;  %823 = vmatprep.subr.mxu1 %v428_v33  ;;  %v423_v39 = vld [vmem:[%s3165_s0 + $0xce0] sm:$0xff]  ;;  %753 = vmatpush1.msra.mxu0 %v299_v34 }
  0x54   :  { %824 = vmatpush1.msra.mxu1 %v427_v35  ;;  %v292_v40 = vld [vmem:[%s3165_s0 + $0x8c8] sm:$0xff]  ;;  %754 = vmatprep.subr.mxu0 %v296_v36  ;;  %v291_v42 = vld [vmem:[%s3165_s0 + $0x8c0] sm:$0xff] }
  0x55   :  { %v420_v41 = vld [vmem:[%s3165_s0 + $0xcc8] sm:$0xff]  ;;  %825 = vmatprep.subr.mxu1 %v424_v37  ;;  %v419_v43 = vld [vmem:[%s3165_s0 + $0xcc0] sm:$0xff]  ;;  %755 = vmatpush1.msra.mxu0 %v295_v38 }
  0x56   :  { %826 = vmatpush1.msra.mxu1 %v423_v39  ;;  %v288_v44 = vld [vmem:[%s3165_s0 + $0x8a8] sm:$0xff]  ;;  %756 = vmatprep.subr.mxu0 %v292_v40  ;;  %v287_v46 = vld [vmem:[%s3165_s0 + $0x8a0] sm:$0xff] }
  0x57   :  { %v416_v45 = vld [vmem:[%s3165_s0 + $0xca8] sm:$0xff]  ;;  %827 = vmatprep.subr.mxu1 %v420_v41  ;;  %v415_v47 = vld [vmem:[%s3165_s0 + $0xca0] sm:$0xff]  ;;  %757 = vmatpush1.msra.mxu0 %v291_v42 }
  0x58   :  { %828 = vmatpush1.msra.mxu1 %v419_v43  ;;  %v284_v48 = vld [vmem:[%s3165_s0 + $0x888] sm:$0xff]  ;;  %758 = vmatprep.subr.mxu0 %v288_v44  ;;  %v283_v50 = vld [vmem:[%s3165_s0 + $0x880] sm:$0xff] }
  0x59   :  { %v412_v49 = vld [vmem:[%s3165_s0 + $0xc88] sm:$0xff]  ;;  %829 = vmatprep.subr.mxu1 %v416_v45  ;;  %v411_v51 = vld [vmem:[%s3165_s0 + $0xc80] sm:$0xff]  ;;  %759 = vmatpush1.msra.mxu0 %v287_v46 }
  0x5a   :  { %830 = vmatpush1.msra.mxu1 %v415_v47  ;;  %v280_v52 = vld [vmem:[%s3165_s0 + $0x868] sm:$0xff]  ;;  %760 = vmatprep.subr.mxu0 %v284_v48  ;;  %v279_v54 = vld [vmem:[%s3165_s0 + $0x860] sm:$0xff] }
  0x5b   :  { %v408_v53 = vld [vmem:[%s3165_s0 + $0xc68] sm:$0xff]  ;;  %831 = vmatprep.subr.mxu1 %v412_v49  ;;  %v407_v55 = vld [vmem:[%s3165_s0 + $0xc60] sm:$0xff]  ;;  %761 = vmatpush1.msra.mxu0 %v283_v50 }
  0x5c   :  { %832 = vmatpush1.msra.mxu1 %v411_v51  ;;  %v276_v56 = vld [vmem:[%s3165_s0 + $0x848] sm:$0xff]  ;;  %762 = vmatprep.subr.mxu0 %v280_v52  ;;  %v275_v58 = vld [vmem:[%s3165_s0 + $0x840] sm:$0xff] }
  0x5d   :  { %v404_v57 = vld [vmem:[%s3165_s0 + $0xc48] sm:$0xff]  ;;  %833 = vmatprep.subr.mxu1 %v408_v53  ;;  %v403_v59 = vld [vmem:[%s3165_s0 + $0xc40] sm:$0xff]  ;;  %763 = vmatpush1.msra.mxu0 %v279_v54 }
  0x5e   :  { %834 = vmatpush1.msra.mxu1 %v407_v55  ;;  %v272_v60 = vld [vmem:[%s3165_s0 + $0x828] sm:$0xff]  ;;  %764 = vmatprep.subr.mxu0 %v276_v56  ;;  %v271_v62 = vld [vmem:[%s3165_s0 + $0x820] sm:$0xff] }
  0x5f   :  { %v400_v61 = vld [vmem:[%s3165_s0 + $0xc28] sm:$0xff]  ;;  %835 = vmatprep.subr.mxu1 %v404_v57  ;;  %v399_v63 = vld [vmem:[%s3165_s0 + $0xc20] sm:$0xff]  ;;  %765 = vmatpush1.msra.mxu0 %v275_v58 }
  0x60   :  { %836 = vmatpush1.msra.mxu1 %v403_v59  ;;  %v268_v0 = vld [vmem:[%s3165_s0 + $0x808] sm:$0xff]  ;;  %766 = vmatprep.subr.mxu0 %v272_v60  ;;  %v267_v2 = vld [vmem:[%s3165_s0 + $0x800] sm:$0xff] }
  0x61   :  { %v396_v1 = vld [vmem:[%s3165_s0 + $0xc08] sm:$0xff]  ;;  %837 = vmatprep.subr.mxu1 %v400_v61  ;;  %v395_v3 = vld [vmem:[%s3165_s0 + $0xc00] sm:$0xff]  ;;  %767 = vmatpush1.msra.mxu0 %v271_v62 }
  0x62   :  { %838 = vmatpush1.msra.mxu1 %v399_v63  ;;  %v392_v4 = vld [vmem:[%s3165_s0 + $0xbe8] sm:$0xff]  ;;  %768 = vmatprep.subr.mxu0 %v268_v0  ;;  %v391_v6 = vld [vmem:[%s3165_s0 + $0xbe0] sm:$0xff] }
  0x63   :  { %v520_v5 = vld [vmem:[%s3165_s0 + $0xfe8] sm:$0xff]  ;;  %839 = vmatprep.subr.mxu1 %v396_v1  ;;  %v519_v7 = vld [vmem:[%s3165_s0 + $0xfe0] sm:$0xff]  ;;  %769 = vmatpush1.msra.mxu0 %v267_v2 }
  0x64   :  { %840 = vmatpush1.msra.mxu1 %v395_v3  ;;  %v388_v8 = vld [vmem:[%s3165_s0 + $0xbc8] sm:$0xff]  ;;  %770 = vmatprep.subr.mxu0 %v392_v4  ;;  %v387_v10 = vld [vmem:[%s3165_s0 + $0xbc0] sm:$0xff] }
  0x65   :  { %v516_v9 = vld [vmem:[%s3165_s0 + $0xfc8] sm:$0xff]  ;;  %841 = vmatprep.subr.mxu1 %v520_v5  ;;  %v515_v11 = vld [vmem:[%s3165_s0 + $0xfc0] sm:$0xff]  ;;  %771 = vmatpush2.msra.mxu0 %v391_v6  ;;  %v594_v6 = vld [vmem:[%s3166_s1 + $0x38] sm:$0xff] }
  0x66   :  { %842 = vmatpush2.msra.mxu1 %v519_v7  ;;  %v384_v12 = vld [vmem:[%s3165_s0 + $0xba8] sm:$0xff]  ;;  %772 = vmatprep.subr.mxu0 %v388_v8  ;;  %v383_v14 = vld [vmem:[%s3165_s0 + $0xba0] sm:$0xff]  ;;  %v74_v8 = vld [vmem:[%s3165_s0 + $0x1f8] sm:$0xff] }
  0x67   :  { %v512_v13 = vld [vmem:[%s3165_s0 + $0xfa8] sm:$0xff]  ;;  %843 = vmatprep.subr.mxu1 %v516_v9  ;;  %v511_v15 = vld [vmem:[%s3165_s0 + $0xfa0] sm:$0xff]  ;;  %773 = vmatpush2.msra.mxu0 %v387_v10  ;;  %v593_v9 = vld [vmem:[%s3166_s1 + $0x30] sm:$0xff] }
  0x68   :  { %844 = vmatpush2.msra.mxu1 %v515_v11  ;;  %v380_v16 = vld [vmem:[%s3165_s0 + $0xb88] sm:$0xff]  ;;  %774 = vmatprep.subr.mxu0 %v384_v12  ;;  %v379_v18 = vld [vmem:[%s3165_s0 + $0xb80] sm:$0xff]  ;;  %v73_v11 = vld [vmem:[%s3165_s0 + $0x1f0] sm:$0xff] }
  0x69   :  { %v508_v17 = vld [vmem:[%s3165_s0 + $0xf88] sm:$0xff]  ;;  %845 = vmatprep.subr.mxu1 %v512_v13  ;;  %v507_v19 = vld [vmem:[%s3165_s0 + $0xf80] sm:$0xff]  ;;  %775 = vmatpush2.msra.mxu0 %v383_v14  ;;  %v70_v13 = vld [vmem:[%s3165_s0 + $0x1d8] sm:$0xff] }
  0x6a   :  { %846 = vmatpush2.msra.mxu1 %v511_v15  ;;  %v376_v20 = vld [vmem:[%s3165_s0 + $0xb68] sm:$0xff]  ;;  %776 = vmatprep.subr.mxu0 %v380_v16  ;;  %v375_v22 = vld [vmem:[%s3165_s0 + $0xb60] sm:$0xff]  ;;  %v69_v15 = vld [vmem:[%s3165_s0 + $0x1d0] sm:$0xff] }
  0x6b   :  { %v504_v21 = vld [vmem:[%s3165_s0 + $0xf68] sm:$0xff]  ;;  %847 = vmatprep.subr.mxu1 %v508_v17  ;;  %v503_v23 = vld [vmem:[%s3165_s0 + $0xf60] sm:$0xff]  ;;  %777 = vmatpush2.msra.mxu0 %v379_v18  ;;  %v66_v17 = vld [vmem:[%s3165_s0 + $0x1b8] sm:$0xff] }
  0x6c   :  { %848 = vmatpush2.msra.mxu1 %v507_v19  ;;  %v372_v24 = vld [vmem:[%s3165_s0 + $0xb48] sm:$0xff]  ;;  %778 = vmatprep.subr.mxu0 %v376_v20  ;;  %v371_v26 = vld [vmem:[%s3165_s0 + $0xb40] sm:$0xff]  ;;  %v65_v19 = vld [vmem:[%s3165_s0 + $0x1b0] sm:$0xff] }
  0x6d   :  { %v500_v25 = vld [vmem:[%s3165_s0 + $0xf48] sm:$0xff]  ;;  %849 = vmatprep.subr.mxu1 %v504_v21  ;;  %v499_v27 = vld [vmem:[%s3165_s0 + $0xf40] sm:$0xff]  ;;  %779 = vmatpush2.msra.mxu0 %v375_v22  ;;  %v62_v21 = vld [vmem:[%s3165_s0 + $0x198] sm:$0xff] }
  0x6e   :  { %850 = vmatpush2.msra.mxu1 %v503_v23  ;;  %v368_v28 = vld [vmem:[%s3165_s0 + $0xb28] sm:$0xff]  ;;  %780 = vmatprep.subr.mxu0 %v372_v24  ;;  %v367_v30 = vld [vmem:[%s3165_s0 + $0xb20] sm:$0xff]  ;;  %v61_v23 = vld [vmem:[%s3165_s0 + $0x190] sm:$0xff] }
  0x6f   :  { %v496_v29 = vld [vmem:[%s3165_s0 + $0xf28] sm:$0xff]  ;;  %851 = vmatprep.subr.mxu1 %v500_v25  ;;  %v495_v31 = vld [vmem:[%s3165_s0 + $0xf20] sm:$0xff]  ;;  %781 = vmatpush2.msra.mxu0 %v371_v26  ;;  %v58_v25 = vld [vmem:[%s3165_s0 + $0x178] sm:$0xff] }
  0x70   :  { %852 = vmatpush2.msra.mxu1 %v499_v27  ;;  %v364_v32 = vld [vmem:[%s3165_s0 + $0xb08] sm:$0xff]  ;;  %782 = vmatprep.subr.mxu0 %v368_v28  ;;  %v363_v34 = vld [vmem:[%s3165_s0 + $0xb00] sm:$0xff]  ;;  %v57_v27 = vld [vmem:[%s3165_s0 + $0x170] sm:$0xff] }
  0x71   :  { %v492_v33 = vld [vmem:[%s3165_s0 + $0xf08] sm:$0xff]  ;;  %853 = vmatprep.subr.mxu1 %v496_v29  ;;  %v491_v35 = vld [vmem:[%s3165_s0 + $0xf00] sm:$0xff]  ;;  %783 = vmatpush2.msra.mxu0 %v367_v30  ;;  %v54_v29 = vld [vmem:[%s3165_s0 + $0x158] sm:$0xff] }
  0x72   :  { %854 = vmatpush2.msra.mxu1 %v495_v31  ;;  %v360_v36 = vld [vmem:[%s3165_s0 + $0xae8] sm:$0xff]  ;;  %784 = vmatprep.subr.mxu0 %v364_v32  ;;  %v359_v38 = vld [vmem:[%s3165_s0 + $0xae0] sm:$0xff]  ;;  %v53_v31 = vld [vmem:[%s3165_s0 + $0x150] sm:$0xff] }
  0x73   :  { %v488_v37 = vld [vmem:[%s3165_s0 + $0xee8] sm:$0xff]  ;;  %855 = vmatprep.subr.mxu1 %v492_v33  ;;  %v487_v39 = vld [vmem:[%s3165_s0 + $0xee0] sm:$0xff]  ;;  %785 = vmatpush2.msra.mxu0 %v363_v34  ;;  %v50_v33 = vld [vmem:[%s3165_s0 + $0x138] sm:$0xff] }
  0x74   :  { %856 = vmatpush2.msra.mxu1 %v491_v35  ;;  %v356_v40 = vld [vmem:[%s3165_s0 + $0xac8] sm:$0xff]  ;;  %786 = vmatprep.subr.mxu0 %v360_v36  ;;  %v355_v42 = vld [vmem:[%s3165_s0 + $0xac0] sm:$0xff]  ;;  %v49_v35 = vld [vmem:[%s3165_s0 + $0x130] sm:$0xff] }
  0x75   :  { %v484_v41 = vld [vmem:[%s3165_s0 + $0xec8] sm:$0xff]  ;;  %857 = vmatprep.subr.mxu1 %v488_v37  ;;  %v483_v43 = vld [vmem:[%s3165_s0 + $0xec0] sm:$0xff]  ;;  %787 = vmatpush2.msra.mxu0 %v359_v38  ;;  %v46_v37 = vld [vmem:[%s3165_s0 + $0x118] sm:$0xff] }
  0x76   :  { %858 = vmatpush2.msra.mxu1 %v487_v39  ;;  %v352_v44 = vld [vmem:[%s3165_s0 + $0xaa8] sm:$0xff]  ;;  %788 = vmatprep.subr.mxu0 %v356_v40  ;;  %v351_v46 = vld [vmem:[%s3165_s0 + $0xaa0] sm:$0xff]  ;;  %v45_v39 = vld [vmem:[%s3165_s0 + $0x110] sm:$0xff] }
  0x77   :  { %v480_v45 = vld [vmem:[%s3165_s0 + $0xea8] sm:$0xff]  ;;  %859 = vmatprep.subr.mxu1 %v484_v41  ;;  %v479_v47 = vld [vmem:[%s3165_s0 + $0xea0] sm:$0xff]  ;;  %789 = vmatpush2.msra.mxu0 %v355_v42  ;;  %v42_v41 = vld [vmem:[%s3165_s0 + $0xf8] sm:$0xff] }
  0x78   :  { %860 = vmatpush2.msra.mxu1 %v483_v43  ;;  %v348_v48 = vld [vmem:[%s3165_s0 + $0xa88] sm:$0xff]  ;;  %790 = vmatprep.subr.mxu0 %v352_v44  ;;  %v347_v50 = vld [vmem:[%s3165_s0 + $0xa80] sm:$0xff]  ;;  %v41_v43 = vld [vmem:[%s3165_s0 + $0xf0] sm:$0xff] }
  0x79   :  { %v476_v49 = vld [vmem:[%s3165_s0 + $0xe88] sm:$0xff]  ;;  %861 = vmatprep.subr.mxu1 %v480_v45  ;;  %v475_v51 = vld [vmem:[%s3165_s0 + $0xe80] sm:$0xff]  ;;  %791 = vmatpush2.msra.mxu0 %v351_v46  ;;  %v38_v45 = vld [vmem:[%s3165_s0 + $0xd8] sm:$0xff] }
  0x7a   :  { %862 = vmatpush2.msra.mxu1 %v479_v47  ;;  %v344_v52 = vld [vmem:[%s3165_s0 + $0xa68] sm:$0xff]  ;;  %792 = vmatprep.subr.mxu0 %v348_v48  ;;  %v343_v54 = vld [vmem:[%s3165_s0 + $0xa60] sm:$0xff]  ;;  %v37_v47 = vld [vmem:[%s3165_s0 + $0xd0] sm:$0xff] }
  0x7b   :  { %v472_v53 = vld [vmem:[%s3165_s0 + $0xe68] sm:$0xff]  ;;  %863 = vmatprep.subr.mxu1 %v476_v49  ;;  %v471_v55 = vld [vmem:[%s3165_s0 + $0xe60] sm:$0xff]  ;;  %793 = vmatpush2.msra.mxu0 %v347_v50  ;;  %v34_v49 = vld [vmem:[%s3165_s0 + $0xb8] sm:$0xff] }
  0x7c   :  { %864 = vmatpush2.msra.mxu1 %v475_v51  ;;  %v340_v56 = vld [vmem:[%s3165_s0 + $0xa48] sm:$0xff]  ;;  %794 = vmatprep.subr.mxu0 %v344_v52  ;;  %v339_v58 = vld [vmem:[%s3165_s0 + $0xa40] sm:$0xff]  ;;  %v33_v51 = vld [vmem:[%s3165_s0 + $0xb0] sm:$0xff] }
  0x7d   :  { %v468_v57 = vld [vmem:[%s3165_s0 + $0xe48] sm:$0xff]  ;;  %865 = vmatprep.subr.mxu1 %v472_v53  ;;  %v467_v59 = vld [vmem:[%s3165_s0 + $0xe40] sm:$0xff]  ;;  %795 = vmatpush2.msra.mxu0 %v343_v54  ;;  %v30_v53 = vld [vmem:[%s3165_s0 + $0x98] sm:$0xff] }
  0x7e   :  { %866 = vmatpush2.msra.mxu1 %v471_v55  ;;  %v336_v60 = vld [vmem:[%s3165_s0 + $0xa28] sm:$0xff]  ;;  %796 = vmatprep.subr.mxu0 %v340_v56  ;;  %v335_v62 = vld [vmem:[%s3165_s0 + $0xa20] sm:$0xff]  ;;  %v29_v55 = vld [vmem:[%s3165_s0 + $0x90] sm:$0xff] }
  0x7f   :  { %v464_v61 = vld [vmem:[%s3165_s0 + $0xe28] sm:$0xff]  ;;  %867 = vmatprep.subr.mxu1 %v468_v57  ;;  %v463_v63 = vld [vmem:[%s3165_s0 + $0xe20] sm:$0xff]  ;;  %797 = vmatpush2.msra.mxu0 %v339_v58  ;;  %v26_v57 = vld [vmem:[%s3165_s0 + $0x78] sm:$0xff] }
  0x80   :  { %868 = vmatpush2.msra.mxu1 %v467_v59  ;;  %v332_v0 = vld [vmem:[%s3165_s0 + $0xa08] sm:$0xff]  ;;  %798 = vmatprep.subr.mxu0 %v336_v60  ;;  %v331_v2 = vld [vmem:[%s3165_s0 + $0xa00] sm:$0xff]  ;;  %v25_v59 = vld [vmem:[%s3165_s0 + $0x70] sm:$0xff] }
  0x81   :  { %v460_v1 = vld [vmem:[%s3165_s0 + $0xe08] sm:$0xff]  ;;  %869 = vmatprep.subr.mxu1 %v464_v61  ;;  %799 = vmatpush2.msra.mxu0 %v335_v62  ;;  %v459_v4 = vld [vmem:[%s3165_s0 + $0xe00] sm:$0xff]  ;;  %v22_v61 = vld [vmem:[%s3165_s0 + $0x58] sm:$0xff] }
  0x82   :  { %v592_v3 = vld [vmem:[%s3166_s1 + $0x28] sm:$0xff]  ;;  %870 = vmatpush2.msra.mxu1 %v463_v63  ;;  %v591_v5 = vld [vmem:[%s3166_s1 + $0x20] sm:$0xff]  ;;  %800 = vmatprep.subr.mxu0 %v332_v0  ;;  %v21_v63 = vld [vmem:[%s3165_s0 + $0x50] sm:$0xff] }
  0x83   :  { %871 = vmatprep.subr.mxu1 %v460_v1  ;;  %v584_v7 = vld [vmem:[%s3165_s0 + $0x11e8] sm:$0xff]  ;;  %801 = vmatpush2.msra.mxu0 %v331_v2  ;;  %v583_v10 = vld [vmem:[%s3165_s0 + $0x11e0] sm:$0xff]  ;;  %v18_v1 = vld [vmem:[%s3165_s0 + $0x38] sm:$0xff] }
  0x84   :  { %802 = vmatprep.mubr.f32.mxu0 %v592_v3  ;;  %872 = vmatpush2.msra.mxu1 %v459_v4  ;;  %v580_v12 = vld [vmem:[%s3165_s0 + $0x11c8] sm:$0xff]  ;;  %v579_v14 = vld [vmem:[%s3165_s0 + $0x11c0] sm:$0xff]  ;;  %v17_v3 = vld [vmem:[%s3165_s0 + $0x30] sm:$0xff] }
  0x85   :  { %803 = vmatmul.mubr.f32.vlgmr.msra.gmra.mxu0 %v591_v5  ;;  %873 = vmatprep.mubr.f32.mxu1 %v594_v6  ;;  %v576_v16 = vld [vmem:[%s3165_s0 + $0x11a8] sm:$0xff]  ;;  %v575_v18 = vld [vmem:[%s3165_s0 + $0x11a0] sm:$0xff]  ;;  %v14_v5 = vld [vmem:[%s3165_s0 + $0x18] sm:$0xff] }
  0x86   :  { %880 = vmatprep.subr.mxu0 %v584_v7  ;;  %951 = vmatprep.subr.mxu1 %v74_v8  ;;  %v572_v20 = vld [vmem:[%s3165_s0 + $0x1188] sm:$0xff]  ;;  %v571_v22 = vld [vmem:[%s3165_s0 + $0x1180] sm:$0xff]  ;;  %v13_v7 = vld [vmem:[%s3165_s0 + $0x10] sm:$0xff] }
  0x87   :  { %874 = vmatmul.mubr.f32.vlgmr.msra.gmra.mxu1 %v593_v9  ;;  %881 = vmatpush1.msra.mxu0 %v583_v10  ;;  %v568_v24 = vld [vmem:[%s3165_s0 + $0x1168] sm:$0xff]  ;;  %v567_v26 = vld [vmem:[%s3165_s0 + $0x1160] sm:$0xff]  ;;  %v138_v9 = vld [vmem:[%s3165_s0 + $0x3f8] sm:$0xff] }
  0x88   :  { %952 = vmatpush1.msra.mxu1 %v73_v11  ;;  %882 = vmatprep.subr.mxu0 %v580_v12  ;;  %v564_v28 = vld [vmem:[%s3165_s0 + $0x1148] sm:$0xff]  ;;  %v563_v30 = vld [vmem:[%s3165_s0 + $0x1140] sm:$0xff]  ;;  %v202_v10 = vld [vmem:[%s3165_s0 + $0x5f8] sm:$0xff]  ;;  %v1353_v11 = vmov 0.0  }
  0x89   :  { %953 = vmatprep.subr.mxu1 %v70_v13  ;;  %883 = vmatpush1.msra.mxu0 %v579_v14  ;;  %v560_v32 = vld [vmem:[%s3165_s0 + $0x1128] sm:$0xff]  ;;  %v559_v34 = vld [vmem:[%s3165_s0 + $0x1120] sm:$0xff]  ;;  %v137_v12 = vld [vmem:[%s3165_s0 + $0x3f0] sm:$0xff] }
  0x8a   :  { %954 = vmatpush1.msra.mxu1 %v69_v15  ;;  %884 = vmatprep.subr.mxu0 %v576_v16  ;;  %v556_v36 = vld [vmem:[%s3165_s0 + $0x1108] sm:$0xff]  ;;  %v555_v38 = vld [vmem:[%s3165_s0 + $0x1100] sm:$0xff]  ;;  %v201_v13 = vld [vmem:[%s3165_s0 + $0x5f0] sm:$0xff] }
  0x8b   :  { %955 = vmatprep.subr.mxu1 %v66_v17  ;;  %885 = vmatpush1.msra.mxu0 %v575_v18  ;;  %v552_v40 = vld [vmem:[%s3165_s0 + $0x10e8] sm:$0xff]  ;;  %v551_v42 = vld [vmem:[%s3165_s0 + $0x10e0] sm:$0xff]  ;;  %v134_v14 = vld [vmem:[%s3165_s0 + $0x3d8] sm:$0xff] }
  0x8c   :  { %956 = vmatpush1.msra.mxu1 %v65_v19  ;;  %886 = vmatprep.subr.mxu0 %v572_v20  ;;  %v548_v44 = vld [vmem:[%s3165_s0 + $0x10c8] sm:$0xff]  ;;  %v547_v46 = vld [vmem:[%s3165_s0 + $0x10c0] sm:$0xff]  ;;  %v198_v15 = vld [vmem:[%s3165_s0 + $0x5d8] sm:$0xff] }
  0x8d   :  { %957 = vmatprep.subr.mxu1 %v62_v21  ;;  %887 = vmatpush1.msra.mxu0 %v571_v22  ;;  %v544_v48 = vld [vmem:[%s3165_s0 + $0x10a8] sm:$0xff]  ;;  %v543_v50 = vld [vmem:[%s3165_s0 + $0x10a0] sm:$0xff]  ;;  %v133_v16 = vld [vmem:[%s3165_s0 + $0x3d0] sm:$0xff] }
  0x8e   :  { %958 = vmatpush1.msra.mxu1 %v61_v23  ;;  %888 = vmatprep.subr.mxu0 %v568_v24  ;;  %v540_v52 = vld [vmem:[%s3165_s0 + $0x1088] sm:$0xff]  ;;  %v539_v54 = vld [vmem:[%s3165_s0 + $0x1080] sm:$0xff]  ;;  %v197_v17 = vld [vmem:[%s3165_s0 + $0x5d0] sm:$0xff] }
  0x8f   :  { %959 = vmatprep.subr.mxu1 %v58_v25  ;;  %889 = vmatpush1.msra.mxu0 %v567_v26  ;;  %v536_v56 = vld [vmem:[%s3165_s0 + $0x1068] sm:$0xff]  ;;  %v535_v58 = vld [vmem:[%s3165_s0 + $0x1060] sm:$0xff]  ;;  %v130_v18 = vld [vmem:[%s3165_s0 + $0x3b8] sm:$0xff] }
  0x90   :  { %960 = vmatpush1.msra.mxu1 %v57_v27  ;;  %890 = vmatprep.subr.mxu0 %v564_v28  ;;  %v532_v60 = vld [vmem:[%s3165_s0 + $0x1048] sm:$0xff]  ;;  %v531_v62 = vld [vmem:[%s3165_s0 + $0x1040] sm:$0xff]  ;;  %v194_v19 = vld [vmem:[%s3165_s0 + $0x5b8] sm:$0xff] }
  0x91   :  { %961 = vmatprep.subr.mxu1 %v54_v29  ;;  %891 = vmatpush1.msra.mxu0 %v563_v30  ;;  %v528_v0 = vld [vmem:[%s3165_s0 + $0x1028] sm:$0xff]  ;;  %v527_v2 = vld [vmem:[%s3165_s0 + $0x1020] sm:$0xff]  ;;  %v129_v20 = vld [vmem:[%s3165_s0 + $0x3b0] sm:$0xff] }
  0x92   :  { %962 = vmatpush1.msra.mxu1 %v53_v31  ;;  %892 = vmatprep.subr.mxu0 %v560_v32  ;;  %v524_v4 = vld [vmem:[%s3165_s0 + $0x1008] sm:$0xff]  ;;  %v523_v6 = vld [vmem:[%s3165_s0 + $0x1000] sm:$0xff]  ;;  %v193_v21 = vld [vmem:[%s3165_s0 + $0x5b0] sm:$0xff] }
  0x93   :  { %963 = vmatprep.subr.mxu1 %v50_v33  ;;  %893 = vmatpush1.msra.mxu0 %v559_v34  ;;  %v595_v8 = vld [vmem:[%s3166_s1 + $0x40] sm:$0xff]  ;;  %v126_v22 = vld [vmem:[%s3165_s0 + $0x398] sm:$0xff]  ;;  %v125_v24 = vld [vmem:[%s3165_s0 + $0x390] sm:$0xff] }
  0x94   :  { %964 = vmatpush1.msra.mxu1 %v49_v35  ;;  %894 = vmatprep.subr.mxu0 %v556_v36  ;;  %v190_v23 = vld [vmem:[%s3165_s0 + $0x598] sm:$0xff]  ;;  %v189_v25 = vld [vmem:[%s3165_s0 + $0x590] sm:$0xff] }
  0x95   :  { %965 = vmatprep.subr.mxu1 %v46_v37  ;;  %895 = vmatpush1.msra.mxu0 %v555_v38  ;;  %v122_v26 = vld [vmem:[%s3165_s0 + $0x378] sm:$0xff]  ;;  %v121_v28 = vld [vmem:[%s3165_s0 + $0x370] sm:$0xff] }
  0x96   :  { %966 = vmatpush1.msra.mxu1 %v45_v39  ;;  %896 = vmatprep.subr.mxu0 %v552_v40  ;;  %v186_v27 = vld [vmem:[%s3165_s0 + $0x578] sm:$0xff]  ;;  %v185_v29 = vld [vmem:[%s3165_s0 + $0x570] sm:$0xff] }
  0x97   :  { %967 = vmatprep.subr.mxu1 %v42_v41  ;;  %897 = vmatpush1.msra.mxu0 %v551_v42  ;;  %v118_v30 = vld [vmem:[%s3165_s0 + $0x358] sm:$0xff]  ;;  %v117_v32 = vld [vmem:[%s3165_s0 + $0x350] sm:$0xff] }
  0x98   :  { %968 = vmatpush1.msra.mxu1 %v41_v43  ;;  %898 = vmatprep.subr.mxu0 %v548_v44  ;;  %v182_v31 = vld [vmem:[%s3165_s0 + $0x558] sm:$0xff]  ;;  %v181_v33 = vld [vmem:[%s3165_s0 + $0x550] sm:$0xff] }
  0x99   :  { %969 = vmatprep.subr.mxu1 %v38_v45  ;;  %899 = vmatpush1.msra.mxu0 %v547_v46  ;;  %v114_v34 = vld [vmem:[%s3165_s0 + $0x338] sm:$0xff]  ;;  %v113_v36 = vld [vmem:[%s3165_s0 + $0x330] sm:$0xff] }
  0x9a   :  { %970 = vmatpush1.msra.mxu1 %v37_v47  ;;  %900 = vmatprep.subr.mxu0 %v544_v48  ;;  %v178_v35 = vld [vmem:[%s3165_s0 + $0x538] sm:$0xff]  ;;  %v177_v37 = vld [vmem:[%s3165_s0 + $0x530] sm:$0xff] }
  0x9b   :  { %971 = vmatprep.subr.mxu1 %v34_v49  ;;  %901 = vmatpush1.msra.mxu0 %v543_v50  ;;  %v110_v38 = vld [vmem:[%s3165_s0 + $0x318] sm:$0xff]  ;;  %v109_v40 = vld [vmem:[%s3165_s0 + $0x310] sm:$0xff] }
  0x9c   :  { %972 = vmatpush1.msra.mxu1 %v33_v51  ;;  %902 = vmatprep.subr.mxu0 %v540_v52  ;;  %v174_v39 = vld [vmem:[%s3165_s0 + $0x518] sm:$0xff]  ;;  %v173_v41 = vld [vmem:[%s3165_s0 + $0x510] sm:$0xff] }
  0x9d   :  { %973 = vmatprep.subr.mxu1 %v30_v53  ;;  %903 = vmatpush1.msra.mxu0 %v539_v54  ;;  %v106_v42 = vld [vmem:[%s3165_s0 + $0x2f8] sm:$0xff]  ;;  %v105_v44 = vld [vmem:[%s3165_s0 + $0x2f0] sm:$0xff] }
  0x9e   :  { %974 = vmatpush1.msra.mxu1 %v29_v55  ;;  %904 = vmatprep.subr.mxu0 %v536_v56  ;;  %v170_v43 = vld [vmem:[%s3165_s0 + $0x4f8] sm:$0xff]  ;;  %v169_v45 = vld [vmem:[%s3165_s0 + $0x4f0] sm:$0xff] }
  0x9f   :  { %975 = vmatprep.subr.mxu1 %v26_v57  ;;  %905 = vmatpush1.msra.mxu0 %v535_v58  ;;  %v102_v46 = vld [vmem:[%s3165_s0 + $0x2d8] sm:$0xff]  ;;  %v101_v48 = vld [vmem:[%s3165_s0 + $0x2d0] sm:$0xff] }
  0xa0   :  { %976 = vmatpush1.msra.mxu1 %v25_v59  ;;  %906 = vmatprep.subr.mxu0 %v532_v60  ;;  %v166_v47 = vld [vmem:[%s3165_s0 + $0x4d8] sm:$0xff]  ;;  %v165_v49 = vld [vmem:[%s3165_s0 + $0x4d0] sm:$0xff] }
  0xa1   :  { %977 = vmatprep.subr.mxu1 %v22_v61  ;;  %907 = vmatpush1.msra.mxu0 %v531_v62  ;;  %v98_v50 = vld [vmem:[%s3165_s0 + $0x2b8] sm:$0xff]  ;;  %v97_v52 = vld [vmem:[%s3165_s0 + $0x2b0] sm:$0xff] }
  0xa2   :  { %978 = vmatpush1.msra.mxu1 %v21_v63  ;;  %908 = vmatprep.subr.mxu0 %v528_v0  ;;  %v162_v51 = vld [vmem:[%s3165_s0 + $0x4b8] sm:$0xff]  ;;  %v161_v53 = vld [vmem:[%s3165_s0 + $0x4b0] sm:$0xff] }
  0xa3   :  { %979 = vmatprep.subr.mxu1 %v18_v1  ;;  %909 = vmatpush1.msra.mxu0 %v527_v2  ;;  %v94_v54 = vld [vmem:[%s3165_s0 + $0x298] sm:$0xff]  ;;  %v93_v56 = vld [vmem:[%s3165_s0 + $0x290] sm:$0xff] }
  0xa4   :  { %980 = vmatpush1.msra.mxu1 %v17_v3  ;;  %910 = vmatprep.subr.mxu0 %v524_v4  ;;  %v158_v55 = vld [vmem:[%s3165_s0 + $0x498] sm:$0xff]  ;;  %v157_v57 = vld [vmem:[%s3165_s0 + $0x490] sm:$0xff] }
  0xa5   :  { %981 = vmatprep.subr.mxu1 %v14_v5  ;;  %911 = vmatpush1.msra.mxu0 %v523_v6  ;;  %v90_v58 = vld [vmem:[%s3165_s0 + $0x278] sm:$0xff]  ;;  %v89_v60 = vld [vmem:[%s3165_s0 + $0x270] sm:$0xff] }
  0xa6   :  { %944 = vmatprep.mubr.f32.mxu0 %v1353_v11  ;;  %982 = vmatpush1.msra.mxu1 %v13_v7  ;;  %v154_v59 = vld [vmem:[%s3165_s0 + $0x478] sm:$0xff]  ;;  %v153_v61 = vld [vmem:[%s3165_s0 + $0x470] sm:$0xff] }
  0xa7   :  { %945 = vmatmul.mubr.f32.vlgmr.msra.gmra.mxu0 %v595_v8  ;;  %983 = vmatprep.subr.mxu1 %v138_v9  ;;  %v86_v62 = vld [vmem:[%s3165_s0 + $0x258] sm:$0xff]  ;;  %v85_v0 = vld [vmem:[%s3165_s0 + $0x250] sm:$0xff] }
  0xa8   :  { %1022 = vmatprep.subr.mxu0 %v202_v10  ;;  %984 = vmatpush2.msra.mxu1 %v137_v12  ;;  %v150_v63 = vld [vmem:[%s3165_s0 + $0x458] sm:$0xff]  ;;  %v149_v1 = vld [vmem:[%s3165_s0 + $0x450] sm:$0xff] }
  0xa9   :  { %1023 = vmatpush1.msra.mxu0 %v201_v13  ;;  %985 = vmatprep.subr.mxu1 %v134_v14  ;;  %v82_v2 = vld [vmem:[%s3165_s0 + $0x238] sm:$0xff]  ;;  %v81_v4 = vld [vmem:[%s3165_s0 + $0x230] sm:$0xff] }
  0xaa   :  { %1024 = vmatprep.subr.mxu0 %v198_v15  ;;  %986 = vmatpush2.msra.mxu1 %v133_v16  ;;  %v146_v3 = vld [vmem:[%s3165_s0 + $0x438] sm:$0xff]  ;;  %v145_v5 = vld [vmem:[%s3165_s0 + $0x430] sm:$0xff]  ;;  %v1344_v15 = vld [vmem:[%s3166_s1 + $0x8] sm:$0xff] }
  0xab   :  { %1025 = vmatpush1.msra.mxu0 %v197_v17  ;;  %987 = vmatprep.subr.mxu1 %v130_v18  ;;  %v78_v6 = vld [vmem:[%s3165_s0 + $0x218] sm:$0xff]  ;;  %v77_v8 = vld [vmem:[%s3165_s0 + $0x210] sm:$0xff]  ;;  %v1345_v18 = vld [vmem:[%s3166_s1] sm:$0xff] }
  0xac   :  { %1026 = vmatprep.subr.mxu0 %v194_v19  ;;  %988 = vmatpush2.msra.mxu1 %v129_v20  ;;  %v142_v7 = vld [vmem:[%s3165_s0 + $0x418] sm:$0xff]  ;;  %v141_v9 = vld [vmem:[%s3165_s0 + $0x410] sm:$0xff] }
  0xad   :  { %1027 = vmatpush1.msra.mxu0 %v193_v21  ;;  %989 = vmatprep.subr.mxu1 %v126_v22  ;;  %v266_v10 = vld [vmem:[%s3165_s0 + $0x7f8] sm:$0xff]  ;;  %v265_v13 = vld [vmem:[%s3165_s0 + $0x7f0] sm:$0xff] }
  0xae   :  { %1028 = vmatprep.subr.mxu0 %v190_v23  ;;  %990 = vmatpush2.msra.mxu1 %v125_v24  ;;  %v330_v12 = vld [vmem:[%s3165_s0 + $0x9f8] sm:$0xff]  ;;  %v329_v14 = vld [vmem:[%s3165_s0 + $0x9f0] sm:$0xff] }
  0xaf   :  { %1029 = vmatpush1.msra.mxu0 %v189_v25  ;;  %991 = vmatprep.subr.mxu1 %v122_v26  ;;  %v262_v16 = vld [vmem:[%s3165_s0 + $0x7d8] sm:$0xff]  ;;  %v261_v19 = vld [vmem:[%s3165_s0 + $0x7d0] sm:$0xff] }
  0xb0   :  { %1030 = vmatprep.subr.mxu0 %v186_v27  ;;  %992 = vmatpush2.msra.mxu1 %v121_v28  ;;  %v326_v17 = vld [vmem:[%s3165_s0 + $0x9d8] sm:$0xff]  ;;  %v325_v20 = vld [vmem:[%s3165_s0 + $0x9d0] sm:$0xff] }
  0xb1   :  { %1031 = vmatpush1.msra.mxu0 %v185_v29  ;;  %993 = vmatprep.subr.mxu1 %v118_v30  ;;  %v258_v21 = vld [vmem:[%s3165_s0 + $0x7b8] sm:$0xff]  ;;  %v257_v23 = vld [vmem:[%s3165_s0 + $0x7b0] sm:$0xff] }
  0xb2   :  { %1032 = vmatprep.subr.mxu0 %v182_v31  ;;  %994 = vmatpush2.msra.mxu1 %v117_v32  ;;  %v322_v22 = vld [vmem:[%s3165_s0 + $0x9b8] sm:$0xff]  ;;  %v321_v24 = vld [vmem:[%s3165_s0 + $0x9b0] sm:$0xff] }
  0xb3   :  { %1033 = vmatpush1.msra.mxu0 %v181_v33  ;;  %995 = vmatprep.subr.mxu1 %v114_v34  ;;  %v254_v25 = vld [vmem:[%s3165_s0 + $0x798] sm:$0xff]  ;;  %v253_v27 = vld [vmem:[%s3165_s0 + $0x790] sm:$0xff] }
  0xb4   :  { %1034 = vmatprep.subr.mxu0 %v178_v35  ;;  %996 = vmatpush2.msra.mxu1 %v113_v36  ;;  %v318_v26 = vld [vmem:[%s3165_s0 + $0x998] sm:$0xff]  ;;  %v317_v28 = vld [vmem:[%s3165_s0 + $0x990] sm:$0xff] }
  0xb5   :  { %1035 = vmatpush1.msra.mxu0 %v177_v37  ;;  %997 = vmatprep.subr.mxu1 %v110_v38  ;;  %v250_v29 = vld [vmem:[%s3165_s0 + $0x778] sm:$0xff]  ;;  %v249_v31 = vld [vmem:[%s3165_s0 + $0x770] sm:$0xff] }
  0xb6   :  { %1036 = vmatprep.subr.mxu0 %v174_v39  ;;  %998 = vmatpush2.msra.mxu1 %v109_v40  ;;  %v314_v30 = vld [vmem:[%s3165_s0 + $0x978] sm:$0xff]  ;;  %v313_v32 = vld [vmem:[%s3165_s0 + $0x970] sm:$0xff] }
  0xb7   :  { %1037 = vmatpush1.msra.mxu0 %v173_v41  ;;  %999 = vmatprep.subr.mxu1 %v106_v42  ;;  %v246_v33 = vld [vmem:[%s3165_s0 + $0x758] sm:$0xff]  ;;  %v245_v35 = vld [vmem:[%s3165_s0 + $0x750] sm:$0xff] }
  0xb8   :  { %1038 = vmatprep.subr.mxu0 %v170_v43  ;;  %1000 = vmatpush2.msra.mxu1 %v105_v44  ;;  %v310_v34 = vld [vmem:[%s3165_s0 + $0x958] sm:$0xff]  ;;  %v309_v36 = vld [vmem:[%s3165_s0 + $0x950] sm:$0xff] }
  0xb9   :  { %1039 = vmatpush1.msra.mxu0 %v169_v45  ;;  %1001 = vmatprep.subr.mxu1 %v102_v46  ;;  %v242_v37 = vld [vmem:[%s3165_s0 + $0x738] sm:$0xff]  ;;  %v241_v39 = vld [vmem:[%s3165_s0 + $0x730] sm:$0xff] }
  0xba   :  { %1040 = vmatprep.subr.mxu0 %v166_v47  ;;  %1002 = vmatpush2.msra.mxu1 %v101_v48  ;;  %v306_v38 = vld [vmem:[%s3165_s0 + $0x938] sm:$0xff]  ;;  %v305_v40 = vld [vmem:[%s3165_s0 + $0x930] sm:$0xff] }
  0xbb   :  { %1041 = vmatpush1.msra.mxu0 %v165_v49  ;;  %1003 = vmatprep.subr.mxu1 %v98_v50  ;;  %v238_v41 = vld [vmem:[%s3165_s0 + $0x718] sm:$0xff]  ;;  %v237_v43 = vld [vmem:[%s3165_s0 + $0x710] sm:$0xff] }
  0xbc   :  { %1042 = vmatprep.subr.mxu0 %v162_v51  ;;  %1004 = vmatpush2.msra.mxu1 %v97_v52  ;;  %v302_v42 = vld [vmem:[%s3165_s0 + $0x918] sm:$0xff]  ;;  %v301_v44 = vld [vmem:[%s3165_s0 + $0x910] sm:$0xff] }
  0xbd   :  { %1043 = vmatpush1.msra.mxu0 %v161_v53  ;;  %1005 = vmatprep.subr.mxu1 %v94_v54  ;;  %v234_v45 = vld [vmem:[%s3165_s0 + $0x6f8] sm:$0xff]  ;;  %v233_v47 = vld [vmem:[%s3165_s0 + $0x6f0] sm:$0xff] }
  0xbe   :  { %1044 = vmatprep.subr.mxu0 %v158_v55  ;;  %1006 = vmatpush2.msra.mxu1 %v93_v56  ;;  %v298_v46 = vld [vmem:[%s3165_s0 + $0x8f8] sm:$0xff]  ;;  %v297_v48 = vld [vmem:[%s3165_s0 + $0x8f0] sm:$0xff] }
  0xbf   :  { %1045 = vmatpush1.msra.mxu0 %v157_v57  ;;  %1007 = vmatprep.subr.mxu1 %v90_v58  ;;  %v230_v49 = vld [vmem:[%s3165_s0 + $0x6d8] sm:$0xff]  ;;  %v229_v51 = vld [vmem:[%s3165_s0 + $0x6d0] sm:$0xff] }
  0xc0   :  { %1046 = vmatprep.subr.mxu0 %v154_v59  ;;  %1008 = vmatpush2.msra.mxu1 %v89_v60  ;;  %v294_v50 = vld [vmem:[%s3165_s0 + $0x8d8] sm:$0xff]  ;;  %v293_v52 = vld [vmem:[%s3165_s0 + $0x8d0] sm:$0xff] }
  0xc1   :  { %1047 = vmatpush1.msra.mxu0 %v153_v61  ;;  %1009 = vmatprep.subr.mxu1 %v86_v62  ;;  %v226_v53 = vld [vmem:[%s3165_s0 + $0x6b8] sm:$0xff]  ;;  %v225_v55 = vld [vmem:[%s3165_s0 + $0x6b0] sm:$0xff] }
  0xc2   :  { %1048 = vmatprep.subr.mxu0 %v150_v63  ;;  %1010 = vmatpush2.msra.mxu1 %v85_v0  ;;  %v290_v54 = vld [vmem:[%s3165_s0 + $0x8b8] sm:$0xff]  ;;  %v289_v56 = vld [vmem:[%s3165_s0 + $0x8b0] sm:$0xff] }
  0xc3   :  { %1049 = vmatpush1.msra.mxu0 %v149_v1  ;;  %1011 = vmatprep.subr.mxu1 %v82_v2  ;;  %v222_v57 = vld [vmem:[%s3165_s0 + $0x698] sm:$0xff]  ;;  %v221_v59 = vld [vmem:[%s3165_s0 + $0x690] sm:$0xff] }
  0xc4   :  { %1050 = vmatprep.subr.mxu0 %v146_v3  ;;  %1012 = vmatpush2.msra.mxu1 %v81_v4  ;;  %v286_v58 = vld [vmem:[%s3165_s0 + $0x898] sm:$0xff]  ;;  %v285_v60 = vld [vmem:[%s3165_s0 + $0x890] sm:$0xff] }
  0xc5   :  { %1051 = vmatpush1.msra.mxu0 %v145_v5  ;;  %1013 = vmatprep.subr.mxu1 %v78_v6  ;;  %v218_v61 = vld [vmem:[%s3165_s0 + $0x678] sm:$0xff]  ;;  %v217_v63 = vld [vmem:[%s3165_s0 + $0x670] sm:$0xff] }
  0xc6   :  { %1052 = vmatprep.subr.mxu0 %v142_v7  ;;  %1014 = vmatpush2.msra.mxu1 %v77_v8  ;;  %v282_v62 = vld [vmem:[%s3165_s0 + $0x878] sm:$0xff]  ;;  %v281_v0 = vld [vmem:[%s3165_s0 + $0x870] sm:$0xff] }
  0xc7   :  { %1053 = vmatpush1.msra.mxu0 %v141_v9  ;;  %1015 = vmatprep.mubr.f32.mxu1 %v1344_v15  ;;  %v214_v1 = vld [vmem:[%s3165_s0 + $0x658] sm:$0xff]  ;;  %v213_v3 = vld [vmem:[%s3165_s0 + $0x650] sm:$0xff] }
  0xc8   :  { %1054 = vmatprep.subr.mxu0 %v266_v10  ;;  %1093 = vmatprep.subr.mxu1 %v330_v12  ;;  %v278_v2 = vld [vmem:[%s3165_s0 + $0x858] sm:$0xff]  ;;  %v277_v4 = vld [vmem:[%s3165_s0 + $0x850] sm:$0xff] }
  0xc9   :  { %1016 = vmatmul.mubr.f32.vlgmr.msra.gmra.mxu1 %v1345_v18  ;;  %1055 = vmatpush2.msra.mxu0 %v265_v13  ;;  %v210_v5 = vld [vmem:[%s3165_s0 + $0x638] sm:$0xff]  ;;  %v209_v7 = vld [vmem:[%s3165_s0 + $0x630] sm:$0xff] }
  0xca   :  { %1094 = vmatpush1.msra.mxu1 %v329_v14  ;;  %1056 = vmatprep.subr.mxu0 %v262_v16  ;;  %v274_v6 = vld [vmem:[%s3165_s0 + $0x838] sm:$0xff]  ;;  %v273_v8 = vld [vmem:[%s3165_s0 + $0x830] sm:$0xff] }
  0xcb   :  { %1095 = vmatprep.subr.mxu1 %v326_v17  ;;  %1057 = vmatpush2.msra.mxu0 %v261_v19  ;;  %v206_v9 = vld [vmem:[%s3165_s0 + $0x618] sm:$0xff]  ;;  %v205_v12 = vld [vmem:[%s3165_s0 + $0x610] sm:$0xff] }
  0xcc   :  { %1096 = vmatpush1.msra.mxu1 %v325_v20  ;;  %1058 = vmatprep.subr.mxu0 %v258_v21  ;;  %v270_v10 = vld [vmem:[%s3165_s0 + $0x818] sm:$0xff]  ;;  %v269_v13 = vld [vmem:[%s3165_s0 + $0x810] sm:$0xff] }
  0xcd   :  { %1097 = vmatprep.subr.mxu1 %v322_v22  ;;  %1059 = vmatpush2.msra.mxu0 %v257_v23  ;;  %v394_v14 = vld [vmem:[%s3165_s0 + $0xbf8] sm:$0xff]  ;;  %v393_v17 = vld [vmem:[%s3165_s0 + $0xbf0] sm:$0xff] }
  0xce   :  { %1098 = vmatpush1.msra.mxu1 %v321_v24  ;;  %1060 = vmatprep.subr.mxu0 %v254_v25  ;;  %v458_v15 = vld [vmem:[%s3165_s0 + $0xdf8] sm:$0xff]  ;;  %v457_v18 = vld [vmem:[%s3165_s0 + $0xdf0] sm:$0xff] }
  0xcf   :  { %1099 = vmatprep.subr.mxu1 %v318_v26  ;;  %1061 = vmatpush2.msra.mxu0 %v253_v27  ;;  %v1346_v16 = vld [vmem:[%s3166_s1 + $0x18] sm:$0xff]  ;;  %v1347_v19 = vld [vmem:[%s3166_s1 + $0x10] sm:$0xff] }
  0xd0   :  { %1100 = vmatpush1.msra.mxu1 %v317_v28  ;;  %1062 = vmatprep.subr.mxu0 %v250_v29  ;;  %v390_v20 = vld [vmem:[%s3165_s0 + $0xbd8] sm:$0xff]  ;;  %v389_v22 = vld [vmem:[%s3165_s0 + $0xbd0] sm:$0xff] }
  0xd1   :  { %1101 = vmatprep.subr.mxu1 %v314_v30  ;;  %1063 = vmatpush2.msra.mxu0 %v249_v31  ;;  %v454_v21 = vld [vmem:[%s3165_s0 + $0xdd8] sm:$0xff]  ;;  %v453_v23 = vld [vmem:[%s3165_s0 + $0xdd0] sm:$0xff] }
  0xd2   :  { %1102 = vmatpush1.msra.mxu1 %v313_v32  ;;  %1064 = vmatprep.subr.mxu0 %v246_v33  ;;  %v386_v24 = vld [vmem:[%s3165_s0 + $0xbb8] sm:$0xff]  ;;  %v385_v26 = vld [vmem:[%s3165_s0 + $0xbb0] sm:$0xff] }
  0xd3   :  { %1103 = vmatprep.subr.mxu1 %v310_v34  ;;  %1065 = vmatpush2.msra.mxu0 %v245_v35  ;;  %v450_v25 = vld [vmem:[%s3165_s0 + $0xdb8] sm:$0xff]  ;;  %v449_v27 = vld [vmem:[%s3165_s0 + $0xdb0] sm:$0xff] }
  0xd4   :  { %1104 = vmatpush1.msra.mxu1 %v309_v36  ;;  %1066 = vmatprep.subr.mxu0 %v242_v37  ;;  %v382_v28 = vld [vmem:[%s3165_s0 + $0xb98] sm:$0xff]  ;;  %v381_v30 = vld [vmem:[%s3165_s0 + $0xb90] sm:$0xff] }
  0xd5   :  { %1105 = vmatprep.subr.mxu1 %v306_v38  ;;  %1067 = vmatpush2.msra.mxu0 %v241_v39  ;;  %v446_v29 = vld [vmem:[%s3165_s0 + $0xd98] sm:$0xff]  ;;  %v445_v31 = vld [vmem:[%s3165_s0 + $0xd90] sm:$0xff] }
  0xd6   :  { %1106 = vmatpush1.msra.mxu1 %v305_v40  ;;  %1068 = vmatprep.subr.mxu0 %v238_v41  ;;  %v378_v32 = vld [vmem:[%s3165_s0 + $0xb78] sm:$0xff]  ;;  %v377_v34 = vld [vmem:[%s3165_s0 + $0xb70] sm:$0xff] }
  0xd7   :  { %1107 = vmatprep.subr.mxu1 %v302_v42  ;;  %1069 = vmatpush2.msra.mxu0 %v237_v43  ;;  %v442_v33 = vld [vmem:[%s3165_s0 + $0xd78] sm:$0xff]  ;;  %v441_v35 = vld [vmem:[%s3165_s0 + $0xd70] sm:$0xff] }
  0xd8   :  { %1108 = vmatpush1.msra.mxu1 %v301_v44  ;;  %1070 = vmatprep.subr.mxu0 %v234_v45  ;;  %v374_v36 = vld [vmem:[%s3165_s0 + $0xb58] sm:$0xff]  ;;  %v373_v38 = vld [vmem:[%s3165_s0 + $0xb50] sm:$0xff] }
  0xd9   :  { %1109 = vmatprep.subr.mxu1 %v298_v46  ;;  %1071 = vmatpush2.msra.mxu0 %v233_v47  ;;  %v438_v37 = vld [vmem:[%s3165_s0 + $0xd58] sm:$0xff]  ;;  %v437_v39 = vld [vmem:[%s3165_s0 + $0xd50] sm:$0xff] }
  0xda   :  { %1110 = vmatpush1.msra.mxu1 %v297_v48  ;;  %1072 = vmatprep.subr.mxu0 %v230_v49  ;;  %v370_v40 = vld [vmem:[%s3165_s0 + $0xb38] sm:$0xff]  ;;  %v369_v42 = vld [vmem:[%s3165_s0 + $0xb30] sm:$0xff] }
  0xdb   :  { %1111 = vmatprep.subr.mxu1 %v294_v50  ;;  %1073 = vmatpush2.msra.mxu0 %v229_v51  ;;  %v434_v41 = vld [vmem:[%s3165_s0 + $0xd38] sm:$0xff]  ;;  %v433_v43 = vld [vmem:[%s3165_s0 + $0xd30] sm:$0xff] }
  0xdc   :  { %1112 = vmatpush1.msra.mxu1 %v293_v52  ;;  %1074 = vmatprep.subr.mxu0 %v226_v53  ;;  %v366_v44 = vld [vmem:[%s3165_s0 + $0xb18] sm:$0xff]  ;;  %v365_v46 = vld [vmem:[%s3165_s0 + $0xb10] sm:$0xff] }
  0xdd   :  { %1113 = vmatprep.subr.mxu1 %v290_v54  ;;  %1075 = vmatpush2.msra.mxu0 %v225_v55  ;;  %v430_v45 = vld [vmem:[%s3165_s0 + $0xd18] sm:$0xff]  ;;  %v429_v47 = vld [vmem:[%s3165_s0 + $0xd10] sm:$0xff] }
  0xde   :  { %1114 = vmatpush1.msra.mxu1 %v289_v56  ;;  %1076 = vmatprep.subr.mxu0 %v222_v57  ;;  %v362_v48 = vld [vmem:[%s3165_s0 + $0xaf8] sm:$0xff]  ;;  %v361_v50 = vld [vmem:[%s3165_s0 + $0xaf0] sm:$0xff] }
  0xdf   :  { %1115 = vmatprep.subr.mxu1 %v286_v58  ;;  %1077 = vmatpush2.msra.mxu0 %v221_v59  ;;  %v426_v49 = vld [vmem:[%s3165_s0 + $0xcf8] sm:$0xff]  ;;  %v425_v51 = vld [vmem:[%s3165_s0 + $0xcf0] sm:$0xff] }
  0xe0   :  { %1116 = vmatpush1.msra.mxu1 %v285_v60  ;;  %1078 = vmatprep.subr.mxu0 %v218_v61  ;;  %v358_v52 = vld [vmem:[%s3165_s0 + $0xad8] sm:$0xff]  ;;  %v357_v54 = vld [vmem:[%s3165_s0 + $0xad0] sm:$0xff] }
  0xe1   :  { %1117 = vmatprep.subr.mxu1 %v282_v62  ;;  %1079 = vmatpush2.msra.mxu0 %v217_v63  ;;  %v422_v53 = vld [vmem:[%s3165_s0 + $0xcd8] sm:$0xff]  ;;  %v421_v55 = vld [vmem:[%s3165_s0 + $0xcd0] sm:$0xff] }
  0xe2   :  { %1118 = vmatpush1.msra.mxu1 %v281_v0  ;;  %1080 = vmatprep.subr.mxu0 %v214_v1  ;;  %v354_v56 = vld [vmem:[%s3165_s0 + $0xab8] sm:$0xff]  ;;  %v353_v58 = vld [vmem:[%s3165_s0 + $0xab0] sm:$0xff] }
  0xe3   :  { %1119 = vmatprep.subr.mxu1 %v278_v2  ;;  %1081 = vmatpush2.msra.mxu0 %v213_v3  ;;  %v418_v57 = vld [vmem:[%s3165_s0 + $0xcb8] sm:$0xff]  ;;  %v417_v59 = vld [vmem:[%s3165_s0 + $0xcb0] sm:$0xff] }
  0xe4   :  { %1120 = vmatpush1.msra.mxu1 %v277_v4  ;;  %1082 = vmatprep.subr.mxu0 %v210_v5  ;;  %v350_v60 = vld [vmem:[%s3165_s0 + $0xa98] sm:$0xff]  ;;  %v349_v62 = vld [vmem:[%s3165_s0 + $0xa90] sm:$0xff] }
  0xe5   :  { %1121 = vmatprep.subr.mxu1 %v274_v6  ;;  %1083 = vmatpush2.msra.mxu0 %v209_v7  ;;  %v414_v61 = vld [vmem:[%s3165_s0 + $0xc98] sm:$0xff]  ;;  %v413_v63 = vld [vmem:[%s3165_s0 + $0xc90] sm:$0xff] }
  0xe6   :  { %1122 = vmatpush1.msra.mxu1 %v273_v8  ;;  %1084 = vmatprep.subr.mxu0 %v206_v9  ;;  %v346_v0 = vld [vmem:[%s3165_s0 + $0xa78] sm:$0xff]  ;;  %v345_v2 = vld [vmem:[%s3165_s0 + $0xa70] sm:$0xff] }
  0xe7   :  { %1123 = vmatprep.subr.mxu1 %v270_v10  ;;  %1085 = vmatpush2.msra.mxu0 %v205_v12  ;;  %v410_v1 = vld [vmem:[%s3165_s0 + $0xc78] sm:$0xff]  ;;  %v409_v3 = vld [vmem:[%s3165_s0 + $0xc70] sm:$0xff] }
  0xe8   :  { %1086 = vmatprep.mubr.f32.mxu0 %v1346_v16  ;;  %1124 = vmatpush1.msra.mxu1 %v269_v13  ;;  %v342_v4 = vld [vmem:[%s3165_s0 + $0xa58] sm:$0xff]  ;;  %v341_v6 = vld [vmem:[%s3165_s0 + $0xa50] sm:$0xff] }
  0xe9   :  { %1087 = vmatmul.mubr.f32.vlgmr.msra.gmra.mxu0 %v1347_v19  ;;  %1125 = vmatprep.subr.mxu1 %v394_v14  ;;  %v406_v5 = vld [vmem:[%s3165_s0 + $0xc58] sm:$0xff]  ;;  %v405_v7 = vld [vmem:[%s3165_s0 + $0xc50] sm:$0xff]  ;;  %v1348_v19 = vld [vmem:[%s3166_s1 + $0x28] sm:$0xff] }
  0xea   :  { %1164 = vmatprep.subr.mxu0 %v458_v15  ;;  %1126 = vmatpush2.msra.mxu1 %v393_v17  ;;  %v338_v8 = vld [vmem:[%s3165_s0 + $0xa38] sm:$0xff]  ;;  %v337_v10 = vld [vmem:[%s3165_s0 + $0xa30] sm:$0xff] }
  0xeb   :  { %1165 = vmatpush1.msra.mxu0 %v457_v18  ;;  %1127 = vmatprep.subr.mxu1 %v390_v20  ;;  %v402_v9 = vld [vmem:[%s3165_s0 + $0xc38] sm:$0xff]  ;;  %v401_v12 = vld [vmem:[%s3165_s0 + $0xc30] sm:$0xff] }
  0xec   :  { %1166 = vmatprep.subr.mxu0 %v454_v21  ;;  %1128 = vmatpush2.msra.mxu1 %v389_v22  ;;  %v334_v13 = vld [vmem:[%s3165_s0 + $0xa18] sm:$0xff]  ;;  %v333_v15 = vld [vmem:[%s3165_s0 + $0xa10] sm:$0xff]  ;;  %v1349_v22 = vld [vmem:[%s3166_s1 + $0x20] sm:$0xff] }
  0xed   :  { %1167 = vmatpush1.msra.mxu0 %v453_v23  ;;  %1129 = vmatprep.subr.mxu1 %v386_v24  ;;  %v398_v14 = vld [vmem:[%s3165_s0 + $0xc18] sm:$0xff]  ;;  %v397_v16 = vld [vmem:[%s3165_s0 + $0xc10] sm:$0xff] }
  0xee   :  { %1168 = vmatprep.subr.mxu0 %v450_v25  ;;  %1130 = vmatpush2.msra.mxu1 %v385_v26  ;;  %v522_v17 = vld [vmem:[%s3165_s0 + $0xff8] sm:$0xff]  ;;  %v521_v20 = vld [vmem:[%s3165_s0 + $0xff0] sm:$0xff] }
  0xef   :  { %1169 = vmatpush1.msra.mxu0 %v449_v27  ;;  %1131 = vmatprep.subr.mxu1 %v382_v28  ;;  %v586_v18 = vld [vmem:[%s3165_s0 + $0x11f8] sm:$0xff]  ;;  %v585_v21 = vld [vmem:[%s3165_s0 + $0x11f0] sm:$0xff] }
  0xf0   :  { %1170 = vmatprep.subr.mxu0 %v446_v29  ;;  %1132 = vmatpush2.msra.mxu1 %v381_v30  ;;  %v518_v23 = vld [vmem:[%s3165_s0 + $0xfd8] sm:$0xff]  ;;  %v517_v25 = vld [vmem:[%s3165_s0 + $0xfd0] sm:$0xff] }
  0xf1   :  { %1171 = vmatpush1.msra.mxu0 %v445_v31  ;;  %1133 = vmatprep.subr.mxu1 %v378_v32  ;;  %v582_v24 = vld [vmem:[%s3165_s0 + $0x11d8] sm:$0xff]  ;;  %v581_v26 = vld [vmem:[%s3165_s0 + $0x11d0] sm:$0xff] }
  0xf2   :  { %1172 = vmatprep.subr.mxu0 %v442_v33  ;;  %1134 = vmatpush2.msra.mxu1 %v377_v34  ;;  %v514_v27 = vld [vmem:[%s3165_s0 + $0xfb8] sm:$0xff]  ;;  %v513_v29 = vld [vmem:[%s3165_s0 + $0xfb0] sm:$0xff] }
  0xf3   :  { %1173 = vmatpush1.msra.mxu0 %v441_v35  ;;  %1135 = vmatprep.subr.mxu1 %v374_v36  ;;  %v578_v28 = vld [vmem:[%s3165_s0 + $0x11b8] sm:$0xff]  ;;  %v577_v30 = vld [vmem:[%s3165_s0 + $0x11b0] sm:$0xff] }
  0xf4   :  { %1174 = vmatprep.subr.mxu0 %v438_v37  ;;  %1136 = vmatpush2.msra.mxu1 %v373_v38  ;;  %v510_v31 = vld [vmem:[%s3165_s0 + $0xf98] sm:$0xff]  ;;  %v509_v33 = vld [vmem:[%s3165_s0 + $0xf90] sm:$0xff] }
  0xf5   :  { %1175 = vmatpush1.msra.mxu0 %v437_v39  ;;  %1137 = vmatprep.subr.mxu1 %v370_v40  ;;  %v574_v32 = vld [vmem:[%s3165_s0 + $0x1198] sm:$0xff]  ;;  %v573_v34 = vld [vmem:[%s3165_s0 + $0x1190] sm:$0xff] }
  0xf6   :  { %1176 = vmatprep.subr.mxu0 %v434_v41  ;;  %1138 = vmatpush2.msra.mxu1 %v369_v42  ;;  %v506_v35 = vld [vmem:[%s3165_s0 + $0xf78] sm:$0xff]  ;;  %v505_v37 = vld [vmem:[%s3165_s0 + $0xf70] sm:$0xff] }
  0xf7   :  { %1177 = vmatpush1.msra.mxu0 %v433_v43  ;;  %1139 = vmatprep.subr.mxu1 %v366_v44  ;;  %v570_v36 = vld [vmem:[%s3165_s0 + $0x1178] sm:$0xff]  ;;  %v569_v38 = vld [vmem:[%s3165_s0 + $0x1170] sm:$0xff] }
  0xf8   :  { %1178 = vmatprep.subr.mxu0 %v430_v45  ;;  %1140 = vmatpush2.msra.mxu1 %v365_v46  ;;  %v502_v39 = vld [vmem:[%s3165_s0 + $0xf58] sm:$0xff]  ;;  %v501_v41 = vld [vmem:[%s3165_s0 + $0xf50] sm:$0xff] }
  0xf9   :  { %1179 = vmatpush1.msra.mxu0 %v429_v47  ;;  %1141 = vmatprep.subr.mxu1 %v362_v48  ;;  %v566_v40 = vld [vmem:[%s3165_s0 + $0x1158] sm:$0xff]  ;;  %v565_v42 = vld [vmem:[%s3165_s0 + $0x1150] sm:$0xff] }
  0xfa   :  { %1180 = vmatprep.subr.mxu0 %v426_v49  ;;  %1142 = vmatpush2.msra.mxu1 %v361_v50  ;;  %v498_v43 = vld [vmem:[%s3165_s0 + $0xf38] sm:$0xff]  ;;  %v497_v45 = vld [vmem:[%s3165_s0 + $0xf30] sm:$0xff] }
  0xfb   :  { %1181 = vmatpush1.msra.mxu0 %v425_v51  ;;  %1143 = vmatprep.subr.mxu1 %v358_v52  ;;  %v562_v44 = vld [vmem:[%s3165_s0 + $0x1138] sm:$0xff]  ;;  %v561_v46 = vld [vmem:[%s3165_s0 + $0x1130] sm:$0xff] }
  0xfc   :  { %1182 = vmatprep.subr.mxu0 %v422_v53  ;;  %1144 = vmatpush2.msra.mxu1 %v357_v54  ;;  %v494_v47 = vld [vmem:[%s3165_s0 + $0xf18] sm:$0xff]  ;;  %v493_v49 = vld [vmem:[%s3165_s0 + $0xf10] sm:$0xff] }
  0xfd   :  { %1183 = vmatpush1.msra.mxu0 %v421_v55  ;;  %1145 = vmatprep.subr.mxu1 %v354_v56  ;;  %v558_v48 = vld [vmem:[%s3165_s0 + $0x1118] sm:$0xff]  ;;  %v557_v50 = vld [vmem:[%s3165_s0 + $0x1110] sm:$0xff] }
  0xfe   :  { %1184 = vmatprep.subr.mxu0 %v418_v57  ;;  %1146 = vmatpush2.msra.mxu1 %v353_v58  ;;  %v490_v51 = vld [vmem:[%s3165_s0 + $0xef8] sm:$0xff]  ;;  %v489_v53 = vld [vmem:[%s3165_s0 + $0xef0] sm:$0xff] }
  0xff   :  { %1185 = vmatpush1.msra.mxu0 %v417_v59  ;;  %1147 = vmatprep.subr.mxu1 %v350_v60  ;;  %v554_v52 = vld [vmem:[%s3165_s0 + $0x10f8] sm:$0xff]  ;;  %v553_v54 = vld [vmem:[%s3165_s0 + $0x10f0] sm:$0xff] }
 0x100   :  { %1186 = vmatprep.subr.mxu0 %v414_v61  ;;  %1148 = vmatpush2.msra.mxu1 %v349_v62  ;;  %v486_v55 = vld [vmem:[%s3165_s0 + $0xed8] sm:$0xff]  ;;  %v485_v57 = vld [vmem:[%s3165_s0 + $0xed0] sm:$0xff] }
 0x101   :  { %1187 = vmatpush1.msra.mxu0 %v413_v63  ;;  %1149 = vmatprep.subr.mxu1 %v346_v0  ;;  %v550_v56 = vld [vmem:[%s3165_s0 + $0x10d8] sm:$0xff]  ;;  %v549_v58 = vld [vmem:[%s3165_s0 + $0x10d0] sm:$0xff] }
 0x102   :  { %1188 = vmatprep.subr.mxu0 %v410_v1  ;;  %1150 = vmatpush2.msra.mxu1 %v345_v2  ;;  %v482_v59 = vld [vmem:[%s3165_s0 + $0xeb8] sm:$0xff]  ;;  %v481_v61 = vld [vmem:[%s3165_s0 + $0xeb0] sm:$0xff] }
 0x103   :  { %1189 = vmatpush1.msra.mxu0 %v409_v3  ;;  %1151 = vmatprep.subr.mxu1 %v342_v4  ;;  %v546_v60 = vld [vmem:[%s3165_s0 + $0x10b8] sm:$0xff]  ;;  %v545_v62 = vld [vmem:[%s3165_s0 + $0x10b0] sm:$0xff] }
 0x104   :  { %1190 = vmatprep.subr.mxu0 %v406_v5  ;;  %1152 = vmatpush2.msra.mxu1 %v341_v6  ;;  %v478_v63 = vld [vmem:[%s3165_s0 + $0xe98] sm:$0xff]  ;;  %v477_v1 = vld [vmem:[%s3165_s0 + $0xe90] sm:$0xff] }
 0x105   :  { %1191 = vmatpush1.msra.mxu0 %v405_v7  ;;  %1153 = vmatprep.subr.mxu1 %v338_v8  ;;  %v542_v0 = vld [vmem:[%s3165_s0 + $0x1098] sm:$0xff]  ;;  %v541_v2 = vld [vmem:[%s3165_s0 + $0x1090] sm:$0xff] }
 0x106   :  { %1192 = vmatprep.subr.mxu0 %v402_v9  ;;  %1154 = vmatpush2.msra.mxu1 %v337_v10  ;;  %v474_v3 = vld [vmem:[%s3165_s0 + $0xe78] sm:$0xff]  ;;  %v473_v5 = vld [vmem:[%s3165_s0 + $0xe70] sm:$0xff] }
 0x107   :  { %1193 = vmatpush1.msra.mxu0 %v401_v12  ;;  %1155 = vmatprep.subr.mxu1 %v334_v13  ;;  %v538_v4 = vld [vmem:[%s3165_s0 + $0x1078] sm:$0xff]  ;;  %v537_v6 = vld [vmem:[%s3165_s0 + $0x1070] sm:$0xff] }
 0x108   :  { %1194 = vmatprep.subr.mxu0 %v398_v14  ;;  %1156 = vmatpush2.msra.mxu1 %v333_v15  ;;  %v470_v7 = vld [vmem:[%s3165_s0 + $0xe58] sm:$0xff]  ;;  %v469_v9 = vld [vmem:[%s3165_s0 + $0xe50] sm:$0xff] }
 0x109   :  { %1157 = vmatprep.mubr.f32.mxu1 %v1348_v19  ;;  %1195 = vmatpush1.msra.mxu0 %v397_v16  ;;  %v534_v8 = vld [vmem:[%s3165_s0 + $0x1058] sm:$0xff]  ;;  %v533_v10 = vld [vmem:[%s3165_s0 + $0x1050] sm:$0xff] }
 0x10a   :  { %1158 = vmatmul.mubr.f32.vlgmr.msra.gmra.mxu1 %v1349_v22  ;;  %1196 = vmatprep.subr.mxu0 %v522_v17  ;;  %v466_v12 = vld [vmem:[%s3165_s0 + $0xe38] sm:$0xff]  ;;  %v465_v14 = vld [vmem:[%s3165_s0 + $0xe30] sm:$0xff]  ;;  %v1352_v22 = vld [vmem:[%s3166_s1 + $0x40] sm:$0xff] }
 0x10b   :  { %1235 = vmatprep.subr.mxu1 %v586_v18  ;;  %1197 = vmatpush2.msra.mxu0 %v521_v20  ;;  %v530_v13 = vld [vmem:[%s3165_s0 + $0x1038] sm:$0xff]  ;;  %v529_v15 = vld [vmem:[%s3165_s0 + $0x1030] sm:$0xff] }
 0x10c   :  { %1236 = vmatpush1.msra.mxu1 %v585_v21  ;;  %1198 = vmatprep.subr.mxu0 %v518_v23  ;;  %v462_v16 = vld [vmem:[%s3165_s0 + $0xe18] sm:$0xff]  ;;  %v461_v18 = vld [vmem:[%s3165_s0 + $0xe10] sm:$0xff]  ;;  %v662_v23 = vpop.f32.mrf.mxu0 }
 0x10d   :  { %1237 = vmatprep.subr.mxu1 %v582_v24  ;;  %1199 = vmatpush2.msra.mxu0 %v517_v25  ;;  %v526_v17 = vld [vmem:[%s3165_s0 + $0x1018] sm:$0xff]  ;;  %v525_v19 = vld [vmem:[%s3165_s0 + $0x1010] sm:$0xff]  ;;  %v733_v24 = vpop.f32.mrf.mxu1 }
 0x10e   :  { %1238 = vmatpush1.msra.mxu1 %v581_v26  ;;  %1200 = vmatprep.subr.mxu0 %v514_v27  ;;  %v1350_v20 = vld [vmem:[%s3166_s1 + $0x38] sm:$0xff]  ;;  %v1351_v21 = vld [vmem:[%s3166_s1 + $0x30] sm:$0xff]  ;;  %v664_v25 = vpop.f32.mrf.mxu0 }
 0x10f   :  { %1239 = vmatprep.subr.mxu1 %v578_v28  ;;  %1201 = vmatpush2.msra.mxu0 %v513_v29  ;;  %v735_v26 = vpop.f32.mrf.mxu1 }
 0x110   :  { %1240 = vmatpush1.msra.mxu1 %v577_v30  ;;  %1202 = vmatprep.subr.mxu0 %v510_v31 }
 0x111   :  { %1241 = vmatprep.subr.mxu1 %v574_v32  ;;  %1203 = vmatpush2.msra.mxu0 %v509_v33  ;;  %v736_v33 = vadd.f32 %v735_v26, %v664_v25 }
 0x112   :  { %1242 = vmatpush1.msra.mxu1 %v573_v34  ;;  %1204 = vmatprep.subr.mxu0 %v506_v35 }
 0x113   :  { %1243 = vmatprep.subr.mxu1 %v570_v36  ;;  %1205 = vmatpush2.msra.mxu0 %v505_v37  ;;  %v734_v36 = vadd.f32 %v733_v24, %v662_v23 }
 0x114   :  { %1244 = vmatpush1.msra.mxu1 %v569_v38  ;;  %1206 = vmatprep.subr.mxu0 %v502_v39 }
 0x115   :  { %1245 = vmatprep.subr.mxu1 %v566_v40  ;;  %1207 = vmatpush2.msra.mxu0 %v501_v41 }
 0x116   :  { %1246 = vmatpush1.msra.mxu1 %v565_v42  ;;  %1208 = vmatprep.subr.mxu0 %v498_v43 }
 0x117   :  { %1247 = vmatprep.subr.mxu1 %v562_v44  ;;  %1209 = vmatpush2.msra.mxu0 %v497_v45 }
 0x118   :  { %1248 = vmatpush1.msra.mxu1 %v561_v46  ;;  %1210 = vmatprep.subr.mxu0 %v494_v47 }
 0x119   :  { %1249 = vmatprep.subr.mxu1 %v558_v48  ;;  %1211 = vmatpush2.msra.mxu0 %v493_v49 }
 0x11a   :  { %1250 = vmatpush1.msra.mxu1 %v557_v50  ;;  %1212 = vmatprep.subr.mxu0 %v490_v51 }
 0x11b   :  { %1251 = vmatprep.subr.mxu1 %v554_v52  ;;  %1213 = vmatpush2.msra.mxu0 %v489_v53 }
 0x11c   :  { %1252 = vmatpush1.msra.mxu1 %v553_v54  ;;  %1214 = vmatprep.subr.mxu0 %v486_v55 }
 0x11d   :  { %1253 = vmatprep.subr.mxu1 %v550_v56  ;;  %1215 = vmatpush2.msra.mxu0 %v485_v57 }
 0x11e   :  { %1254 = vmatpush1.msra.mxu1 %v549_v58  ;;  %1216 = vmatprep.subr.mxu0 %v482_v59 }
 0x11f   :  { %1255 = vmatprep.subr.mxu1 %v546_v60  ;;  %1217 = vmatpush2.msra.mxu0 %v481_v61 }
 0x120   :  { %1256 = vmatpush1.msra.mxu1 %v545_v62  ;;  %1218 = vmatprep.subr.mxu0 %v478_v63 }
 0x121   :  { %1257 = vmatprep.subr.mxu1 %v542_v0  ;;  %1219 = vmatpush2.msra.mxu0 %v477_v1 }
 0x122   :  { %1258 = vmatpush1.msra.mxu1 %v541_v2  ;;  %1220 = vmatprep.subr.mxu0 %v474_v3 }
 0x123   :  { %1259 = vmatprep.subr.mxu1 %v538_v4  ;;  %1221 = vmatpush2.msra.mxu0 %v473_v5 }
 0x124   :  { %1260 = vmatpush1.msra.mxu1 %v537_v6  ;;  %1222 = vmatprep.subr.mxu0 %v470_v7 }
 0x125   :  { %1261 = vmatprep.subr.mxu1 %v534_v8  ;;  %1223 = vmatpush2.msra.mxu0 %v469_v9 }
 0x126   :  { %1262 = vmatpush1.msra.mxu1 %v533_v10  ;;  %1224 = vmatprep.subr.mxu0 %v466_v12 }
 0x127   :  { %1263 = vmatprep.subr.mxu1 %v530_v13  ;;  %1225 = vmatpush2.msra.mxu0 %v465_v14 }
 0x128   :  { %1264 = vmatpush1.msra.mxu1 %v529_v15  ;;  %1226 = vmatprep.subr.mxu0 %v462_v16 }
 0x129   :  { %1265 = vmatprep.subr.mxu1 %v526_v17  ;;  %1227 = vmatpush2.msra.mxu0 %v461_v18 }
 0x12a   :  { %1228 = vmatprep.mubr.f32.mxu0 %v1350_v20  ;;  %1266 = vmatpush1.msra.mxu1 %v525_v19 }
 0x12b   :  { %1299 = vmatprep.mubr.f32.mxu1 %v1353_v11  ;;  %1229 = vmatmul.mubr.f32.vlgmr.msra.gmra.mxu0 %v1351_v21 }
 0x12c   :  { %1300 = vmatmul.mubr.f32.vlgmr.msra.gmra.mxu1 %v1352_v22 }
 0x145   :  { %v804_v27 = vpop.f32.mrf.mxu0 }
 0x146   :  { %v805_v39 = vadd.f32 %v804_v27, %v734_v36 }
 0x147   :  { %v875_v28 = vpop.f32.mrf.mxu1  ;;  %v806_v29 = vpop.f32.mrf.mxu0 }
 0x148   :  { %v807_v37 = vadd.f32 %v806_v29, %v736_v33  ;;  %v876_v44 = vadd.f32 %v875_v28, %v805_v39 }
 0x149   :  { %v877_v30 = vpop.f32.mrf.mxu1 }
 0x14a   :  { %v878_v41 = vadd.f32 %v877_v30, %v807_v37 }
 0x167   :  { %v946_v31 = vpop.f32.mrf.mxu0 }
 0x168   :  { %v947_v50 = vadd.f32 %v946_v31, %v876_v44 }
 0x169   :  { %v948_v32 = vpop.f32.mrf.mxu0 }
 0x16a   :  { %v949_v45 = vadd.f32 %v948_v32, %v878_v41 }
 0x16c   :  { %v1306_v54 = vadd.f32 %v949_v45, %v947_v50 }
 0x189   :  { %v1017_v11 = vpop.f32.mrf.mxu1 }
 0x18b   :  { %v1019_v34 = vpop.f32.mrf.mxu1 }
 0x1a9   :  { %v1088_v35 = vpop.f32.mrf.mxu0 }
 0x1aa   :  { %v1089_v42 = vadd.f32 %v1088_v35, %v1017_v11 }
 0x1ab   :  { %v1090_v40 = vpop.f32.mrf.mxu0 }
 0x1ac   :  { %v1091_v46 = vadd.f32 %v1090_v40, %v1019_v34 }
 0x1ca   :  { %v1159_v38 = vpop.f32.mrf.mxu1 }
 0x1cb   :  { %v1160_v47 = vadd.f32 %v1159_v38, %v1089_v42 }
 0x1cc   :  { %v1161_v43 = vpop.f32.mrf.mxu1 }
 0x1cd   :  { %v1162_v51 = vadd.f32 %v1161_v43, %v1091_v46 }
 0x1eb   :  { %v1230_v48 = vpop.f32.mrf.mxu0 }
 0x1ec   :  { %v1301_v49 = vpop.f32.mrf.mxu1  ;;  %v1231_v52 = vadd.f32 %v1230_v48, %v1160_v47 }
 0x1ed   :  { %v1232_v53 = vpop.f32.mrf.mxu0 }
 0x1ee   :  { %v1302_v55 = vadd.f32 %v1301_v49, %v1231_v52  ;;  %v1233_v56 = vadd.f32 %v1232_v53, %v1162_v51  ;;  %v1303_v57 = vpop.f32.mrf.mxu1 }
 0x1f0   :  { %v1304_v58 = vadd.f32 %v1303_v57, %v1233_v56  ;;  %v1307_v59 = vadd.f32 %v1306_v54, %v1302_v55 }
 0x1f2   :  { %v1308_v60 = vadd.f32 %v1307_v59, %v1304_v58 }
 0x1f4   :  { %1309 = vadd.xlane.f32.xlu0 %v1308_v60 }
 0x27d   :  { %v1310_v61 = vpop.xlane.xlu0 %1309 }
 0x27e   :  { %v1312_v62 = vmul.f32 0.001953125, %v1310_v61 }
 0x280   :  { %v1313_v63 = vsub.f32 %v947_v50, %v1312_v62  ;;  %v1314_v0 = vsub.f32 %v949_v45, %v1312_v62  ;;  %v1315_v1 = vsub.f32 %v1302_v55, %v1312_v62  ;;  %v1316_v2 = vsub.f32 %v1304_v58, %v1312_v62 }
 0x282   :  { %v1317_v3 = vmul.f32 %v1313_v63, %v1313_v63  ;;  %v1318_v4 = vmul.f32 %v1314_v0, %v1314_v0  ;;  %v1319_v5 = vmul.f32 %v1315_v1, %v1315_v1  ;;  %v1320_v7 = vmul.f32 %v1316_v2, %v1316_v2 }
 0x284   :  { %v1321_v6 = vadd.f32 %v1318_v4, %v1317_v3 }
 0x286   :  { %v1322_v8 = vadd.f32 %v1321_v6, %v1319_v5 }
 0x288   :  { %v1323_v9 = vadd.f32 %v1322_v8, %v1320_v7 }
 0x28a   :  { %1324 = vadd.xlane.f32.xlu0 %v1323_v9 }
 0x313   :  { %v1325_v10 = vpop.xlane.xlu0 %1324 }
 0x314   :  { %v1326_v12 = vmul.f32 0.001953125, %v1325_v10 }
 0x316   :  { %v1327_v13 = vadd.f32 1e-05, %v1326_v12 }
 0x318   :  { %1342 = vrsqrt.f32 %v1327_v13 }
 0x325   :  { %v1343_v14 = vpop.eup %1342 }
 0x326   :  { %v1329_v15 = vmul.f32 %v1343_v14, %v1313_v63  ;;  %v1330_v16 = vmul.f32 %v1343_v14, %v1314_v0  ;;  %v1331_v17 = vmul.f32 %v1343_v14, %v1315_v1  ;;  %v1332_v18 = vmul.f32 %v1343_v14, %v1316_v2 }
 0x328   :  { %1333 = vst [vmem:[%s3167_s2] sm:$0xff] %v1329_v15  ;;  %1334 = vst [vmem:[%s3167_s2 + $0x8] sm:$0xff] %v1330_v16 }
 0x329   :  { %1335 = vst [vmem:[%s3167_s2 + $0x10] sm:$0xff] %v1331_v17  ;;  %1336 = vst [vmem:[%s3167_s2 + $0x18] sm:$0xff] %v1332_v18 }

// kernel: network_forward.23
= control target key start
LH: loop header
LB: loop body
LE: loop exit
PB: predicated region body
PF: predicated region fallthrough
CT: control target
= control target key end

     0   :  { %v125_v0 = vmov 0.0   ;;  %vm126_vm0 = vmmov 0   ;;  %vm16_vm1 = vcmask 130048   ;;  %vm90_vm2 = vcmask 1043456   ;;  %s154_s0 = inlined_call_operand.vmem [shape: f32[16,128], index: 0, kind: input, shape index: {}]   ;;  %s155_s1 = inlined_call_operand.vmem [shape: f32[4,16], index: 1, kind: input, shape index: {}]   ;;  %s156_s2 = inlined_call_operand.vmem [shape: f32[4,128], index: 2, kind: output, shape index: {}]  }
   0x1   :  { %114 = vmatprep.subr.mxu0 %v125_v0  ;;  %v11_v1 = vld [vmem:[%s154_s0] sm:$0xff]  ;;  %v12_v2 = vld [vmem:[%s154_s0 + $0x8] sm:$0xff]  ;;  %118 = vmatprep.mubr.msk.f32.mxu0 %vm126_vm0, %v125_v0 }
   0x2   :  { %v14_v3 = vmax.f32 %v12_v2, 0.0  ;;  %v13_v4 = vmax.f32 %v11_v1, 0.0  ;;  %v15_v5 = vld [vmem:[%s155_s1] sm:$0xf] }
   0x4   :  { %115 = vmatpush3.msra.mxu0 %v14_v3 }
   0x5   :  { %116 = vmatprep.subr.mxu0 %v125_v0 }
   0x6   :  { %117 = vmatpush3.msra.mxu0 %v13_v4 }
   0x7   :  { %119 = vmatmul.mubr.msk.f32.vlgmr.msra.gmra.mxu0 %vm16_vm1, %v15_v5 }
  0xc7   :  { %v86_v6 = vpop.f32.mrf.mxu0 }
  0xc8   :  { %v91_v7 = vsel %vm90_vm2, %v86_v6, 0.0 }
  0xc9   :  { %92 = vadd.xlane.f32.xlu0 %v91_v7  ;;  %v120_v8 = vpop.f32.mrf.mxu0 }
 0x152   :  { %v93_v9 = vpop.xlane.xlu0 %92 }
 0x153   :  { %v95_v10 = vmul.f32 0.0078125, %v93_v9 }
 0x155   :  { %v96_v11 = vsub.f32 %v86_v6, %v95_v10 }
 0x157   :  { %v97_v12 = vmul.f32 %v96_v11, %v96_v11 }
 0x159   :  { %v98_v13 = vsel %vm90_vm2, %v97_v12, 0.0 }
 0x15a   :  { %99 = vadd.xlane.f32.xlu0 %v98_v13 }
 0x1e3   :  { %v100_v14 = vpop.xlane.xlu0 %99 }
 0x1e4   :  { %v101_v15 = vmul.f32 0.0078125, %v100_v14 }
 0x1e6   :  { %v102_v16 = vadd.f32 1e-05, %v101_v15 }
 0x1e8   :  { %123 = vrsqrt.f32 %v102_v16 }
 0x1f5   :  { %v124_v17 = vpop.eup %123 }
 0x1f6   :  { %v104_v18 = vmul.f32 %v124_v17, %v96_v11 }
 0x1f8   :  { %105 = vst [vmem:[%s156_s2] sm:$0xf] %v104_v18 }

// kernel: network_forward.25
= control target key start
LH: loop header
LB: loop body
LE: loop exit
PB: predicated region body
PF: predicated region fallthrough
CT: control target
= control target key end

     0   :  { %v144_v0 = vmov 0.0   ;;  %vm26_vm0 = vcmask 1043456   ;;  %vm145_vm1 = vmmov 0   ;;  %vm22_vm2 = vcmask 293888   ;;  %s185_s0 = inlined_call_operand.vmem [shape: f32[36,128], index: 0, kind: input, shape index: {}]   ;;  %s186_s1 = inlined_call_operand.vmem [shape: f32[4,36], index: 1, kind: input, shape index: {}]   ;;  %s187_s2 = inlined_call_operand.vmem [shape: f32[4,128], index: 2, kind: output, shape index: {}]  }
   0x1   :  { %127 = vmatprep.subr.mxu0 %v144_v0  ;;  %v15_v1 = vld [vmem:[%s185_s0 + $0x20] sm:$0xf]  ;;  %v14_v2 = vld [vmem:[%s185_s0 + $0x18] sm:$0xff]  ;;  %v13_v3 = vld [vmem:[%s185_s0 + $0x10] sm:$0xff]  ;;  %137 = vmatprep.mubr.msk.f32.mxu0 %vm145_vm1, %v144_v0 }
   0x2   :  { %v20_v4 = vmax.f32 %v15_v1, 0.0  ;;  %v19_v5 = vmax.f32 %v14_v2, 0.0  ;;  %v12_v6 = vld [vmem:[%s185_s0 + $0x8] sm:$0xff]  ;;  %v18_v7 = vmax.f32 %v13_v3, 0.0  ;;  %v11_v8 = vld [vmem:[%s185_s0] sm:$0xff] }
   0x3   :  { %v17_v9 = vmax.f32 %v12_v6, 0.0  ;;  %v16_v10 = vmax.f32 %v11_v8, 0.0  ;;  %v21_v11 = vld [vmem:[%s186_s1] sm:$0xf] }
   0x4   :  { %128 = vmatpush3.msk.msra.mxu0 %vm26_vm0, %v20_v4 }
   0x5   :  { %129 = vmatprep.subr.mxu0 %v144_v0 }
   0x6   :  { %130 = vmatpush3.msra.mxu0 %v19_v5 }
   0x7   :  { %131 = vmatprep.subr.mxu0 %v144_v0 }
   0x8   :  { %132 = vmatpush3.msra.mxu0 %v18_v7 }
   0x9   :  { %133 = vmatprep.subr.mxu0 %v144_v0 }
   0xa   :  { %134 = vmatpush3.msra.mxu0 %v17_v9 }
   0xb   :  { %135 = vmatprep.subr.mxu0 %v144_v0 }
   0xc   :  { %136 = vmatpush3.msra.mxu0 %v16_v10 }
   0xd   :  { %138 = vmatmul.mubr.msk.f32.vlgmr.msra.gmra.mxu0 %vm22_vm2, %v21_v11 }
  0xcd   :  { %v96_v12 = vpop.f32.mrf.mxu0 }
  0xce   :  { %v100_v13 = vsel %vm26_vm0, %v96_v12, 0.0 }
  0xcf   :  { %101 = vadd.xlane.f32.xlu0 %v100_v13  ;;  %v139_v14 = vpop.f32.mrf.mxu0 }
 0x158   :  { %v102_v15 = vpop.xlane.xlu0 %101 }
 0x159   :  { %v104_v16 = vmul.f32 0.0078125, %v102_v15 }
 0x15b   :  { %v105_v17 = vsub.f32 %v96_v12, %v104_v16 }
 0x15d   :  { %v106_v18 = vmul.f32 %v105_v17, %v105_v17 }
 0x15f   :  { %v107_v19 = vsel %vm26_vm0, %v106_v18, 0.0 }
 0x160   :  { %108 = vadd.xlane.f32.xlu0 %v107_v19 }
 0x1e9   :  { %v109_v20 = vpop.xlane.xlu0 %108 }
 0x1ea   :  { %v110_v21 = vmul.f32 0.0078125, %v109_v20 }
 0x1ec   :  { %v111_v22 = vadd.f32 1e-05, %v110_v21 }
 0x1ee   :  { %142 = vrsqrt.f32 %v111_v22 }
 0x1fb   :  { %v143_v23 = vpop.eup %142 }
 0x1fc   :  { %v113_v24 = vmul.f32 %v143_v23, %v105_v17 }
 0x1fe   :  { %114 = vst [vmem:[%s187_s2] sm:$0xf] %v113_v24 }

// kernel: network_forward.26
= control target key start
LH: loop header
LB: loop body
LE: loop exit
PB: predicated region body
PF: predicated region fallthrough
CT: control target
= control target key end

     0   :  { %v184_v0 = vmov 0.0   ;;  %vm42_vm0 = vcmask 1043456   ;;  %vm185_vm1 = vmmov 0   ;;  %vm38_vm2 = vcmask 818176   ;;  %s249_s0 = inlined_call_operand.vmem [shape: f32[100,128], index: 0, kind: input, shape index: {}]   ;;  %s250_s1 = inlined_call_operand.vmem [shape: f32[4,100], index: 1, kind: input, shape index: {}]   ;;  %s251_s2 = inlined_call_operand.vmem [shape: f32[4,128], index: 2, kind: output, shape index: {}]  }
   0x1   :  { %151 = vmatprep.subr.mxu0 %v184_v0  ;;  %v23_v1 = vld [vmem:[%s249_s0 + $0x60] sm:$0xf]  ;;  %v22_v2 = vld [vmem:[%s249_s0 + $0x58] sm:$0xff]  ;;  %v21_v3 = vld [vmem:[%s249_s0 + $0x50] sm:$0xff]  ;;  %177 = vmatprep.mubr.msk.f32.mxu0 %vm185_vm1, %v184_v0 }
   0x2   :  { %v36_v4 = vmax.f32 %v23_v1, 0.0  ;;  %v35_v5 = vmax.f32 %v22_v2, 0.0  ;;  %v20_v6 = vld [vmem:[%s249_s0 + $0x48] sm:$0xff]  ;;  %v34_v7 = vmax.f32 %v21_v3, 0.0  ;;  %v19_v8 = vld [vmem:[%s249_s0 + $0x40] sm:$0xff]  ;;  %v18_v10 = vld [vmem:[%s249_s0 + $0x38] sm:$0xff] }
   0x3   :  { %v33_v9 = vmax.f32 %v20_v6, 0.0  ;;  %v32_v11 = vmax.f32 %v19_v8, 0.0  ;;  %v17_v12 = vld [vmem:[%s249_s0 + $0x30] sm:$0xff]  ;;  %v31_v13 = vmax.f32 %v18_v10, 0.0  ;;  %v16_v14 = vld [vmem:[%s249_s0 + $0x28] sm:$0xff]  ;;  %v15_v16 = vld [vmem:[%s249_s0 + $0x20] sm:$0xff] }
   0x4   :  { %152 = vmatpush3.msk.msra.mxu0 %vm42_vm0, %v36_v4  ;;  %v30_v15 = vmax.f32 %v17_v12, 0.0  ;;  %v29_v17 = vmax.f32 %v16_v14, 0.0  ;;  %v14_v18 = vld [vmem:[%s249_s0 + $0x18] sm:$0xff]  ;;  %v28_v19 = vmax.f32 %v15_v16, 0.0  ;;  %v13_v20 = vld [vmem:[%s249_s0 + $0x10] sm:$0xff]  ;;  %v12_v22 = vld [vmem:[%s249_s0 + $0x8] sm:$0xff] }
   0x5   :  { %153 = vmatprep.subr.mxu0 %v184_v0  ;;  %v27_v21 = vmax.f32 %v14_v18, 0.0  ;;  %v26_v23 = vmax.f32 %v13_v20, 0.0  ;;  %v11_v24 = vld [vmem:[%s249_s0] sm:$0xff]  ;;  %v25_v25 = vmax.f32 %v12_v22, 0.0 }
   0x6   :  { %154 = vmatpush3.msra.mxu0 %v35_v5  ;;  %v24_v26 = vmax.f32 %v11_v24, 0.0  ;;  %v37_v27 = vld [vmem:[%s250_s1] sm:$0xf] }
   0x7   :  { %155 = vmatprep.subr.mxu0 %v184_v0 }
   0x8   :  { %156 = vmatpush3.msra.mxu0 %v34_v7 }
   0x9   :  { %157 = vmatprep.subr.mxu0 %v184_v0 }
   0xa   :  { %158 = vmatpush3.msra.mxu0 %v33_v9 }
   0xb   :  { %159 = vmatprep.subr.mxu0 %v184_v0 }
   0xc   :  { %160 = vmatpush3.msra.mxu0 %v32_v11 }
   0xd   :  { %161 = vmatprep.subr.mxu0 %v184_v0 }
   0xe   :  { %162 = vmatpush3.msra.mxu0 %v31_v13 }
   0xf   :  { %163 = vmatprep.subr.mxu0 %v184_v0 }
  0x10   :  { %164 = vmatpush3.msra.mxu0 %v30_v15 }
  0x11   :  { %165 = vmatprep.subr.mxu0 %v184_v0 }
  0x12   :  { %166 = vmatpush3.msra.mxu0 %v29_v17 }
  0x13   :  { %167 = vmatprep.subr.mxu0 %v184_v0 }
  0x14   :  { %168 = vmatpush3.msra.mxu0 %v28_v19 }
  0x15   :  { %169 = vmatprep.subr.mxu0 %v184_v0 }
  0x16   :  { %170 = vmatpush3.msra.mxu0 %v27_v21 }
  0x17   :  { %171 = vmatprep.subr.mxu0 %v184_v0 }
  0x18   :  { %172 = vmatpush3.msra.mxu0 %v26_v23 }
  0x19   :  { %173 = vmatprep.subr.mxu0 %v184_v0 }
  0x1a   :  { %174 = vmatpush3.msra.mxu0 %v25_v25 }
  0x1b   :  { %175 = vmatprep.subr.mxu0 %v184_v0 }
  0x1c   :  { %176 = vmatpush3.msra.mxu0 %v24_v26 }
  0x1d   :  { %178 = vmatmul.mubr.msk.f32.vlgmr.msra.gmra.mxu0 %vm38_vm2, %v37_v27 }
  0xdd   :  { %v112_v28 = vpop.f32.mrf.mxu0 }
  0xde   :  { %v116_v29 = vsel %vm42_vm0, %v112_v28, 0.0 }
  0xdf   :  { %117 = vadd.xlane.f32.xlu0 %v116_v29  ;;  %v179_v30 = vpop.f32.mrf.mxu0 }
 0x168   :  { %v118_v31 = vpop.xlane.xlu0 %117 }
 0x169   :  { %v120_v32 = vmul.f32 0.0078125, %v118_v31 }
 0x16b   :  { %v121_v33 = vsub.f32 %v112_v28, %v120_v32 }
 0x16d   :  { %v122_v34 = vmul.f32 %v121_v33, %v121_v33 }
 0x16f   :  { %v123_v35 = vsel %vm42_vm0, %v122_v34, 0.0 }
 0x170   :  { %124 = vadd.xlane.f32.xlu0 %v123_v35 }
 0x1f9   :  { %v125_v36 = vpop.xlane.xlu0 %124 }
 0x1fa   :  { %v126_v37 = vmul.f32 0.0078125, %v125_v36 }
 0x1fc   :  { %v127_v38 = vadd.f32 1e-05, %v126_v37 }
 0x1fe   :  { %182 = vrsqrt.f32 %v127_v38 }
 0x20b   :  { %v183_v39 = vpop.eup %182 }
 0x20c   :  { %v129_v40 = vmul.f32 %v183_v39, %v121_v33 }
 0x20e   :  { %130 = vst [vmem:[%s251_s2] sm:$0xf] %v129_v40 }

// kernel: network_forward.27
= control target key start
LH: loop header
LB: loop body
LE: loop exit
PB: predicated region body
PF: predicated region fallthrough
CT: control target
= control target key end

     0   :  { %18 = vsyncpa [#allocation3], 0  ;;  %s1204_s0 = inlined_call_operand.vmem [shape: f32[8], index: 0, kind: input, shape index: {}]   ;;  %s1205_s1 = inlined_call_operand.vmem [shape: f32[4,128], index: 1, kind: input, shape index: {}]   ;;  %s1206_s2 = inlined_call_operand.vmem [shape: f32[9,4,128], index: 2, kind: input, shape index: {}]   ;;  %s1207_s3 = inlined_call_operand.vmem [shape: f32[9,1,128], index: 3, kind: input, shape index: {}]   ;;  %s1208_s4 = inlined_call_operand.vmem [shape: f32[1,128], index: 4, kind: input, shape index: {}]   ;;  %s1209_s5 = inlined_call_operand.vmem [shape: f32[36,128], index: 5, kind: input, shape index: {}]   ;;  %s1210_s6 = inlined_call_operand.vmem [shape: f32[100,128], index: 6, kind: input, shape index: {}]   ;;  %s1211_s7 = inlined_call_operand.vmem [shape: f32[36,128], index: 7, kind: input, shape index: {}]   ;;  %s1212_s8 = inlined_call_operand.vmem [shape: f32[100,128], index: 8, kind: input, shape index: {}]   ;;  %s1213_s9 = inlined_call_operand.vmem [shape: f32[4,36], index: 9, kind: input, shape index: {}]   ;;  %s1214_s10 = inlined_call_operand.vmem [shape: f32[4,100], index: 10, kind: input, shape index: {}]   ;;  %s1215_s11 = inlined_call_operand.vmem [shape: f32[4,36], index: 11, kind: input, shape index: {}]   ;;  %s1216_s12 = inlined_call_operand.vmem [shape: f32[4,100], index: 12, kind: input, shape index: {}]   ;;  %s1217_s13 = inlined_call_operand.vmem [shape: f32[4,128], index: 13, kind: output, shape index: {}]  }
   0x1   :  { %s25_s27 = sshll.u32 %s1204_s0, 4  ;;  %s26_s27 = int_to_ptr.vmem [resolvable:$true] %s25_s27 }
   0x2   :  { %s842_s28 = scalar_lea.vmem %s26_s27, 16  ;;  %p847_p1 = scmp.lt.s32.totalorder %s26_s27, %s26_s27 }
   0x3   :  { %p843_p0 = scmp.ne.s32.totalorder %s26_s27, %s842_s28  ;;  %p848_p2 = scmp.lt.s32.totalorder %s842_s28, %s842_s28 }
   0x5   :  { %p849_p3 = por %p848_p2, %p847_p1 }
   0x7   :  { %p850_p4 = pnand %p849_p3, %p843_p0 }
   0x9   :  { %853 = shalt.err (!%p850_p4)
}
   0xa   :  { %s856_s29 = smov [#allocation2]  }
   0xb   :  { %28 = dma.vmem_to_smem %s26_s27, 16, %s856_s29, [#allocation3]  }
   0xc   :  { %854 = dma.done.wait [#allocation3], 16  }
   0xd   :  { %855 = vsyncadd [#allocation3], 4294967280 }
   0xe   :  { %56 = sfence }
   0xf   :  { %v202_v0 = vld [vmem:[%s1209_s5 + $0x20] sm:$0xf]  ;;  %vm212_vm0 = vcmask 1043456   ;;  %v857_v2 = vmov 0.0   ;;  %v201_v5 = vld [vmem:[%s1209_s5 + $0x18] sm:$0xff]  ;;  %v200_v7 = vld [vmem:[%s1209_s5 + $0x10] sm:$0xff] }
  0x10   :  { %v422_v1 = vld [vmem:[%s1211_s7 + $0x20] sm:$0xf]  ;;  %747 = vmatprep.subr.mxu1 %v857_v2  ;;  %789 = vmatprep.subr.mxu0 %v857_v2  ;;  %v207_v3 = vmax.f32 %v202_v0, 0.0  ;;  %v421_v6 = vld [vmem:[%s1211_s7 + $0x18] sm:$0xff]  ;;  %v206_v8 = vmax.f32 %v201_v5, 0.0  ;;  %v420_v10 = vld [vmem:[%s1211_s7 + $0x10] sm:$0xff] }
  0x11   :  { %v427_v4 = vmax.f32 %v422_v1, 0.0  ;;  %v426_v9 = vmax.f32 %v421_v6, 0.0  ;;  %v199_v11 = vld [vmem:[%s1209_s5 + $0x8] sm:$0xff]  ;;  %vm858_vm1 = vmmov 0   ;;  %v205_v13 = vmax.f32 %v200_v7, 0.0  ;;  %v198_v15 = vld [vmem:[%s1209_s5] sm:$0xff] }
  0x12   :  { %v419_v12 = vld [vmem:[%s1211_s7 + $0x8] sm:$0xff]  ;;  %757 = vmatprep.mubr.msk.f32.mxu1 %vm858_vm1, %v857_v2  ;;  %799 = vmatprep.mubr.msk.f32.mxu0 %vm858_vm1, %v857_v2  ;;  %v425_v14 = vmax.f32 %v420_v10, 0.0  ;;  %v418_v16 = vld [vmem:[%s1211_s7] sm:$0xff]  ;;  %v204_v17 = vmax.f32 %v199_v11, 0.0  ;;  %v203_v19 = vmax.f32 %v198_v15, 0.0  ;;  %vm208_vm2 = vcmask 293888  }
  0x13   :  { %748 = vmatpush3.msk.msra.mxu1 %vm212_vm0, %v207_v3  ;;  %790 = vmatpush3.msk.msra.mxu0 %vm212_vm0, %v427_v4  ;;  %v424_v18 = vmax.f32 %v419_v12, 0.0  ;;  %v423_v20 = vmax.f32 %v418_v16, 0.0  ;;  %v313_v21 = vld [vmem:[%s1210_s6 + $0x60] sm:$0xf]  ;;  %v312_v24 = vld [vmem:[%s1210_s6 + $0x58] sm:$0xff]  ;;  %v311_v29 = vld [vmem:[%s1210_s6 + $0x50] sm:$0xff] }
  0x14   :  { %749 = vmatprep.subr.mxu1 %v857_v2  ;;  %791 = vmatprep.subr.mxu0 %v857_v2  ;;  %v530_v22 = vld [vmem:[%s1212_s8 + $0x60] sm:$0xf]  ;;  %v529_v25 = vld [vmem:[%s1212_s8 + $0x58] sm:$0xff]  ;;  %v326_v27 = vmax.f32 %v313_v21, 0.0  ;;  %v528_v30 = vld [vmem:[%s1212_s8 + $0x50] sm:$0xff]  ;;  %v325_v31 = vmax.f32 %v312_v24, 0.0 }
  0x15   :  { %750 = vmatpush3.msra.mxu1 %v206_v8  ;;  %792 = vmatpush3.msra.mxu0 %v426_v9  ;;  %v197_v23 = vld [vmem:[%s1213_s9] sm:$0xf]  ;;  %v543_v28 = vmax.f32 %v530_v22, 0.0  ;;  %v542_v32 = vmax.f32 %v529_v25, 0.0  ;;  %v310_v33 = vld [vmem:[%s1210_s6 + $0x48] sm:$0xff]  ;;  %v324_v35 = vmax.f32 %v311_v29, 0.0 }
  0x16   :  { %751 = vmatprep.subr.mxu1 %v857_v2  ;;  %793 = vmatprep.subr.mxu0 %v857_v2  ;;  %v417_v26 = vld [vmem:[%s1215_s11] sm:$0xf]  ;;  %v527_v34 = vld [vmem:[%s1212_s8 + $0x48] sm:$0xff]  ;;  %v541_v36 = vmax.f32 %v528_v30, 0.0  ;;  %v323_v39 = vmax.f32 %v310_v33, 0.0  ;;  %v308_v41 = vld [vmem:[%s1210_s6 + $0x38] sm:$0xff] }
  0x17   :  { %752 = vmatpush3.msra.mxu1 %v205_v13  ;;  %794 = vmatpush3.msra.mxu0 %v425_v14  ;;  %v309_v37 = vld [vmem:[%s1210_s6 + $0x40] sm:$0xff]  ;;  %v540_v40 = vmax.f32 %v527_v34, 0.0  ;;  %v525_v42 = vld [vmem:[%s1212_s8 + $0x38] sm:$0xff]  ;;  %v307_v45 = vld [vmem:[%s1210_s6 + $0x30] sm:$0xff]  ;;  %v321_v47 = vmax.f32 %v308_v41, 0.0  ;;  %vm327_vm3 = vcmask 818176  }
  0x18   :  { %753 = vmatprep.subr.mxu1 %v857_v2  ;;  %795 = vmatprep.subr.mxu0 %v857_v2  ;;  %v526_v38 = vld [vmem:[%s1212_s8 + $0x40] sm:$0xff]  ;;  %v322_v43 = vmax.f32 %v309_v37, 0.0  ;;  %v524_v46 = vld [vmem:[%s1212_s8 + $0x30] sm:$0xff]  ;;  %v538_v48 = vmax.f32 %v525_v42, 0.0  ;;  %v306_v49 = vld [vmem:[%s1210_s6 + $0x28] sm:$0xff]  ;;  %v320_v51 = vmax.f32 %v307_v45, 0.0  ;;  %v63_v45 = vlaneseq }
  0x19   :  { %754 = vmatpush3.msra.mxu1 %v204_v17  ;;  %796 = vmatpush3.msra.mxu0 %v424_v18  ;;  %v539_v44 = vmax.f32 %v526_v38, 0.0  ;;  %v523_v50 = vld [vmem:[%s1212_s8 + $0x28] sm:$0xff]  ;;  %v537_v52 = vmax.f32 %v524_v46, 0.0  ;;  %v305_v53 = vld [vmem:[%s1210_s6 + $0x20] sm:$0xff]  ;;  %v319_v55 = vmax.f32 %v306_v49, 0.0  ;;  %v304_v57 = vld [vmem:[%s1210_s6 + $0x18] sm:$0xff] }
  0x1a   :  { %755 = vmatprep.subr.mxu1 %v857_v2  ;;  %797 = vmatprep.subr.mxu0 %v857_v2  ;;  %v522_v54 = vld [vmem:[%s1212_s8 + $0x20] sm:$0xff]  ;;  %v536_v56 = vmax.f32 %v523_v50, 0.0  ;;  %v521_v58 = vld [vmem:[%s1212_s8 + $0x18] sm:$0xff]  ;;  %v318_v59 = vmax.f32 %v305_v53, 0.0  ;;  %v303_v61 = vld [vmem:[%s1210_s6 + $0x10] sm:$0xff]  ;;  %v317_v63 = vmax.f32 %v304_v57, 0.0 }
  0x1b   :  { %756 = vmatpush3.msra.mxu1 %v203_v19  ;;  %798 = vmatpush3.msra.mxu0 %v423_v20  ;;  %v535_v60 = vmax.f32 %v522_v54, 0.0  ;;  %v520_v62 = vld [vmem:[%s1212_s8 + $0x10] sm:$0xff]  ;;  %v534_v0 = vmax.f32 %v521_v58, 0.0  ;;  %v302_v1 = vld [vmem:[%s1210_s6 + $0x8] sm:$0xff]  ;;  %v316_v4 = vmax.f32 %v303_v61, 0.0  ;;  %v301_v6 = vld [vmem:[%s1210_s6] sm:$0xff] }
  0x1c   :  { %758 = vmatmul.mubr.msk.f32.vlgmr.msra.gmra.mxu1 %vm208_vm2, %v197_v23  ;;  %760 = vmatprep.subr.mxu1 %v857_v2  ;;  %v519_v3 = vld [vmem:[%s1212_s8 + $0x8] sm:$0xff]  ;;  %v533_v5 = vmax.f32 %v520_v62, 0.0  ;;  %v315_v7 = vmax.f32 %v302_v1, 0.0  ;;  %v518_v9 = vld [vmem:[%s1212_s8] sm:$0xff]  ;;  %v314_v10 = vmax.f32 %v301_v6, 0.0  ;;  %v64_v49 = vshrl.u32 %v63_v45, 7 }
  0x1d   :  { %800 = vmatmul.mubr.msk.f32.vlgmr.msra.gmra.mxu0 %vm208_vm2, %v417_v26  ;;  %802 = vmatprep.subr.mxu0 %v857_v2  ;;  %v532_v8 = vmax.f32 %v519_v3, 0.0  ;;  %v531_v11 = vmax.f32 %v518_v9, 0.0  ;;  %v300_v12 = vld [vmem:[%s1214_s10] sm:$0xf]  ;;  %v667_v61 = vld [vmem:[%s1206_s2 + $0x4] sm:$0xf] }
  0x1e   :  { %761 = vmatpush3.msk.msra.mxu1 %vm212_vm0, %v326_v27  ;;  %803 = vmatpush3.msk.msra.mxu0 %vm212_vm0, %v543_v28  ;;  %v517_v13 = vld [vmem:[%s1216_s12] sm:$0xf]  ;;  %v1135_v53 = vsub.s32 0, %v64_v49  ;;  %s700_s29 = sld [smem:[#allocation2 + $0x1]] }
  0x1f   :  { %762 = vmatprep.subr.mxu1 %v857_v2  ;;  %804 = vmatprep.subr.mxu0 %v857_v2  ;;  %v59_v46 = vld [vmem:[%s1207_s3] sm:$0x1]  ;;  %s701_s30 = sld [smem:[#allocation2 + $0x2]] }
  0x20   :  { %763 = vmatpush3.msra.mxu1 %v325_v31  ;;  %805 = vmatpush3.msra.mxu0 %v542_v32  ;;  %s702_s0 = sld [smem:[#allocation2 + $0x3]] }
  0x21   :  { %764 = vmatprep.subr.mxu1 %v857_v2  ;;  %806 = vmatprep.subr.mxu0 %v857_v2  ;;  %s705_s18 = sld [smem:[#allocation2 + $0x6]] }
  0x22   :  { %765 = vmatpush3.msra.mxu1 %v324_v35  ;;  %807 = vmatpush3.msra.mxu0 %v541_v36  ;;  %s706_s19 = sld [smem:[#allocation2 + $0x7]] }
  0x23   :  { %766 = vmatprep.subr.mxu1 %v857_v2  ;;  %808 = vmatprep.subr.mxu0 %v857_v2 }
  0x24   :  { %767 = vmatpush3.msra.mxu1 %v323_v39  ;;  %809 = vmatpush3.msra.mxu0 %v540_v40 }
  0x25   :  { %768 = vmatprep.subr.mxu1 %v857_v2  ;;  %810 = vmatprep.subr.mxu0 %v857_v2 }
  0x26   :  { %769 = vmatpush3.msra.mxu1 %v322_v43  ;;  %811 = vmatpush3.msra.mxu0 %v539_v44 }
  0x27   :  { %770 = vmatprep.subr.mxu1 %v857_v2  ;;  %812 = vmatprep.subr.mxu0 %v857_v2 }
  0x28   :  { %771 = vmatpush3.msra.mxu1 %v321_v47  ;;  %813 = vmatpush3.msra.mxu0 %v538_v48  ;;  %v668_v47 = vld [vmem:[%s1207_s3 + $0x1] sm:$0x1]  ;;  %v666_v48 = vadd.f32 -1.0, %v59_v46 }
  0x29   :  { %772 = vmatprep.subr.mxu1 %v857_v2  ;;  %814 = vmatprep.subr.mxu0 %v857_v2  ;;  %v669_v50 = vadd.f32 -1.0, %v668_v47 }
  0x2a   :  { %773 = vmatpush3.msra.mxu1 %v320_v51  ;;  %815 = vmatpush3.msra.mxu0 %v537_v52  ;;  %v671_v51 = vld [vmem:[%s1207_s3 + $0x2] sm:$0x1]  ;;  %v61_v52 = vmul.f32 1e+30, %v666_v48 }
  0x2b   :  { %774 = vmatprep.subr.mxu1 %v857_v2  ;;  %816 = vmatprep.subr.mxu0 %v857_v2  ;;  %v74_v54 = vmul.f32 1e+30, %v669_v50 }
  0x2c   :  { %775 = vmatpush3.msra.mxu1 %v319_v55  ;;  %817 = vmatpush3.msra.mxu0 %v536_v56  ;;  %v672_v55 = vadd.f32 -1.0, %v671_v51  ;;  %v674_v56 = vld [vmem:[%s1207_s3 + $0x3] sm:$0x1]  ;;  %v66_v57 = vrot.slane %v61_v52, %v1135_v53  ;;  %v685_v51 = vld [vmem:[%s1206_s2 + $0x1c] sm:$0xf] }
  0x2d   :  { %776 = vmatprep.subr.mxu1 %v857_v2  ;;  %818 = vmatprep.subr.mxu0 %v857_v2  ;;  %v79_v58 = vrot.slane %v74_v54, %v1135_v53  ;;  %v675_v62 = vadd.f32 -1.0, %v674_v56 }
  0x2e   :  { %777 = vmatpush3.msra.mxu1 %v318_v59  ;;  %819 = vmatpush3.msra.mxu0 %v535_v60  ;;  %v89_v59 = vmul.f32 1e+30, %v672_v55  ;;  %v58_v60 = vld [vmem:[%s1206_s2] sm:$0xf] }
  0x2f   :  { %778 = vmatprep.subr.mxu1 %v857_v2  ;;  %820 = vmatprep.subr.mxu0 %v857_v2  ;;  %v81_v1 = vadd.f32 %v667_v61, %v79_v58  ;;  %v83_v3 = vadd.f32 %v667_v61, %v58_v60  ;;  %v104_v6 = vmul.f32 1e+30, %v675_v62 }
  0x30   :  { %779 = vmatpush3.msra.mxu1 %v317_v63  ;;  %821 = vmatpush3.msra.mxu0 %v534_v0  ;;  %v677_v63 = vld [vmem:[%s1207_s3 + $0x4] sm:$0x1]  ;;  %v68_v0 = vadd.f32 %v66_v57, %v58_v60 }
  0x31   :  { %780 = vmatprep.subr.mxu1 %v857_v2  ;;  %822 = vmatprep.subr.mxu0 %v857_v2 }
  0x32   :  { %781 = vmatpush3.msra.mxu1 %v316_v4  ;;  %823 = vmatpush3.msra.mxu0 %v533_v5  ;;  %v94_v4 = vrot.slane %v89_v59, %v1135_v53  ;;  %v670_v5 = vld [vmem:[%s1206_s2 + $0x8] sm:$0xf]  ;;  %v82_v9 = vmax.f32 %v68_v0, %v81_v1  ;;  %v688_v59 = vld [vmem:[%s1206_s2 + $0x20] sm:$0xf] }
  0x33   :  { %782 = vmatprep.subr.mxu1 %v857_v2  ;;  %824 = vmatprep.subr.mxu0 %v857_v2 }
  0x34   :  { %783 = vmatpush3.msra.mxu1 %v315_v7  ;;  %825 = vmatpush3.msra.mxu0 %v532_v8  ;;  %v678_v7 = vadd.f32 -1.0, %v677_v63  ;;  %v680_v8 = vld [vmem:[%s1207_s3 + $0x5] sm:$0x1] }
  0x35   :  { %784 = vmatprep.subr.mxu1 %v857_v2  ;;  %826 = vmatprep.subr.mxu0 %v857_v2 }
  0x36   :  { %785 = vmatpush3.msra.mxu1 %v314_v10  ;;  %786 = vmatprep.mubr.msk.f32.mxu1 %vm858_vm1, %v857_v2  ;;  %v96_v10 = vadd.f32 %v670_v5, %v94_v4 }
  0x37   :  { %827 = vmatpush3.msra.mxu0 %v531_v11  ;;  %828 = vmatprep.mubr.msk.f32.mxu0 %vm858_vm1, %v857_v2  ;;  %v98_v11 = vadd.f32 %v670_v5, %v83_v3  ;;  %v691_v3 = vld [vmem:[%s1208_s4] ss:$0 sm:$0xff]  ;;  %s704_s4 = sld [smem:[#allocation2 + $0x5]] }
  0x38   :  { %787 = vmatmul.mubr.msk.f32.vlgmr.msra.gmra.mxu1 %vm327_vm3, %v300_v12  ;;  %829 = vmatmul.mubr.msk.f32.vlgmr.msra.gmra.mxu0 %vm327_vm3, %v517_v13  ;;  %v673_v12 = vld [vmem:[%s1206_s2 + $0xc] sm:$0xf]  ;;  %v109_v13 = vrot.slane %v104_v6, %v1135_v53 }
  0xdc   :  { %v282_v14 = vpop.f32.mrf.mxu1 }
  0xdd   :  { %v500_v15 = vpop.f32.mrf.mxu0  ;;  %v286_v16 = vsel %vm212_vm0, %v282_v14, 0.0 }
  0xde   :  { %v504_v17 = vsel %vm212_vm0, %v500_v15, 0.0  ;;  %287 = vadd.xlane.f32.xlu0 %v286_v16  ;;  %v759_v18 = vpop.f32.mrf.mxu1  ;;  %v683_v16 = vld [vmem:[%s1207_s3 + $0x6] sm:$0x1] }
  0xdf   :  { %505 = vadd.xlane.f32.xlu1 %v504_v17  ;;  %v801_v19 = vpop.f32.mrf.mxu0  ;;  %v97_v17 = vmax.f32 %v82_v9, %v96_v10  ;;  %v113_v18 = vadd.f32 %v673_v12, %v98_v11  ;;  %v637_v9 = vstv %s701_s30 }
  0xe0   :  { %v676_v19 = vld [vmem:[%s1206_s2 + $0x10] sm:$0xf] }
  0xf8   :  { %v400_v20 = vpop.f32.mrf.mxu1  ;;  %v616_v21 = vpop.f32.mrf.mxu0 }
  0xf9   :  { %v620_v22 = vsel %vm212_vm0, %v616_v21, 0.0  ;;  %v404_v23 = vsel %vm212_vm0, %v400_v20, 0.0 }
  0xfa   :  { %621 = vadd.xlane.f32.xlu1 %v620_v22  ;;  %405 = vadd.xlane.f32.xlu0 %v404_v23  ;;  %v788_v2 = vpop.f32.mrf.mxu1  ;;  %v830_v24 = vpop.f32.mrf.mxu0  ;;  %v684_v23 = vadd.f32 -1.0, %v683_v16 }
  0xfb   :  { %v686_v2 = vld [vmem:[%s1207_s3 + $0x7] sm:$0x1]  ;;  %v128_v24 = vadd.f32 %v676_v19, %v113_v18 }
 0x167   :  { %v288_v25 = vpop.xlane.xlu0 %287 }
 0x168   :  { %v506_v26 = vpop.xlane.xlu1 %505  ;;  %v290_v27 = vmul.f32 0.0078125, %v288_v25  ;;  %v687_v25 = vadd.f32 -1.0, %v686_v2  ;;  %v649_v2 = vstv %s704_s4 }
 0x169   :  { %v507_v28 = vmul.f32 0.0078125, %v506_v26 }
 0x16a   :  { %v1106_v29 = vsub.f32 %v282_v14, %v290_v27  ;;  %v119_v14 = vmul.f32 1e+30, %v678_v7 }
 0x16b   :  { %v1108_v30 = vsub.f32 %v500_v15, %v507_v28  ;;  %v681_v15 = vadd.f32 -1.0, %v680_v8  ;;  %v679_v28 = vld [vmem:[%s1206_s2 + $0x14] sm:$0xf]  ;;  %v634_v8 = vstv %s700_s29 }
 0x16c   :  { %v292_v31 = vmul.f32 %v1106_v29, %v1106_v29 }
 0x16d   :  { %v509_v33 = vmul.f32 %v1108_v30, %v1108_v30  ;;  %v134_v22 = vmul.f32 1e+30, %v681_v15  ;;  %v57_v15 = vld [vmem:[%s1205_s1] sm:$0xf] }
 0x16e   :  { %v293_v32 = vsel %vm212_vm0, %v292_v31, 0.0 }
 0x16f   :  { %294 = vadd.xlane.f32.xlu0 %v293_v32  ;;  %v510_v34 = vsel %vm212_vm0, %v509_v33, 0.0  ;;  %v139_v31 = vrot.slane %v134_v22, %v1135_v53  ;;  %v149_v32 = vmul.f32 1e+30, %v684_v23  ;;  %v689_v33 = vld [vmem:[%s1207_s3 + $0x8] sm:$0x1] }
 0x173   :  { %511 = vadd.xlane.f32.xlu0 %v510_v34 }
 0x183   :  { %v622_v35 = vpop.xlane.xlu1 %621  ;;  %v406_v36 = vpop.xlane.xlu0 %405 }
 0x184   :  { %v623_v37 = vmul.f32 0.0078125, %v622_v35  ;;  %v407_v38 = vmul.f32 0.0078125, %v406_v36  ;;  %v143_v35 = vadd.f32 %v679_v28, %v128_v24  ;;  %v164_v36 = vmul.f32 1e+30, %v687_v25 }
 0x186   :  { %v1116_v39 = vsub.f32 %v616_v21, %v623_v37  ;;  %v1118_v40 = vsub.f32 %v400_v20, %v407_v38  ;;  %v111_v20 = vadd.f32 %v673_v12, %v109_v13  ;;  %v124_v21 = vrot.slane %v119_v14, %v1135_v53 }
 0x187   :  { %v690_v37 = vadd.f32 -1.0, %v689_v33  ;;  %v169_v45 = vrot.slane %v164_v36, %v1135_v53  ;;  %v641_v14 = vstv %s702_s0 }
 0x188   :  { %v409_v41 = vmul.f32 %v1118_v40, %v1118_v40  ;;  %v625_v43 = vmul.f32 %v1116_v39, %v1116_v39  ;;  %v112_v26 = vmax.f32 %v97_v17, %v111_v20  ;;  %v126_v27 = vadd.f32 %v676_v19, %v124_v21 }
 0x189   :  { %v179_v46 = vmul.f32 1e+30, %v690_v37  ;;  %v171_v55 = vadd.f32 %v685_v51, %v169_v45  ;;  %v642_v18 = vmul.f32 %v641_v14, %v57_v15 }
 0x18a   :  { %v410_v42 = vsel %vm212_vm0, %v409_v41, 0.0  ;;  %v626_v44 = vsel %vm212_vm0, %v625_v43, 0.0  ;;  %v127_v38 = vmax.f32 %v112_v26, %v126_v27  ;;  %v141_v41 = vadd.f32 %v679_v28, %v139_v31 }
 0x18b   :  { %411 = vadd.xlane.f32.xlu1 %v410_v42  ;;  %v154_v42 = vrot.slane %v149_v32, %v1135_v53  ;;  %v184_v58 = vrot.slane %v179_v46, %v1135_v53  ;;  %v653_v26 = vstv %s705_s18  ;;  %v657_v32 = vstv %s706_s19 }
 0x18c   :  { %v142_v48 = vmax.f32 %v127_v38, %v141_v41 }
 0x18d   :  { %v186_v63 = vadd.f32 %v688_v59, %v184_v58 }
 0x18f   :  { %627 = vadd.xlane.f32.xlu1 %v626_v44  ;;  %v682_v44 = vld [vmem:[%s1206_s2 + $0x18] sm:$0xf]  ;;  %s703_s2 = sld [smem:[#allocation2 + $0x4]] }
 0x190   :  { %v156_v49 = vadd.f32 %v682_v44, %v154_v42  ;;  %v158_v50 = vadd.f32 %v682_v44, %v143_v35 }
 0x192   :  { %v157_v56 = vmax.f32 %v142_v48, %v156_v49  ;;  %v173_v57 = vadd.f32 %v685_v51, %v158_v50 }
 0x194   :  { %v172_v62 = vmax.f32 %v157_v56, %v171_v55  ;;  %v188_v0 = vadd.f32 %v688_v59, %v173_v57 }
 0x195   :  { %v645_v19 = vstv %s703_s2 }
 0x196   :  { %v187_v5 = vmax.f32 %v172_v62, %v186_v63  ;;  %v196_v6 = vmul.f32 %v691_v3, %v188_v0 }
 0x198   :  { %v635_v11 = vmul.f32 %v634_v8, %v187_v5  ;;  %v638_v12 = vmul.f32 %v637_v9, %v196_v6 }
 0x19a   :  { %v639_v17 = vadd.f32 %v638_v12, %v635_v11 }
 0x19c   :  { %v643_v21 = vadd.f32 %v642_v18, %v639_v17 }
 0x1f8   :  { %v295_v34 = vpop.xlane.xlu0 %294 }
 0x1f9   :  { %v296_v43 = vmul.f32 0.0078125, %v295_v34 }
 0x1fb   :  { %v297_v52 = vadd.f32 1e-05, %v296_v43 }
 0x1fc   :  { %v512_v47 = vpop.xlane.xlu0 %511 }
 0x1fd   :  { %v513_v54 = vmul.f32 0.0078125, %v512_v47  ;;  %834 = vrsqrt.f32 %v297_v52 }
 0x1ff   :  { %v514_v60 = vadd.f32 1e-05, %v513_v54 }
 0x201   :  { %836 = vrsqrt.f32 %v514_v60 }
 0x20a   :  { %v835_v13 = vpop.eup %834 }
 0x20b   :  { %v299_v16 = vmul.f32 %v835_v13, %v1106_v29 }
 0x20d   :  { %v646_v22 = vmul.f32 %v645_v19, %v299_v16 }
 0x20e   :  { %v837_v20 = vpop.eup %836 }
 0x20f   :  { %v516_v24 = vmul.f32 %v837_v20, %v1108_v30  ;;  %v647_v27 = vadd.f32 %v646_v22, %v643_v21 }
 0x211   :  { %v654_v33 = vmul.f32 %v653_v26, %v516_v24 }
 0x214   :  { %v412_v61 = vpop.xlane.xlu1 %411 }
 0x215   :  { %v413_v1 = vmul.f32 0.0078125, %v412_v61 }
 0x217   :  { %v414_v4 = vadd.f32 1e-05, %v413_v1 }
 0x218   :  { %v628_v53 = vpop.xlane.xlu1 %627 }
 0x219   :  { %838 = vrsqrt.f32 %v414_v4  ;;  %v629_v7 = vmul.f32 0.0078125, %v628_v53 }
 0x21b   :  { %v630_v10 = vadd.f32 1e-05, %v629_v7 }
 0x21d   :  { %840 = vrsqrt.f32 %v630_v10 }
 0x226   :  { %v839_v23 = vpop.eup %838 }
 0x227   :  { %v416_v25 = vmul.f32 %v839_v23, %v1118_v40 }
 0x229   :  { %v650_v28 = vmul.f32 %v649_v2, %v416_v25 }
 0x22a   :  { %v841_v31 = vpop.eup %840 }
 0x22b   :  { %v651_v29 = vadd.f32 %v650_v28, %v647_v27  ;;  %v632_v34 = vmul.f32 %v841_v31, %v1116_v39 }
 0x22d   :  { %v655_v35 = vadd.f32 %v654_v33, %v651_v29  ;;  %v658_v36 = vmul.f32 %v657_v32, %v632_v34 }
 0x22f   :  { %v659_v37 = vadd.f32 %v658_v36, %v655_v35 }
 0x231   :  { %660 = vst [vmem:[%s1217_s13] sm:$0xf] %v659_v37 }
 0x232   :  { %665 = vsyncpa [#allocation3], 1 }

// kernel: network_forward.24
= control target key start
LH: loop header
LB: loop body
LE: loop exit
PB: predicated region body
PF: predicated region fallthrough
CT: control target
= control target key end

     0   :  { %v120_v0 = vmov 0.0   ;;  %vm121_vm0 = vmmov 0   ;;  %vm14_vm1 = vcmask 64512   ;;  %vm88_vm2 = vcmask 1043456   ;;  %s146_s0 = inlined_call_operand.vmem [shape: f32[8,128], index: 0, kind: input, shape index: {}]   ;;  %s147_s1 = inlined_call_operand.vmem [shape: f32[4,8], index: 1, kind: input, shape index: {}]   ;;  %s148_s2 = inlined_call_operand.vmem [shape: f32[4,128], index: 2, kind: output, shape index: {}]  }
   0x1   :  { %111 = vmatprep.subr.mxu0 %v120_v0  ;;  %v11_v1 = vld [vmem:[%s146_s0] sm:$0xff]  ;;  %113 = vmatprep.mubr.msk.f32.mxu0 %vm121_vm0, %v120_v0 }
   0x2   :  { %v12_v2 = vmax.f32 %v11_v1, 0.0  ;;  %v13_v3 = vld [vmem:[%s147_s1] sm:$0xf] }
   0x4   :  { %112 = vmatpush3.msra.mxu0 %v12_v2 }
   0x5   :  { %114 = vmatmul.mubr.msk.f32.vlgmr.msra.gmra.mxu0 %vm14_vm1, %v13_v3 }
  0xc5   :  { %v84_v4 = vpop.f32.mrf.mxu0 }
  0xc6   :  { %v89_v5 = vsel %vm88_vm2, %v84_v4, 0.0 }
  0xc7   :  { %90 = vadd.xlane.f32.xlu0 %v89_v5  ;;  %v115_v6 = vpop.f32.mrf.mxu0 }
 0x150   :  { %v91_v7 = vpop.xlane.xlu0 %90 }
 0x151   :  { %v93_v8 = vmul.f32 0.0078125, %v91_v7 }
 0x153   :  { %v94_v9 = vsub.f32 %v84_v4, %v93_v8 }
 0x155   :  { %v95_v10 = vmul.f32 %v94_v9, %v94_v9 }
 0x157   :  { %v96_v11 = vsel %vm88_vm2, %v95_v10, 0.0 }
 0x158   :  { %97 = vadd.xlane.f32.xlu0 %v96_v11 }
 0x1e1   :  { %v98_v12 = vpop.xlane.xlu0 %97 }
 0x1e2   :  { %v99_v13 = vmul.f32 0.0078125, %v98_v12 }
 0x1e4   :  { %v100_v14 = vadd.f32 1e-05, %v99_v13 }
 0x1e6   :  { %118 = vrsqrt.f32 %v100_v14 }
 0x1f3   :  { %v119_v15 = vpop.eup %118 }
 0x1f4   :  { %v102_v16 = vmul.f32 %v119_v15, %v94_v9 }
 0x1f6   :  { %103 = vst [vmem:[%s148_s2] sm:$0xf] %v102_v16 }

// kernel: network_forward.22
= control target key start
LH: loop header
LB: loop body
LE: loop exit
PB: predicated region body
PF: predicated region fallthrough
CT: control target
= control target key end

     0   :  { %s2217_s0 = inlined_call_operand.vmem [shape: f32[2304,128], index: 0, kind: input, shape index: {}]   ;;  %s2218_s1 = inlined_call_operand.vmem [shape: f32[8,2304], index: 1, kind: input, shape index: {}]   ;;  %s2219_s2 = inlined_call_operand.vmem [shape: f32[8,128], index: 2, kind: output, shape index: {}]  }
   0x1   :  { %v42_v0 = vld [vmem:[%s2217_s0 + $0xf8] sm:$0xff]  ;;  %v41_v4 = vld [vmem:[%s2217_s0 + $0xf0] sm:$0xff]  ;;  %v40_v8 = vld [vmem:[%s2217_s0 + $0xe8] sm:$0xff] }
   0x2   :  { %v74_v1 = vld [vmem:[%s2217_s0 + $0x1f8] sm:$0xff]  ;;  %964 = vmatprep.subr.mxu0 %v42_v0  ;;  %v73_v5 = vld [vmem:[%s2217_s0 + $0x1f0] sm:$0xff]  ;;  %v72_v9 = vld [vmem:[%s2217_s0 + $0x1e8] sm:$0xff] }
   0x3   :  { %v26_v2 = vld [vmem:[%s2217_s0 + $0x78] sm:$0xff]  ;;  %999 = vmatprep.subr.mxu1 %v74_v1  ;;  %v25_v6 = vld [vmem:[%s2217_s0 + $0x70] sm:$0xff]  ;;  %v24_v10 = vld [vmem:[%s2217_s0 + $0x68] sm:$0xff] }
   0x4   :  { %v58_v3 = vld [vmem:[%s2217_s0 + $0x178] sm:$0xff]  ;;  %965 = vmatpush3.msra.mxu0 %v26_v2  ;;  %v57_v7 = vld [vmem:[%s2217_s0 + $0x170] sm:$0xff]  ;;  %v56_v11 = vld [vmem:[%s2217_s0 + $0x168] sm:$0xff] }
   0x5   :  { %1000 = vmatpush3.msra.mxu1 %v58_v3  ;;  %966 = vmatprep.subr.mxu0 %v41_v4  ;;  %v39_v12 = vld [vmem:[%s2217_s0 + $0xe0] sm:$0xff]  ;;  %v38_v16 = vld [vmem:[%s2217_s0 + $0xd8] sm:$0xff]  ;;  %v37_v20 = vld [vmem:[%s2217_s0 + $0xd0] sm:$0xff] }
   0x6   :  { %1001 = vmatprep.subr.mxu1 %v73_v5  ;;  %967 = vmatpush3.msra.mxu0 %v25_v6  ;;  %v71_v13 = vld [vmem:[%s2217_s0 + $0x1e0] sm:$0xff]  ;;  %v70_v17 = vld [vmem:[%s2217_s0 + $0x1d8] sm:$0xff]  ;;  %v69_v21 = vld [vmem:[%s2217_s0 + $0x1d0] sm:$0xff] }
   0x7   :  { %1002 = vmatpush3.msra.mxu1 %v57_v7  ;;  %968 = vmatprep.subr.mxu0 %v40_v8  ;;  %v23_v14 = vld [vmem:[%s2217_s0 + $0x60] sm:$0xff]  ;;  %v22_v18 = vld [vmem:[%s2217_s0 + $0x58] sm:$0xff]  ;;  %v21_v22 = vld [vmem:[%s2217_s0 + $0x50] sm:$0xff] }
   0x8   :  { %1003 = vmatprep.subr.mxu1 %v72_v9  ;;  %v55_v15 = vld [vmem:[%s2217_s0 + $0x160] sm:$0xff]  ;;  %969 = vmatpush3.msra.mxu0 %v24_v10  ;;  %v54_v19 = vld [vmem:[%s2217_s0 + $0x158] sm:$0xff]  ;;  %v53_v23 = vld [vmem:[%s2217_s0 + $0x150] sm:$0xff] }
   0x9   :  { %1004 = vmatpush3.msra.mxu1 %v56_v11  ;;  %970 = vmatprep.subr.mxu0 %v39_v12  ;;  %v36_v24 = vld [vmem:[%s2217_s0 + $0xc8] sm:$0xff]  ;;  %v35_v28 = vld [vmem:[%s2217_s0 + $0xc0] sm:$0xff]  ;;  %v34_v32 = vld [vmem:[%s2217_s0 + $0xb8] sm:$0xff] }
   0xa   :  { %1005 = vmatprep.subr.mxu1 %v71_v13  ;;  %971 = vmatpush3.msra.mxu0 %v23_v14  ;;  %v68_v25 = vld [vmem:[%s2217_s0 + $0x1c8] sm:$0xff]  ;;  %v67_v29 = vld [vmem:[%s2217_s0 + $0x1c0] sm:$0xff]  ;;  %v66_v33 = vld [vmem:[%s2217_s0 + $0x1b8] sm:$0xff] }
   0xb   :  { %1006 = vmatpush3.msra.mxu1 %v55_v15  ;;  %972 = vmatprep.subr.mxu0 %v38_v16  ;;  %v20_v26 = vld [vmem:[%s2217_s0 + $0x48] sm:$0xff]  ;;  %v19_v30 = vld [vmem:[%s2217_s0 + $0x40] sm:$0xff]  ;;  %v18_v34 = vld [vmem:[%s2217_s0 + $0x38] sm:$0xff] }
   0xc   :  { %1007 = vmatprep.subr.mxu1 %v70_v17  ;;  %973 = vmatpush3.msra.mxu0 %v22_v18  ;;  %v52_v27 = vld [vmem:[%s2217_s0 + $0x148] sm:$0xff]  ;;  %v51_v31 = vld [vmem:[%s2217_s0 + $0x140] sm:$0xff]  ;;  %v50_v35 = vld [vmem:[%s2217_s0 + $0x138] sm:$0xff] }
   0xd   :  { %1008 = vmatpush3.msra.mxu1 %v54_v19  ;;  %974 = vmatprep.subr.mxu0 %v37_v20  ;;  %v33_v36 = vld [vmem:[%s2217_s0 + $0xb0] sm:$0xff]  ;;  %v32_v40 = vld [vmem:[%s2217_s0 + $0xa8] sm:$0xff]  ;;  %v31_v44 = vld [vmem:[%s2217_s0 + $0xa0] sm:$0xff] }
   0xe   :  { %1009 = vmatprep.subr.mxu1 %v69_v21  ;;  %975 = vmatpush3.msra.mxu0 %v21_v22  ;;  %v65_v37 = vld [vmem:[%s2217_s0 + $0x1b0] sm:$0xff]  ;;  %v64_v41 = vld [vmem:[%s2217_s0 + $0x1a8] sm:$0xff]  ;;  %v63_v45 = vld [vmem:[%s2217_s0 + $0x1a0] sm:$0xff] }
   0xf   :  { %1010 = vmatpush3.msra.mxu1 %v53_v23  ;;  %976 = vmatprep.subr.mxu0 %v36_v24  ;;  %v17_v38 = vld [vmem:[%s2217_s0 + $0x30] sm:$0xff]  ;;  %v16_v42 = vld [vmem:[%s2217_s0 + $0x28] sm:$0xff]  ;;  %v15_v46 = vld [vmem:[%s2217_s0 + $0x20] sm:$0xff] }
  0x10   :  { %1011 = vmatprep.subr.mxu1 %v68_v25  ;;  %977 = vmatpush3.msra.mxu0 %v20_v26  ;;  %v49_v39 = vld [vmem:[%s2217_s0 + $0x130] sm:$0xff]  ;;  %v48_v43 = vld [vmem:[%s2217_s0 + $0x128] sm:$0xff]  ;;  %v47_v47 = vld [vmem:[%s2217_s0 + $0x120] sm:$0xff] }
  0x11   :  { %1012 = vmatpush3.msra.mxu1 %v52_v27  ;;  %978 = vmatprep.subr.mxu0 %v35_v28  ;;  %v30_v48 = vld [vmem:[%s2217_s0 + $0x98] sm:$0xff]  ;;  %v29_v52 = vld [vmem:[%s2217_s0 + $0x90] sm:$0xff]  ;;  %v28_v56 = vld [vmem:[%s2217_s0 + $0x88] sm:$0xff] }
  0x12   :  { %1013 = vmatprep.subr.mxu1 %v67_v29  ;;  %979 = vmatpush3.msra.mxu0 %v19_v30  ;;  %v62_v49 = vld [vmem:[%s2217_s0 + $0x198] sm:$0xff]  ;;  %v61_v53 = vld [vmem:[%s2217_s0 + $0x190] sm:$0xff]  ;;  %v60_v57 = vld [vmem:[%s2217_s0 + $0x188] sm:$0xff] }
  0x13   :  { %1014 = vmatpush3.msra.mxu1 %v51_v31  ;;  %980 = vmatprep.subr.mxu0 %v34_v32  ;;  %v14_v50 = vld [vmem:[%s2217_s0 + $0x18] sm:$0xff]  ;;  %v13_v54 = vld [vmem:[%s2217_s0 + $0x10] sm:$0xff]  ;;  %v12_v58 = vld [vmem:[%s2217_s0 + $0x8] sm:$0xff] }
  0x14   :  { %1015 = vmatprep.subr.mxu1 %v66_v33  ;;  %981 = vmatpush3.msra.mxu0 %v18_v34  ;;  %v46_v51 = vld [vmem:[%s2217_s0 + $0x118] sm:$0xff]  ;;  %v45_v55 = vld [vmem:[%s2217_s0 + $0x110] sm:$0xff]  ;;  %v44_v59 = vld [vmem:[%s2217_s0 + $0x108] sm:$0xff] }
  0x15   :  { %1016 = vmatpush3.msra.mxu1 %v50_v35  ;;  %982 = vmatprep.subr.mxu0 %v33_v36  ;;  %v27_v60 = vld [vmem:[%s2217_s0 + $0x80] sm:$0xff]  ;;  %v300_v63 = vld [vmem:[%s2218_s1 + $0x8] sm:$0xff]  ;;  %v302_v1 = vld [vmem:[%s2218_s1 + $0x18] sm:$0xff] }
  0x16   :  { %1017 = vmatprep.subr.mxu1 %v65_v37  ;;  %983 = vmatpush3.msra.mxu0 %v17_v38  ;;  %v59_v61 = vld [vmem:[%s2217_s0 + $0x180] sm:$0xff]  ;;  %v301_v3 = vld [vmem:[%s2218_s1 + $0x10] sm:$0xff]  ;;  %v106_v4 = vld [vmem:[%s2217_s0 + $0x2f8] sm:$0xff] }
  0x17   :  { %1018 = vmatpush3.msra.mxu1 %v49_v39  ;;  %984 = vmatprep.subr.mxu0 %v32_v40  ;;  %v11_v62 = vld [vmem:[%s2217_s0] sm:$0xff]  ;;  %v138_v5 = vld [vmem:[%s2217_s0 + $0x3f8] sm:$0xff]  ;;  %v105_v8 = vld [vmem:[%s2217_s0 + $0x2f0] sm:$0xff] }
  0x18   :  { %1019 = vmatprep.subr.mxu1 %v64_v41  ;;  %985 = vmatpush3.msra.mxu0 %v16_v42  ;;  %v43_v0 = vld [vmem:[%s2217_s0 + $0x100] sm:$0xff]  ;;  %v90_v6 = vld [vmem:[%s2217_s0 + $0x278] sm:$0xff]  ;;  %v137_v9 = vld [vmem:[%s2217_s0 + $0x3f0] sm:$0xff] }
  0x19   :  { %1020 = vmatpush3.msra.mxu1 %v48_v43  ;;  %986 = vmatprep.subr.mxu0 %v31_v44  ;;  %v299_v2 = vld [vmem:[%s2218_s1] sm:$0xff]  ;;  %v122_v7 = vld [vmem:[%s2217_s0 + $0x378] sm:$0xff]  ;;  %v89_v10 = vld [vmem:[%s2217_s0 + $0x270] sm:$0xff] }
  0x1a   :  { %1021 = vmatprep.subr.mxu1 %v63_v45  ;;  %987 = vmatpush3.msra.mxu0 %v15_v46  ;;  %v121_v11 = vld [vmem:[%s2217_s0 + $0x370] sm:$0xff]  ;;  %v104_v12 = vld [vmem:[%s2217_s0 + $0x2e8] sm:$0xff]  ;;  %v103_v16 = vld [vmem:[%s2217_s0 + $0x2e0] sm:$0xff] }
  0x1b   :  { %1022 = vmatpush3.msra.mxu1 %v47_v47  ;;  %988 = vmatprep.subr.mxu0 %v30_v48  ;;  %v136_v13 = vld [vmem:[%s2217_s0 + $0x3e8] sm:$0xff]  ;;  %v135_v17 = vld [vmem:[%s2217_s0 + $0x3e0] sm:$0xff]  ;;  %v102_v20 = vld [vmem:[%s2217_s0 + $0x2d8] sm:$0xff] }
  0x1c   :  { %1023 = vmatprep.subr.mxu1 %v62_v49  ;;  %989 = vmatpush3.msra.mxu0 %v14_v50  ;;  %v88_v14 = vld [vmem:[%s2217_s0 + $0x268] sm:$0xff]  ;;  %v87_v18 = vld [vmem:[%s2217_s0 + $0x260] sm:$0xff]  ;;  %v134_v21 = vld [vmem:[%s2217_s0 + $0x3d8] sm:$0xff] }
  0x1d   :  { %1024 = vmatpush3.msra.mxu1 %v46_v51  ;;  %990 = vmatprep.subr.mxu0 %v29_v52  ;;  %v120_v15 = vld [vmem:[%s2217_s0 + $0x368] sm:$0xff]  ;;  %v119_v19 = vld [vmem:[%s2217_s0 + $0x360] sm:$0xff]  ;;  %v86_v22 = vld [vmem:[%s2217_s0 + $0x258] sm:$0xff] }
  0x1e   :  { %1025 = vmatprep.subr.mxu1 %v61_v53  ;;  %991 = vmatpush3.msra.mxu0 %v13_v54  ;;  %v118_v23 = vld [vmem:[%s2217_s0 + $0x358] sm:$0xff]  ;;  %v101_v24 = vld [vmem:[%s2217_s0 + $0x2d0] sm:$0xff]  ;;  %v100_v28 = vld [vmem:[%s2217_s0 + $0x2c8] sm:$0xff] }
  0x1f   :  { %1026 = vmatpush3.msra.mxu1 %v45_v55  ;;  %992 = vmatprep.subr.mxu0 %v28_v56  ;;  %v133_v25 = vld [vmem:[%s2217_s0 + $0x3d0] sm:$0xff]  ;;  %v132_v29 = vld [vmem:[%s2217_s0 + $0x3c8] sm:$0xff]  ;;  %v99_v32 = vld [vmem:[%s2217_s0 + $0x2c0] sm:$0xff] }
  0x20   :  { %1027 = vmatprep.subr.mxu1 %v60_v57  ;;  %993 = vmatpush3.msra.mxu0 %v12_v58  ;;  %v85_v26 = vld [vmem:[%s2217_s0 + $0x250] sm:$0xff]  ;;  %v84_v30 = vld [vmem:[%s2217_s0 + $0x248] sm:$0xff]  ;;  %v131_v33 = vld [vmem:[%s2217_s0 + $0x3c0] sm:$0xff] }
  0x21   :  { %1028 = vmatpush3.msra.mxu1 %v44_v59  ;;  %994 = vmatprep.subr.mxu0 %v27_v60  ;;  %v117_v27 = vld [vmem:[%s2217_s0 + $0x350] sm:$0xff]  ;;  %v116_v31 = vld [vmem:[%s2217_s0 + $0x348] sm:$0xff]  ;;  %v83_v34 = vld [vmem:[%s2217_s0 + $0x240] sm:$0xff] }
  0x22   :  { %1029 = vmatprep.subr.mxu1 %v59_v61  ;;  %995 = vmatpush3.msra.mxu0 %v11_v62  ;;  %v115_v35 = vld [vmem:[%s2217_s0 + $0x340] sm:$0xff]  ;;  %v98_v36 = vld [vmem:[%s2217_s0 + $0x2b8] sm:$0xff]  ;;  %v97_v40 = vld [vmem:[%s2217_s0 + $0x2b0] sm:$0xff] }
  0x23   :  { %381 = vmatprep.mubr.f32.mxu0 %v300_v63  ;;  %1030 = vmatpush3.msra.mxu1 %v43_v0  ;;  %v130_v37 = vld [vmem:[%s2217_s0 + $0x3b8] sm:$0xff]  ;;  %v129_v41 = vld [vmem:[%s2217_s0 + $0x3b0] sm:$0xff]  ;;  %v96_v44 = vld [vmem:[%s2217_s0 + $0x2a8] sm:$0xff] }
  0x24   :  { %451 = vmatprep.mubr.f32.mxu1 %v302_v1  ;;  %382 = vmatmul.mubr.f32.vlgmr.msra.gmra.mxu0 %v299_v2  ;;  %v82_v38 = vld [vmem:[%s2217_s0 + $0x238] sm:$0xff]  ;;  %v81_v42 = vld [vmem:[%s2217_s0 + $0x230] sm:$0xff]  ;;  %v128_v45 = vld [vmem:[%s2217_s0 + $0x3a8] sm:$0xff] }
  0x25   :  { %452 = vmatmul.mubr.f32.vlgmr.msra.gmra.mxu1 %v301_v3  ;;  %1034 = vmatprep.subr.mxu0 %v106_v4  ;;  %v114_v39 = vld [vmem:[%s2217_s0 + $0x338] sm:$0xff]  ;;  %v113_v43 = vld [vmem:[%s2217_s0 + $0x330] sm:$0xff]  ;;  %v80_v46 = vld [vmem:[%s2217_s0 + $0x228] sm:$0xff] }
  0x26   :  { %1069 = vmatprep.subr.mxu1 %v138_v5  ;;  %1035 = vmatpush3.msra.mxu0 %v90_v6  ;;  %v112_v47 = vld [vmem:[%s2217_s0 + $0x328] sm:$0xff]  ;;  %v95_v48 = vld [vmem:[%s2217_s0 + $0x2a0] sm:$0xff]  ;;  %v94_v52 = vld [vmem:[%s2217_s0 + $0x298] sm:$0xff] }
  0x27   :  { %1070 = vmatpush3.msra.mxu1 %v122_v7  ;;  %1036 = vmatprep.subr.mxu0 %v105_v8  ;;  %v127_v49 = vld [vmem:[%s2217_s0 + $0x3a0] sm:$0xff]  ;;  %v126_v53 = vld [vmem:[%s2217_s0 + $0x398] sm:$0xff]  ;;  %v93_v56 = vld [vmem:[%s2217_s0 + $0x290] sm:$0xff] }
  0x28   :  { %1071 = vmatprep.subr.mxu1 %v137_v9  ;;  %1037 = vmatpush3.msra.mxu0 %v89_v10  ;;  %v79_v50 = vld [vmem:[%s2217_s0 + $0x220] sm:$0xff]  ;;  %v78_v54 = vld [vmem:[%s2217_s0 + $0x218] sm:$0xff]  ;;  %v125_v57 = vld [vmem:[%s2217_s0 + $0x390] sm:$0xff] }
  0x29   :  { %1072 = vmatpush3.msra.mxu1 %v121_v11  ;;  %1038 = vmatprep.subr.mxu0 %v104_v12  ;;  %v111_v51 = vld [vmem:[%s2217_s0 + $0x320] sm:$0xff]  ;;  %v110_v55 = vld [vmem:[%s2217_s0 + $0x318] sm:$0xff]  ;;  %v77_v58 = vld [vmem:[%s2217_s0 + $0x210] sm:$0xff] }
  0x2a   :  { %1073 = vmatprep.subr.mxu1 %v136_v13  ;;  %1039 = vmatpush3.msra.mxu0 %v88_v14  ;;  %v109_v59 = vld [vmem:[%s2217_s0 + $0x310] sm:$0xff]  ;;  %v92_v60 = vld [vmem:[%s2217_s0 + $0x288] sm:$0xff]  ;;  %v91_v0 = vld [vmem:[%s2217_s0 + $0x280] sm:$0xff] }
  0x2b   :  { %1074 = vmatpush3.msra.mxu1 %v120_v15  ;;  %1040 = vmatprep.subr.mxu0 %v103_v16  ;;  %v124_v61 = vld [vmem:[%s2217_s0 + $0x388] sm:$0xff]  ;;  %v75_v2 = vld [vmem:[%s2217_s0 + $0x200] sm:$0xff]  ;;  %v170_v5 = vld [vmem:[%s2217_s0 + $0x4f8] sm:$0xff] }
  0x2c   :  { %1075 = vmatprep.subr.mxu1 %v135_v17  ;;  %1041 = vmatpush3.msra.mxu0 %v87_v18  ;;  %v76_v62 = vld [vmem:[%s2217_s0 + $0x208] sm:$0xff]  ;;  %v123_v3 = vld [vmem:[%s2217_s0 + $0x380] sm:$0xff]  ;;  %v306_v7 = vld [vmem:[%s2218_s1 + $0x38] sm:$0xff] }
  0x2d   :  { %1076 = vmatpush3.msra.mxu1 %v119_v19  ;;  %1042 = vmatprep.subr.mxu0 %v102_v20  ;;  %v304_v63 = vld [vmem:[%s2218_s1 + $0x28] sm:$0xff]  ;;  %v303_v4 = vld [vmem:[%s2218_s1 + $0x20] sm:$0xff]  ;;  %v154_v8 = vld [vmem:[%s2217_s0 + $0x478] sm:$0xff] }
  0x2e   :  { %1077 = vmatprep.subr.mxu1 %v134_v21  ;;  %1043 = vmatpush3.msra.mxu0 %v86_v22  ;;  %v108_v1 = vld [vmem:[%s2217_s0 + $0x308] sm:$0xff]  ;;  %v107_v6 = vld [vmem:[%s2217_s0 + $0x300] sm:$0xff]  ;;  %v305_v9 = vld [vmem:[%s2218_s1 + $0x30] sm:$0xff] }
  0x2f   :  { %1078 = vmatpush3.msra.mxu1 %v118_v23  ;;  %1044 = vmatprep.subr.mxu0 %v101_v24  ;;  %v169_v10 = vld [vmem:[%s2217_s0 + $0x4f0] sm:$0xff]  ;;  %v202_v11 = vld [vmem:[%s2217_s0 + $0x5f8] sm:$0xff]  ;;  %v168_v14 = vld [vmem:[%s2217_s0 + $0x4e8] sm:$0xff] }
  0x30   :  { %1079 = vmatprep.subr.mxu1 %v133_v25  ;;  %1045 = vmatpush3.msra.mxu0 %v85_v26  ;;  %v153_v12 = vld [vmem:[%s2217_s0 + $0x470] sm:$0xff]  ;;  %v186_v13 = vld [vmem:[%s2217_s0 + $0x578] sm:$0xff]  ;;  %v152_v16 = vld [vmem:[%s2217_s0 + $0x468] sm:$0xff] }
  0x31   :  { %1080 = vmatpush3.msra.mxu1 %v117_v27  ;;  %1046 = vmatprep.subr.mxu0 %v100_v28  ;;  %v201_v15 = vld [vmem:[%s2217_s0 + $0x5f0] sm:$0xff]  ;;  %v167_v18 = vld [vmem:[%s2217_s0 + $0x4e0] sm:$0xff]  ;;  %v200_v19 = vld [vmem:[%s2217_s0 + $0x5e8] sm:$0xff] }
  0x32   :  { %1081 = vmatprep.subr.mxu1 %v132_v29  ;;  %1047 = vmatpush3.msra.mxu0 %v84_v30  ;;  %v185_v17 = vld [vmem:[%s2217_s0 + $0x570] sm:$0xff]  ;;  %v151_v20 = vld [vmem:[%s2217_s0 + $0x460] sm:$0xff]  ;;  %v184_v21 = vld [vmem:[%s2217_s0 + $0x568] sm:$0xff] }
  0x33   :  { %1082 = vmatpush3.msra.mxu1 %v116_v31  ;;  %1048 = vmatprep.subr.mxu0 %v99_v32  ;;  %v166_v22 = vld [vmem:[%s2217_s0 + $0x4d8] sm:$0xff]  ;;  %v199_v23 = vld [vmem:[%s2217_s0 + $0x5e0] sm:$0xff]  ;;  %v165_v26 = vld [vmem:[%s2217_s0 + $0x4d0] sm:$0xff] }
  0x34   :  { %1083 = vmatprep.subr.mxu1 %v131_v33  ;;  %1049 = vmatpush3.msra.mxu0 %v83_v34  ;;  %v150_v24 = vld [vmem:[%s2217_s0 + $0x458] sm:$0xff]  ;;  %v183_v25 = vld [vmem:[%s2217_s0 + $0x560] sm:$0xff]  ;;  %v149_v28 = vld [vmem:[%s2217_s0 + $0x450] sm:$0xff] }
  0x35   :  { %1084 = vmatpush3.msra.mxu1 %v115_v35  ;;  %1050 = vmatprep.subr.mxu0 %v98_v36  ;;  %v198_v27 = vld [vmem:[%s2217_s0 + $0x5d8] sm:$0xff]  ;;  %v164_v30 = vld [vmem:[%s2217_s0 + $0x4c8] sm:$0xff]  ;;  %v197_v31 = vld [vmem:[%s2217_s0 + $0x5d0] sm:$0xff] }
  0x36   :  { %1085 = vmatprep.subr.mxu1 %v130_v37  ;;  %1051 = vmatpush3.msra.mxu0 %v82_v38  ;;  %v182_v29 = vld [vmem:[%s2217_s0 + $0x558] sm:$0xff]  ;;  %v148_v32 = vld [vmem:[%s2217_s0 + $0x448] sm:$0xff]  ;;  %v181_v33 = vld [vmem:[%s2217_s0 + $0x550] sm:$0xff] }
  0x37   :  { %1086 = vmatpush3.msra.mxu1 %v114_v39  ;;  %1052 = vmatprep.subr.mxu0 %v97_v40  ;;  %v163_v34 = vld [vmem:[%s2217_s0 + $0x4c0] sm:$0xff]  ;;  %v196_v35 = vld [vmem:[%s2217_s0 + $0x5c8] sm:$0xff]  ;;  %v162_v38 = vld [vmem:[%s2217_s0 + $0x4b8] sm:$0xff] }
  0x38   :  { %1087 = vmatprep.subr.mxu1 %v129_v41  ;;  %1053 = vmatpush3.msra.mxu0 %v81_v42  ;;  %v147_v36 = vld [vmem:[%s2217_s0 + $0x440] sm:$0xff]  ;;  %v180_v37 = vld [vmem:[%s2217_s0 + $0x548] sm:$0xff]  ;;  %v146_v40 = vld [vmem:[%s2217_s0 + $0x438] sm:$0xff] }
  0x39   :  { %1088 = vmatpush3.msra.mxu1 %v113_v43  ;;  %1054 = vmatprep.subr.mxu0 %v96_v44  ;;  %v195_v39 = vld [vmem:[%s2217_s0 + $0x5c0] sm:$0xff]  ;;  %v161_v42 = vld [vmem:[%s2217_s0 + $0x4b0] sm:$0xff]  ;;  %v194_v43 = vld [vmem:[%s2217_s0 + $0x5b8] sm:$0xff] }
  0x3a   :  { %1089 = vmatprep.subr.mxu1 %v128_v45  ;;  %1055 = vmatpush3.msra.mxu0 %v80_v46  ;;  %v179_v41 = vld [vmem:[%s2217_s0 + $0x540] sm:$0xff]  ;;  %v145_v44 = vld [vmem:[%s2217_s0 + $0x430] sm:$0xff]  ;;  %v178_v45 = vld [vmem:[%s2217_s0 + $0x538] sm:$0xff] }
  0x3b   :  { %1090 = vmatpush3.msra.mxu1 %v112_v47  ;;  %1056 = vmatprep.subr.mxu0 %v95_v48  ;;  %v160_v46 = vld [vmem:[%s2217_s0 + $0x4a8] sm:$0xff]  ;;  %v193_v47 = vld [vmem:[%s2217_s0 + $0x5b0] sm:$0xff] }
  0x3c   :  { %1091 = vmatprep.subr.mxu1 %v127_v49  ;;  %1057 = vmatpush3.msra.mxu0 %v79_v50  ;;  %v144_v48 = vld [vmem:[%s2217_s0 + $0x428] sm:$0xff]  ;;  %v177_v49 = vld [vmem:[%s2217_s0 + $0x530] sm:$0xff]  ;;  %v159_v50 = vld [vmem:[%s2217_s0 + $0x4a0] sm:$0xff] }
  0x3d   :  { %1092 = vmatpush3.msra.mxu1 %v111_v51  ;;  %1058 = vmatprep.subr.mxu0 %v94_v52  ;;  %v192_v51 = vld [vmem:[%s2217_s0 + $0x5a8] sm:$0xff]  ;;  %v143_v52 = vld [vmem:[%s2217_s0 + $0x420] sm:$0xff] }
  0x3e   :  { %1093 = vmatprep.subr.mxu1 %v126_v53  ;;  %1059 = vmatpush3.msra.mxu0 %v78_v54  ;;  %v176_v53 = vld [vmem:[%s2217_s0 + $0x528] sm:$0xff]  ;;  %v158_v54 = vld [vmem:[%s2217_s0 + $0x498] sm:$0xff] }
  0x3f   :  { %1094 = vmatpush3.msra.mxu1 %v110_v55  ;;  %1060 = vmatprep.subr.mxu0 %v93_v56  ;;  %v191_v55 = vld [vmem:[%s2217_s0 + $0x5a0] sm:$0xff]  ;;  %v142_v56 = vld [vmem:[%s2217_s0 + $0x418] sm:$0xff] }
  0x40   :  { %1095 = vmatprep.subr.mxu1 %v125_v57  ;;  %1061 = vmatpush3.msra.mxu0 %v77_v58  ;;  %v175_v57 = vld [vmem:[%s2217_s0 + $0x520] sm:$0xff]  ;;  %v157_v58 = vld [vmem:[%s2217_s0 + $0x490] sm:$0xff] }
  0x41   :  { %1096 = vmatpush3.msra.mxu1 %v109_v59  ;;  %1062 = vmatprep.subr.mxu0 %v92_v60  ;;  %v190_v59 = vld [vmem:[%s2217_s0 + $0x598] sm:$0xff]  ;;  %v141_v60 = vld [vmem:[%s2217_s0 + $0x410] sm:$0xff] }
  0x42   :  { %1097 = vmatprep.subr.mxu1 %v124_v61  ;;  %1063 = vmatpush3.msra.mxu0 %v76_v62  ;;  %v174_v61 = vld [vmem:[%s2217_s0 + $0x518] sm:$0xff]  ;;  %v156_v62 = vld [vmem:[%s2217_s0 + $0x488] sm:$0xff] }
  0x43   :  { %521 = vmatprep.mubr.f32.mxu0 %v304_v63  ;;  %1064 = vmatprep.subr.mxu0 %v91_v0  ;;  %v189_v63 = vld [vmem:[%s2217_s0 + $0x590] sm:$0xff]  ;;  %v140_v0 = vld [vmem:[%s2217_s0 + $0x408] sm:$0xff] }
  0x44   :  { %1098 = vmatpush3.msra.mxu1 %v108_v1  ;;  %1065 = vmatpush3.msra.mxu0 %v75_v2  ;;  %v173_v1 = vld [vmem:[%s2217_s0 + $0x510] sm:$0xff]  ;;  %v155_v2 = vld [vmem:[%s2217_s0 + $0x480] sm:$0xff] }
  0x45   :  { %1099 = vmatprep.subr.mxu1 %v123_v3  ;;  %522 = vmatmul.mubr.f32.vlgmr.msra.gmra.mxu0 %v303_v4  ;;  %v188_v3 = vld [vmem:[%s2217_s0 + $0x588] sm:$0xff]  ;;  %v139_v4 = vld [vmem:[%s2217_s0 + $0x400] sm:$0xff] }
  0x46   :  { %1104 = vmatprep.subr.mxu0 %v170_v5  ;;  %1100 = vmatpush3.msra.mxu1 %v107_v6  ;;  %v308_v5 = vld [vmem:[%s2218_s1 + $0x48] sm:$0xff] }
  0x47   :  { %591 = vmatprep.mubr.f32.mxu1 %v306_v7  ;;  %1105 = vmatpush3.msra.mxu0 %v154_v8  ;;  %v172_v6 = vld [vmem:[%s2217_s0 + $0x508] sm:$0xff]  ;;  %v307_v7 = vld [vmem:[%s2218_s1 + $0x40] sm:$0xff] }
  0x48   :  { %592 = vmatmul.mubr.f32.vlgmr.msra.gmra.mxu1 %v305_v9  ;;  %1106 = vmatprep.subr.mxu0 %v169_v10  ;;  %v187_v8 = vld [vmem:[%s2217_s0 + $0x580] sm:$0xff]  ;;  %v234_v9 = vld [vmem:[%s2217_s0 + $0x6f8] sm:$0xff] }
  0x49   :  { %1139 = vmatprep.subr.mxu1 %v202_v11  ;;  %1107 = vmatpush3.msra.mxu0 %v153_v12  ;;  %v171_v10 = vld [vmem:[%s2217_s0 + $0x500] sm:$0xff]  ;;  %v310_v11 = vld [vmem:[%s2218_s1 + $0x58] sm:$0xff] }
  0x4a   :  { %1140 = vmatpush3.msra.mxu1 %v186_v13  ;;  %1108 = vmatprep.subr.mxu0 %v168_v14  ;;  %v218_v12 = vld [vmem:[%s2217_s0 + $0x678] sm:$0xff]  ;;  %v309_v13 = vld [vmem:[%s2218_s1 + $0x50] sm:$0xff] }
  0x4b   :  { %1141 = vmatprep.subr.mxu1 %v201_v15  ;;  %1109 = vmatpush3.msra.mxu0 %v152_v16  ;;  %v233_v14 = vld [vmem:[%s2217_s0 + $0x6f0] sm:$0xff]  ;;  %v266_v15 = vld [vmem:[%s2217_s0 + $0x7f8] sm:$0xff] }
  0x4c   :  { %1142 = vmatpush3.msra.mxu1 %v185_v17  ;;  %1110 = vmatprep.subr.mxu0 %v167_v18  ;;  %v217_v16 = vld [vmem:[%s2217_s0 + $0x670] sm:$0xff]  ;;  %v250_v17 = vld [vmem:[%s2217_s0 + $0x778] sm:$0xff]  ;;  %v232_v18 = vld [vmem:[%s2217_s0 + $0x6e8] sm:$0xff] }
  0x4d   :  { %1143 = vmatprep.subr.mxu1 %v200_v19  ;;  %1111 = vmatpush3.msra.mxu0 %v151_v20  ;;  %v265_v19 = vld [vmem:[%s2217_s0 + $0x7f0] sm:$0xff]  ;;  %v216_v20 = vld [vmem:[%s2217_s0 + $0x668] sm:$0xff] }
  0x4e   :  { %1144 = vmatpush3.msra.mxu1 %v184_v21  ;;  %1112 = vmatprep.subr.mxu0 %v166_v22  ;;  %v249_v21 = vld [vmem:[%s2217_s0 + $0x770] sm:$0xff]  ;;  %v231_v22 = vld [vmem:[%s2217_s0 + $0x6e0] sm:$0xff] }
  0x4f   :  { %1145 = vmatprep.subr.mxu1 %v199_v23  ;;  %1113 = vmatpush3.msra.mxu0 %v150_v24  ;;  %v264_v23 = vld [vmem:[%s2217_s0 + $0x7e8] sm:$0xff]  ;;  %v215_v24 = vld [vmem:[%s2217_s0 + $0x660] sm:$0xff] }
  0x50   :  { %1146 = vmatpush3.msra.mxu1 %v183_v25  ;;  %1114 = vmatprep.subr.mxu0 %v165_v26  ;;  %v248_v25 = vld [vmem:[%s2217_s0 + $0x768] sm:$0xff]  ;;  %v230_v26 = vld [vmem:[%s2217_s0 + $0x6d8] sm:$0xff] }
  0x51   :  { %1147 = vmatprep.subr.mxu1 %v198_v27  ;;  %1115 = vmatpush3.msra.mxu0 %v149_v28  ;;  %v263_v27 = vld [vmem:[%s2217_s0 + $0x7e0] sm:$0xff]  ;;  %v214_v28 = vld [vmem:[%s2217_s0 + $0x658] sm:$0xff] }
  0x52   :  { %1148 = vmatpush3.msra.mxu1 %v182_v29  ;;  %1116 = vmatprep.subr.mxu0 %v164_v30  ;;  %v247_v29 = vld [vmem:[%s2217_s0 + $0x760] sm:$0xff]  ;;  %v229_v30 = vld [vmem:[%s2217_s0 + $0x6d0] sm:$0xff] }
  0x53   :  { %1149 = vmatprep.subr.mxu1 %v197_v31  ;;  %1117 = vmatpush3.msra.mxu0 %v148_v32  ;;  %v262_v31 = vld [vmem:[%s2217_s0 + $0x7d8] sm:$0xff]  ;;  %v213_v32 = vld [vmem:[%s2217_s0 + $0x650] sm:$0xff] }
  0x54   :  { %1150 = vmatpush3.msra.mxu1 %v181_v33  ;;  %1118 = vmatprep.subr.mxu0 %v163_v34  ;;  %v246_v33 = vld [vmem:[%s2217_s0 + $0x758] sm:$0xff]  ;;  %v228_v34 = vld [vmem:[%s2217_s0 + $0x6c8] sm:$0xff] }
  0x55   :  { %1151 = vmatprep.subr.mxu1 %v196_v35  ;;  %1119 = vmatpush3.msra.mxu0 %v147_v36  ;;  %v261_v35 = vld [vmem:[%s2217_s0 + $0x7d0] sm:$0xff]  ;;  %v212_v36 = vld [vmem:[%s2217_s0 + $0x648] sm:$0xff] }
  0x56   :  { %1152 = vmatpush3.msra.mxu1 %v180_v37  ;;  %1120 = vmatprep.subr.mxu0 %v162_v38  ;;  %v245_v37 = vld [vmem:[%s2217_s0 + $0x750] sm:$0xff]  ;;  %v227_v38 = vld [vmem:[%s2217_s0 + $0x6c0] sm:$0xff] }
  0x57   :  { %1153 = vmatprep.subr.mxu1 %v195_v39  ;;  %1121 = vmatpush3.msra.mxu0 %v146_v40  ;;  %v260_v39 = vld [vmem:[%s2217_s0 + $0x7c8] sm:$0xff]  ;;  %v211_v40 = vld [vmem:[%s2217_s0 + $0x640] sm:$0xff] }
  0x58   :  { %1154 = vmatpush3.msra.mxu1 %v179_v41  ;;  %1122 = vmatprep.subr.mxu0 %v161_v42  ;;  %v244_v41 = vld [vmem:[%s2217_s0 + $0x748] sm:$0xff]  ;;  %v226_v42 = vld [vmem:[%s2217_s0 + $0x6b8] sm:$0xff] }
  0x59   :  { %1155 = vmatprep.subr.mxu1 %v194_v43  ;;  %1123 = vmatpush3.msra.mxu0 %v145_v44  ;;  %v259_v43 = vld [vmem:[%s2217_s0 + $0x7c0] sm:$0xff]  ;;  %v210_v44 = vld [vmem:[%s2217_s0 + $0x638] sm:$0xff] }
  0x5a   :  { %1156 = vmatpush3.msra.mxu1 %v178_v45  ;;  %1124 = vmatprep.subr.mxu0 %v160_v46  ;;  %v243_v45 = vld [vmem:[%s2217_s0 + $0x740] sm:$0xff]  ;;  %v225_v46 = vld [vmem:[%s2217_s0 + $0x6b0] sm:$0xff] }
  0x5b   :  { %1157 = vmatprep.subr.mxu1 %v193_v47  ;;  %1125 = vmatpush3.msra.mxu0 %v144_v48  ;;  %v258_v47 = vld [vmem:[%s2217_s0 + $0x7b8] sm:$0xff]  ;;  %v209_v48 = vld [vmem:[%s2217_s0 + $0x630] sm:$0xff] }
  0x5c   :  { %1158 = vmatpush3.msra.mxu1 %v177_v49  ;;  %1126 = vmatprep.subr.mxu0 %v159_v50  ;;  %v242_v49 = vld [vmem:[%s2217_s0 + $0x738] sm:$0xff]  ;;  %v224_v50 = vld [vmem:[%s2217_s0 + $0x6a8] sm:$0xff] }
  0x5d   :  { %1159 = vmatprep.subr.mxu1 %v192_v51  ;;  %1127 = vmatpush3.msra.mxu0 %v143_v52  ;;  %v257_v51 = vld [vmem:[%s2217_s0 + $0x7b0] sm:$0xff]  ;;  %v208_v52 = vld [vmem:[%s2217_s0 + $0x628] sm:$0xff] }
  0x5e   :  { %1160 = vmatpush3.msra.mxu1 %v176_v53  ;;  %1128 = vmatprep.subr.mxu0 %v158_v54  ;;  %v241_v53 = vld [vmem:[%s2217_s0 + $0x730] sm:$0xff]  ;;  %v223_v54 = vld [vmem:[%s2217_s0 + $0x6a0] sm:$0xff] }
  0x5f   :  { %1161 = vmatprep.subr.mxu1 %v191_v55  ;;  %1129 = vmatpush3.msra.mxu0 %v142_v56  ;;  %v256_v55 = vld [vmem:[%s2217_s0 + $0x7a8] sm:$0xff]  ;;  %v207_v56 = vld [vmem:[%s2217_s0 + $0x620] sm:$0xff] }
  0x60   :  { %1162 = vmatpush3.msra.mxu1 %v175_v57  ;;  %1130 = vmatprep.subr.mxu0 %v157_v58  ;;  %v240_v57 = vld [vmem:[%s2217_s0 + $0x728] sm:$0xff]  ;;  %v222_v58 = vld [vmem:[%s2217_s0 + $0x698] sm:$0xff] }
  0x61   :  { %1163 = vmatprep.subr.mxu1 %v190_v59  ;;  %1131 = vmatpush3.msra.mxu0 %v141_v60  ;;  %v255_v59 = vld [vmem:[%s2217_s0 + $0x7a0] sm:$0xff]  ;;  %v206_v60 = vld [vmem:[%s2217_s0 + $0x618] sm:$0xff] }
  0x62   :  { %1164 = vmatpush3.msra.mxu1 %v174_v61  ;;  %1132 = vmatprep.subr.mxu0 %v156_v62  ;;  %v239_v61 = vld [vmem:[%s2217_s0 + $0x720] sm:$0xff]  ;;  %v221_v62 = vld [vmem:[%s2217_s0 + $0x690] sm:$0xff] }
  0x63   :  { %1165 = vmatprep.subr.mxu1 %v189_v63  ;;  %1133 = vmatpush3.msra.mxu0 %v140_v0  ;;  %v254_v63 = vld [vmem:[%s2217_s0 + $0x798] sm:$0xff]  ;;  %v205_v0 = vld [vmem:[%s2217_s0 + $0x610] sm:$0xff] }
  0x64   :  { %1166 = vmatpush3.msra.mxu1 %v173_v1  ;;  %1134 = vmatprep.subr.mxu0 %v155_v2  ;;  %v238_v1 = vld [vmem:[%s2217_s0 + $0x718] sm:$0xff]  ;;  %v220_v2 = vld [vmem:[%s2217_s0 + $0x688] sm:$0xff] }
  0x65   :  { %1167 = vmatprep.subr.mxu1 %v188_v3  ;;  %1135 = vmatpush3.msra.mxu0 %v139_v4  ;;  %v253_v3 = vld [vmem:[%s2217_s0 + $0x790] sm:$0xff]  ;;  %v204_v4 = vld [vmem:[%s2217_s0 + $0x608] sm:$0xff] }
  0x66   :  { %661 = vmatprep.mubr.f32.mxu0 %v308_v5  ;;  %1168 = vmatpush3.msra.mxu1 %v172_v6  ;;  %v237_v5 = vld [vmem:[%s2217_s0 + $0x710] sm:$0xff]  ;;  %v219_v6 = vld [vmem:[%s2217_s0 + $0x680] sm:$0xff] }
  0x67   :  { %662 = vmatmul.mubr.f32.vlgmr.msra.gmra.mxu0 %v307_v7  ;;  %1169 = vmatprep.subr.mxu1 %v187_v8  ;;  %v252_v7 = vld [vmem:[%s2217_s0 + $0x788] sm:$0xff]  ;;  %v203_v8 = vld [vmem:[%s2217_s0 + $0x600] sm:$0xff] }
  0x68   :  { %1174 = vmatprep.subr.mxu0 %v234_v9  ;;  %1170 = vmatpush3.msra.mxu1 %v171_v10  ;;  %v312_v9 = vld [vmem:[%s2218_s1 + $0x68] sm:$0xff] }
  0x69   :  { %731 = vmatprep.mubr.f32.mxu1 %v310_v11  ;;  %1175 = vmatpush3.msra.mxu0 %v218_v12  ;;  %v236_v10 = vld [vmem:[%s2217_s0 + $0x708] sm:$0xff]  ;;  %v311_v11 = vld [vmem:[%s2218_s1 + $0x60] sm:$0xff] }
  0x6a   :  { %732 = vmatmul.mubr.f32.vlgmr.msra.gmra.mxu1 %v309_v13  ;;  %1176 = vmatprep.subr.mxu0 %v233_v14  ;;  %v251_v12 = vld [vmem:[%s2217_s0 + $0x780] sm:$0xff]  ;;  %v298_v13 = vld [vmem:[%s2217_s0 + $0x8f8] sm:$0xff] }
  0x6b   :  { %1209 = vmatprep.subr.mxu1 %v266_v15  ;;  %1177 = vmatpush3.msra.mxu0 %v217_v16  ;;  %v235_v14 = vld [vmem:[%s2217_s0 + $0x700] sm:$0xff]  ;;  %v314_v15 = vld [vmem:[%s2218_s1 + $0x78] sm:$0xff] }
  0x6c   :  { %1210 = vmatpush3.msra.mxu1 %v250_v17  ;;  %1178 = vmatprep.subr.mxu0 %v232_v18  ;;  %v282_v16 = vld [vmem:[%s2217_s0 + $0x878] sm:$0xff]  ;;  %v313_v17 = vld [vmem:[%s2218_s1 + $0x70] sm:$0xff] }
  0x6d   :  { %1211 = vmatprep.subr.mxu1 %v265_v19  ;;  %1179 = vmatpush3.msra.mxu0 %v216_v20  ;;  %v297_v18 = vld [vmem:[%s2217_s0 + $0x8f0] sm:$0xff]  ;;  %v316_v19 = vld [vmem:[%s2218_s1 + $0x88] sm:$0xff] }
  0x6e   :  { %1212 = vmatpush3.msra.mxu1 %v249_v21  ;;  %1180 = vmatprep.subr.mxu0 %v231_v22  ;;  %v281_v20 = vld [vmem:[%s2217_s0 + $0x870] sm:$0xff]  ;;  %v296_v21 = vld [vmem:[%s2217_s0 + $0x8e8] sm:$0xff] }
  0x6f   :  { %1213 = vmatprep.subr.mxu1 %v264_v23  ;;  %1181 = vmatpush3.msra.mxu0 %v215_v24  ;;  %v280_v22 = vld [vmem:[%s2217_s0 + $0x868] sm:$0xff]  ;;  %v295_v23 = vld [vmem:[%s2217_s0 + $0x8e0] sm:$0xff] }
  0x70   :  { %1214 = vmatpush3.msra.mxu1 %v248_v25  ;;  %1182 = vmatprep.subr.mxu0 %v230_v26  ;;  %v279_v24 = vld [vmem:[%s2217_s0 + $0x860] sm:$0xff]  ;;  %v294_v25 = vld [vmem:[%s2217_s0 + $0x8d8] sm:$0xff] }
  0x71   :  { %1215 = vmatprep.subr.mxu1 %v263_v27  ;;  %1183 = vmatpush3.msra.mxu0 %v214_v28  ;;  %v278_v26 = vld [vmem:[%s2217_s0 + $0x858] sm:$0xff]  ;;  %v293_v27 = vld [vmem:[%s2217_s0 + $0x8d0] sm:$0xff] }
  0x72   :  { %1216 = vmatpush3.msra.mxu1 %v247_v29  ;;  %1184 = vmatprep.subr.mxu0 %v229_v30  ;;  %v277_v28 = vld [vmem:[%s2217_s0 + $0x850] sm:$0xff]  ;;  %v292_v29 = vld [vmem:[%s2217_s0 + $0x8c8] sm:$0xff] }
  0x73   :  { %1217 = vmatprep.subr.mxu1 %v262_v31  ;;  %1185 = vmatpush3.msra.mxu0 %v213_v32  ;;  %v276_v30 = vld [vmem:[%s2217_s0 + $0x848] sm:$0xff]  ;;  %v291_v31 = vld [vmem:[%s2217_s0 + $0x8c0] sm:$0xff] }
  0x74   :  { %1218 = vmatpush3.msra.mxu1 %v246_v33  ;;  %1186 = vmatprep.subr.mxu0 %v228_v34  ;;  %v275_v32 = vld [vmem:[%s2217_s0 + $0x840] sm:$0xff]  ;;  %v290_v33 = vld [vmem:[%s2217_s0 + $0x8b8] sm:$0xff] }
  0x75   :  { %1219 = vmatprep.subr.mxu1 %v261_v35  ;;  %1187 = vmatpush3.msra.mxu0 %v212_v36  ;;  %v274_v34 = vld [vmem:[%s2217_s0 + $0x838] sm:$0xff]  ;;  %v289_v35 = vld [vmem:[%s2217_s0 + $0x8b0] sm:$0xff] }
  0x76   :  { %1220 = vmatpush3.msra.mxu1 %v245_v37  ;;  %1188 = vmatprep.subr.mxu0 %v227_v38  ;;  %v273_v36 = vld [vmem:[%s2217_s0 + $0x830] sm:$0xff]  ;;  %v288_v37 = vld [vmem:[%s2217_s0 + $0x8a8] sm:$0xff] }
  0x77   :  { %1221 = vmatprep.subr.mxu1 %v260_v39  ;;  %1189 = vmatpush3.msra.mxu0 %v211_v40  ;;  %v272_v38 = vld [vmem:[%s2217_s0 + $0x828] sm:$0xff]  ;;  %v287_v39 = vld [vmem:[%s2217_s0 + $0x8a0] sm:$0xff] }
  0x78   :  { %1222 = vmatpush3.msra.mxu1 %v244_v41  ;;  %1190 = vmatprep.subr.mxu0 %v226_v42  ;;  %v271_v40 = vld [vmem:[%s2217_s0 + $0x820] sm:$0xff]  ;;  %v286_v41 = vld [vmem:[%s2217_s0 + $0x898] sm:$0xff] }
  0x79   :  { %1223 = vmatprep.subr.mxu1 %v259_v43  ;;  %1191 = vmatpush3.msra.mxu0 %v210_v44  ;;  %v270_v42 = vld [vmem:[%s2217_s0 + $0x818] sm:$0xff]  ;;  %v285_v43 = vld [vmem:[%s2217_s0 + $0x890] sm:$0xff] }
  0x7a   :  { %1224 = vmatpush3.msra.mxu1 %v243_v45  ;;  %1192 = vmatprep.subr.mxu0 %v225_v46  ;;  %v269_v44 = vld [vmem:[%s2217_s0 + $0x810] sm:$0xff]  ;;  %v284_v45 = vld [vmem:[%s2217_s0 + $0x888] sm:$0xff] }
  0x7b   :  { %1225 = vmatprep.subr.mxu1 %v258_v47  ;;  %1193 = vmatpush3.msra.mxu0 %v209_v48  ;;  %v268_v46 = vld [vmem:[%s2217_s0 + $0x808] sm:$0xff]  ;;  %v283_v47 = vld [vmem:[%s2217_s0 + $0x880] sm:$0xff] }
  0x7c   :  { %1226 = vmatpush3.msra.mxu1 %v242_v49  ;;  %1194 = vmatprep.subr.mxu0 %v224_v50  ;;  %v267_v48 = vld [vmem:[%s2217_s0 + $0x800] sm:$0xff] }
  0x7d   :  { %1227 = vmatprep.subr.mxu1 %v257_v51  ;;  %1195 = vmatpush3.msra.mxu0 %v208_v52  ;;  %v315_v49 = vld [vmem:[%s2218_s1 + $0x80] sm:$0xff] }
  0x7e   :  { %1228 = vmatpush3.msra.mxu1 %v241_v53  ;;  %1196 = vmatprep.subr.mxu0 %v223_v54 }
  0x7f   :  { %1229 = vmatprep.subr.mxu1 %v256_v55  ;;  %1197 = vmatpush3.msra.mxu0 %v207_v56 }
  0x80   :  { %1230 = vmatpush3.msra.mxu1 %v240_v57  ;;  %1198 = vmatprep.subr.mxu0 %v222_v58 }
  0x81   :  { %1231 = vmatprep.subr.mxu1 %v255_v59  ;;  %1199 = vmatpush3.msra.mxu0 %v206_v60 }
  0x82   :  { %1232 = vmatpush3.msra.mxu1 %v239_v61  ;;  %1200 = vmatprep.subr.mxu0 %v221_v62 }
  0x83   :  { %1233 = vmatprep.subr.mxu1 %v254_v63  ;;  %1201 = vmatpush3.msra.mxu0 %v205_v0 }
  0x84   :  { %1234 = vmatpush3.msra.mxu1 %v238_v1  ;;  %1202 = vmatprep.subr.mxu0 %v220_v2 }
  0x85   :  { %1235 = vmatprep.subr.mxu1 %v253_v3  ;;  %1203 = vmatpush3.msra.mxu0 %v204_v4 }
  0x86   :  { %1236 = vmatpush3.msra.mxu1 %v237_v5  ;;  %1204 = vmatprep.subr.mxu0 %v219_v6 }
  0x87   :  { %1237 = vmatprep.subr.mxu1 %v252_v7  ;;  %1205 = vmatpush3.msra.mxu0 %v203_v8 }
  0x88   :  { %801 = vmatprep.mubr.f32.mxu0 %v312_v9  ;;  %1238 = vmatpush3.msra.mxu1 %v236_v10 }
  0x89   :  { %802 = vmatmul.mubr.f32.vlgmr.msra.gmra.mxu0 %v311_v11  ;;  %1239 = vmatprep.subr.mxu1 %v251_v12 }
  0x8a   :  { %1244 = vmatprep.subr.mxu0 %v298_v13  ;;  %1240 = vmatpush3.msra.mxu1 %v235_v14 }
  0x8b   :  { %871 = vmatprep.mubr.f32.mxu1 %v314_v15  ;;  %1245 = vmatpush3.msra.mxu0 %v282_v16 }
  0x8c   :  { %872 = vmatmul.mubr.f32.vlgmr.msra.gmra.mxu1 %v313_v17  ;;  %1246 = vmatprep.subr.mxu0 %v297_v18 }
  0x8d   :  { %941 = vmatprep.mubr.f32.mxu0 %v316_v19  ;;  %1247 = vmatpush3.msra.mxu0 %v281_v20 }
  0x8e   :  { %1248 = vmatprep.subr.mxu0 %v296_v21 }
  0x8f   :  { %1249 = vmatpush3.msra.mxu0 %v280_v22 }
  0x90   :  { %1250 = vmatprep.subr.mxu0 %v295_v23 }
  0x91   :  { %1251 = vmatpush3.msra.mxu0 %v279_v24 }
  0x92   :  { %1252 = vmatprep.subr.mxu0 %v294_v25 }
  0x93   :  { %1253 = vmatpush3.msra.mxu0 %v278_v26 }
  0x94   :  { %1254 = vmatprep.subr.mxu0 %v293_v27 }
  0x95   :  { %1255 = vmatpush3.msra.mxu0 %v277_v28 }
  0x96   :  { %1256 = vmatprep.subr.mxu0 %v292_v29 }
  0x97   :  { %1257 = vmatpush3.msra.mxu0 %v276_v30 }
  0x98   :  { %1258 = vmatprep.subr.mxu0 %v291_v31 }
  0x99   :  { %1259 = vmatpush3.msra.mxu0 %v275_v32 }
  0x9a   :  { %1260 = vmatprep.subr.mxu0 %v290_v33 }
  0x9b   :  { %1261 = vmatpush3.msra.mxu0 %v274_v34 }
  0x9c   :  { %1262 = vmatprep.subr.mxu0 %v289_v35 }
  0x9d   :  { %1263 = vmatpush3.msra.mxu0 %v273_v36 }
  0x9e   :  { %1264 = vmatprep.subr.mxu0 %v288_v37 }
  0x9f   :  { %1265 = vmatpush3.msra.mxu0 %v272_v38 }
  0xa0   :  { %1266 = vmatprep.subr.mxu0 %v287_v39 }
  0xa1   :  { %1267 = vmatpush3.msra.mxu0 %v271_v40 }
  0xa2   :  { %1268 = vmatprep.subr.mxu0 %v286_v41 }
  0xa3   :  { %1269 = vmatpush3.msra.mxu0 %v270_v42 }
  0xa4   :  { %1270 = vmatprep.subr.mxu0 %v285_v43 }
  0xa5   :  { %1271 = vmatpush3.msra.mxu0 %v269_v44 }
  0xa6   :  { %1272 = vmatprep.subr.mxu0 %v284_v45 }
  0xa7   :  { %1273 = vmatpush3.msra.mxu0 %v268_v46 }
  0xa8   :  { %1274 = vmatprep.subr.mxu0 %v283_v47 }
  0xa9   :  { %1275 = vmatpush3.msra.mxu0 %v267_v48 }
  0xaa   :  { %942 = vmatmul.mubr.f32.vlgmr.msra.gmra.mxu0 %v315_v49 }
  0xe4   :  { %v996_v50 = vpop.f32.mrf.mxu0 }
  0xe5   :  { %v1031_v51 = vpop.f32.mrf.mxu1 }
  0xe6   :  { %v997_v52 = vpop.f32.mrf.mxu0 }
  0xe7   :  { %v1032_v54 = vpop.f32.mrf.mxu1  ;;  %v998_v57 = vadd.f32 %v997_v52, %v996_v50 }
  0xe8   :  { %v1033_v58 = vadd.f32 %v1032_v54, %v1031_v51 }
  0xea   :  { %v454_v62 = vadd.f32 %v1033_v58, %v998_v57 }
 0x105   :  { %v1066_v53 = vpop.f32.mrf.mxu0 }
 0x107   :  { %v1067_v55 = vpop.f32.mrf.mxu0 }
 0x108   :  { %v1101_v56 = vpop.f32.mrf.mxu1  ;;  %v1068_v60 = vadd.f32 %v1067_v55, %v1066_v53 }
 0x10a   :  { %v1102_v61 = vpop.f32.mrf.mxu1  ;;  %v524_v1 = vadd.f32 %v1068_v60, %v454_v62 }
 0x10b   :  { %v1103_v2 = vadd.f32 %v1102_v61, %v1101_v56 }
 0x10d   :  { %v594_v6 = vadd.f32 %v1103_v2, %v524_v1 }
 0x127   :  { %v1136_v59 = vpop.f32.mrf.mxu0 }
 0x129   :  { %v1137_v63 = vpop.f32.mrf.mxu0 }
 0x12a   :  { %v1171_v0 = vpop.f32.mrf.mxu1  ;;  %v1138_v4 = vadd.f32 %v1137_v63, %v1136_v59 }
 0x12c   :  { %v1172_v5 = vpop.f32.mrf.mxu1  ;;  %v664_v9 = vadd.f32 %v1138_v4, %v594_v6 }
 0x12d   :  { %v1173_v10 = vadd.f32 %v1172_v5, %v1171_v0 }
 0x12f   :  { %v734_v13 = vadd.f32 %v1173_v10, %v664_v9 }
 0x149   :  { %v1206_v3 = vpop.f32.mrf.mxu0 }
 0x14b   :  { %v1207_v7 = vpop.f32.mrf.mxu0 }
 0x14c   :  { %v1241_v8 = vpop.f32.mrf.mxu1  ;;  %v1208_v11 = vadd.f32 %v1207_v7, %v1206_v3 }
 0x14e   :  { %v1242_v12 = vpop.f32.mrf.mxu1  ;;  %v804_v14 = vadd.f32 %v1208_v11, %v734_v13 }
 0x14f   :  { %v1243_v15 = vadd.f32 %v1242_v12, %v1241_v8 }
 0x151   :  { %v874_v18 = vadd.f32 %v1243_v15, %v804_v14 }
 0x16a   :  { %v1276_v16 = vpop.f32.mrf.mxu0 }
 0x16c   :  { %v1277_v17 = vpop.f32.mrf.mxu0 }
 0x16d   :  { %v1278_v19 = vadd.f32 %v1277_v17, %v1276_v16 }
 0x16f   :  { %v944_v20 = vadd.f32 %v1278_v19, %v874_v18 }
 0x171   :  { %947 = vadd.xlane.f32.xlu0 %v944_v20 }
 0x1fa   :  { %v948_v21 = vpop.xlane.xlu0 %947 }
 0x1fb   :  { %v950_v22 = vmul.f32 0.0078125, %v948_v21 }
 0x1fd   :  { %v951_v23 = vsub.f32 %v944_v20, %v950_v22 }
 0x1ff   :  { %v952_v24 = vmul.f32 %v951_v23, %v951_v23 }
 0x201   :  { %953 = vadd.xlane.f32.xlu0 %v952_v24 }
 0x28a   :  { %v954_v25 = vpop.xlane.xlu0 %953 }
 0x28b   :  { %v955_v26 = vmul.f32 0.0078125, %v954_v25 }
 0x28d   :  { %v956_v27 = vadd.f32 1e-05, %v955_v26 }
 0x28f   :  { %1279 = vrsqrt.f32 %v956_v27 }
 0x29c   :  { %v1280_v28 = vpop.eup %1279 }
 0x29d   :  { %v958_v29 = vmul.f32 %v1280_v28, %v951_v23 }
 0x29f   :  { %959 = vst [vmem:[%s2219_s2] sm:$0xff] %v958_v29 }

// kernel: network_forward.40
= control target key start
LH: loop header
LB: loop body
LE: loop exit
PB: predicated region body
PF: predicated region fallthrough
CT: control target
= control target key end

     0   :  { %9 = vsyncpa [#allocation3], 0  ;;  %s314_s0 = inlined_call_operand.vmem [shape: f32[2], index: 0, kind: input, shape index: {}]   ;;  %s315_s1 = inlined_call_operand.vmem [shape: f32[9,8,32], index: 1, kind: input, shape index: {}]   ;;  %s316_s2 = inlined_call_operand.vmem [shape: f32[9,1,32], index: 2, kind: input, shape index: {}]   ;;  %s317_s3 = inlined_call_operand.vmem [shape: f32[1,32], index: 3, kind: input, shape index: {}]   ;;  %s318_s4 = inlined_call_operand.vmem [shape: f32[8,32], index: 4, kind: output, shape index: {}]  }
   0x1   :  { %s16_s17 = sshll.u32 %s314_s0, 4  ;;  %s17_s17 = int_to_ptr.vmem [resolvable:$true] %s16_s17 }
   0x2   :  { %s211_s18 = scalar_lea.vmem %s17_s17, 16  ;;  %p216_p1 = scmp.lt.s32.totalorder %s17_s17, %s17_s17 }
   0x3   :  { %p212_p0 = scmp.ne.s32.totalorder %s17_s17, %s211_s18  ;;  %p217_p2 = scmp.lt.s32.totalorder %s211_s18, %s211_s18 }
   0x5   :  { %p218_p3 = por %p217_p2, %p216_p1 }
   0x7   :  { %p219_p4 = pnand %p218_p3, %p212_p0 }
   0x9   :  { %222 = shalt.err (!%p219_p4)
}
   0xa   :  { %s225_s19 = smov [#allocation2]  }
   0xb   :  { %19 = dma.vmem_to_smem %s17_s17, 16, %s225_s19, [#allocation3]  }
   0xc   :  { %223 = dma.done.wait [#allocation3], 16  }
   0xd   :  { %224 = vsyncadd [#allocation3], 4294967280 }
   0xe   :  { %29 = sfence }
   0xf   :  { %v30_v0 = vld [vmem:[%s315_s1] sm:$0xff]  ;;  %v35_v2 = vlaneseq  ;;  %v184_v3 = vld [vmem:[%s315_s1 + $0x8] sm:$0xff]  ;;  %v187_v7 = vld [vmem:[%s315_s1 + $0x10] sm:$0xff]  ;;  %s209_s27 = sld [smem:[#allocation2 + $0x1]]  ;;  %vm176_vm0 = vcmask 261120  }
  0x10   :  { %v31_v1 = vld [vmem:[%s316_s2] sm:$0x1]  ;;  %v185_v5 = vld [vmem:[%s316_s2 + $0x1] sm:$0x1]  ;;  %v55_v6 = vadd.f32 %v184_v3, %v30_v0  ;;  %v188_v8 = vld [vmem:[%s316_s2 + $0x2] sm:$0x1] }
  0x11   :  { %v183_v4 = vadd.f32 -1.0, %v31_v1  ;;  %v36_v9 = vshrl.u32 %v35_v2, 7  ;;  %v186_v10 = vadd.f32 -1.0, %v185_v5  ;;  %v189_v11 = vadd.f32 -1.0, %v188_v8  ;;  %v190_v12 = vld [vmem:[%s315_s1 + $0x18] sm:$0xff]  ;;  %v193_v17 = vld [vmem:[%s315_s1 + $0x20] sm:$0xff] }
  0x12   :  { %v191_v13 = vld [vmem:[%s316_s2 + $0x3] sm:$0x1]  ;;  %v70_v15 = vadd.f32 %v187_v7, %v55_v6  ;;  %v194_v18 = vld [vmem:[%s316_s2 + $0x4] sm:$0x1]  ;;  %v197_v25 = vld [vmem:[%s316_s2 + $0x5] sm:$0x1] }
  0x13   :  { %v33_v14 = vmul.f32 1e+30, %v183_v4  ;;  %v192_v16 = vadd.f32 -1.0, %v191_v13  ;;  %v37_v19 = vsub.s32 0, %v36_v9  ;;  %v46_v20 = vmul.f32 1e+30, %v186_v10 }
  0x14   :  { %v61_v21 = vmul.f32 1e+30, %v189_v11  ;;  %v195_v22 = vadd.f32 -1.0, %v194_v18  ;;  %v85_v24 = vadd.f32 %v190_v12, %v70_v15  ;;  %v196_v30 = vld [vmem:[%s315_s1 + $0x28] sm:$0xff]  ;;  %v200_v31 = vld [vmem:[%s316_s2 + $0x6] sm:$0x1] }
  0x15   :  { %v76_v23 = vmul.f32 1e+30, %v192_v16  ;;  %v38_v26 = vrot.slane %v33_v14, %v37_v19  ;;  %v51_v27 = vrot.slane %v46_v20, %v37_v19  ;;  %v198_v34 = vadd.f32 -1.0, %v197_v25  ;;  %v203_v36 = vld [vmem:[%s316_s2 + $0x7] sm:$0x1]  ;;  %v199_v42 = vld [vmem:[%s315_s1 + $0x30] sm:$0xff] }
  0x16   :  { %v66_v28 = vrot.slane %v61_v21, %v37_v19  ;;  %v91_v29 = vmul.f32 1e+30, %v195_v22  ;;  %v100_v33 = vadd.f32 %v193_v17, %v85_v24  ;;  %v201_v35 = vadd.f32 -1.0, %v200_v31  ;;  %v206_v37 = vld [vmem:[%s316_s2 + $0x8] sm:$0x1]  ;;  %v202_v48 = vld [vmem:[%s315_s1 + $0x38] sm:$0xff] }
  0x17   :  { %v81_v32 = vrot.slane %v76_v23, %v37_v19  ;;  %v40_v38 = vadd.f32 %v38_v26, %v30_v0  ;;  %v53_v39 = vadd.f32 %v184_v3, %v51_v27  ;;  %v106_v43 = vmul.f32 1e+30, %v198_v34  ;;  %v205_v59 = vld [vmem:[%s315_s1 + $0x40] sm:$0xff]  ;;  %s169_s28 = sld [smem:[#allocation2]] }
  0x18   :  { %v68_v40 = vadd.f32 %v187_v7, %v66_v28  ;;  %v96_v41 = vrot.slane %v91_v29, %v37_v19  ;;  %v115_v44 = vadd.f32 %v196_v30, %v100_v33  ;;  %v121_v45 = vmul.f32 1e+30, %v201_v35  ;;  %v208_v3 = vld [vmem:[%s317_s3] ss:$0 sm:$0xff] }
  0x19   :  { %v54_v46 = vmax.f32 %v40_v38, %v53_v39  ;;  %v83_v47 = vadd.f32 %v190_v12, %v81_v32  ;;  %v204_v49 = vadd.f32 -1.0, %v203_v36  ;;  %v207_v50 = vadd.f32 -1.0, %v206_v37 }
  0x1a   :  { %v98_v51 = vadd.f32 %v193_v17, %v96_v41  ;;  %v111_v52 = vrot.slane %v106_v43, %v37_v19  ;;  %v130_v53 = vadd.f32 %v199_v42, %v115_v44  ;;  %v126_v55 = vrot.slane %v121_v45, %v37_v19 }
  0x1b   :  { %v69_v54 = vmax.f32 %v54_v46, %v68_v40  ;;  %v136_v56 = vmul.f32 1e+30, %v204_v49  ;;  %v151_v57 = vmul.f32 1e+30, %v207_v50  ;;  %v173_v9 = vstv %s209_s27 }
  0x1c   :  { %v145_v58 = vadd.f32 %v202_v48, %v130_v53  ;;  %v113_v61 = vadd.f32 %v196_v30, %v111_v52  ;;  %v128_v0 = vadd.f32 %v199_v42, %v126_v55 }
  0x1d   :  { %v84_v60 = vmax.f32 %v69_v54, %v83_v47  ;;  %v141_v62 = vrot.slane %v136_v56, %v37_v19  ;;  %v156_v1 = vrot.slane %v151_v57, %v37_v19  ;;  %v170_v11 = vstv %s169_s28 }
  0x1e   :  { %v160_v2 = vadd.f32 %v205_v59, %v145_v58 }
  0x1f   :  { %v99_v63 = vmax.f32 %v84_v60, %v98_v51  ;;  %v143_v5 = vadd.f32 %v202_v48, %v141_v62  ;;  %v158_v7 = vadd.f32 %v205_v59, %v156_v1 }
  0x20   :  { %v168_v8 = vmul.f32 %v208_v3, %v160_v2 }
  0x21   :  { %v114_v4 = vmax.f32 %v99_v63, %v113_v61 }
  0x22   :  { %v174_v13 = vmul.f32 %v173_v9, %v168_v8 }
  0x23   :  { %v129_v6 = vmax.f32 %v114_v4, %v128_v0 }
  0x25   :  { %v144_v10 = vmax.f32 %v129_v6, %v143_v5 }
  0x27   :  { %v159_v12 = vmax.f32 %v144_v10, %v158_v7 }
  0x29   :  { %v171_v14 = vmul.f32 %v170_v11, %v159_v12 }
  0x2b   :  { %v175_v15 = vadd.f32 %v174_v13, %v171_v14 }
  0x2d   :  { %177 = vst.msk [vmem:[%s318_s4] sm:$0xff] %vm176_vm0, %v175_v15 }
  0x2e   :  { %182 = vsyncpa [#allocation3], 1 }

// kernel: network_forward.41
= control target key start
LH: loop header
LB: loop body
LE: loop exit
PB: predicated region body
PF: predicated region fallthrough
CT: control target
= control target key end

     0   :  { %v231_v0 = vmov 0.0   ;;  %vm232_vm0 = vmmov 0   ;;  %vm22_vm1 = vcmask 261120   ;;  %vm110_vm2 = vcmask 64512   ;;  %s292_s1 = inlined_call_operand.vmem [shape: f32[32,2], index: 1, kind: input, shape index: {}]   ;;  %s293_s0 = inlined_call_operand.vmem [shape: f32[8,32], index: 0, kind: input, shape index: {}]   ;;  %s294_s2 = inlined_call_operand.vmem [shape: f32[10,8], index: 2, kind: input, shape index: {}]   ;;  %s295_s3 = inlined_call_operand.vmem [shape: f32[10,1], index: 3, kind: input, shape index: {}]   ;;  %s296_s4 = inlined_call_operand.vmem [shape: f32[10,2], index: 4, kind: output, shape index: {}]  }
   0x1   :  { %211 = vmatprep.subr.mxu0 %v231_v0  ;;  %v21_v1 = vld [vmem:[%s292_s1 + $0x18] sm:$0xff]  ;;  %v20_v2 = vld [vmem:[%s292_s1 + $0x10] sm:$0xff]  ;;  %219 = vmatprep.mubr.msk.f32.mxu0 %vm232_vm0, %v231_v0  ;;  %v19_v3 = vld [vmem:[%s292_s1 + $0x8] sm:$0xff]  ;;  %v233_v7 = vmov 0   ;;  %vm194_vm3 = vcmask 9216   ;;  %vm192_vm4 = vcmask 15360  }
   0x2   :  { %212 = vmatpush3.msra.mxu0 %v21_v1  ;;  %v18_v4 = vld [vmem:[%s292_s1] sm:$0xff]  ;;  %230 = vset.pattern.permute.xlu0 %v233_v7  ;;  %v99_v9 = vld [vmem:[%s295_s3 + $0x8] sm:$0x3] }
   0x3   :  { %213 = vmatprep.subr.mxu0 %v231_v0  ;;  %v17_v5 = vld [vmem:[%s293_s0] sm:$0xff]  ;;  %v97_v11 = vld [vmem:[%s294_s2 + $0x8] sm:$0x3] }
   0x4   :  { %214 = vmatpush3.msra.mxu0 %v20_v2  ;;  %v96_v6 = vld [vmem:[%s294_s2] sm:$0xff] }
   0x5   :  { %215 = vmatprep.subr.mxu0 %v231_v0  ;;  %224 = vmatprep.mubr.msk.f32.mxu1 %vm110_vm2, %v96_v6  ;;  %v98_v8 = vld [vmem:[%s295_s3] sm:$0xff] }
   0x6   :  { %216 = vmatpush3.msra.mxu0 %v19_v3  ;;  %102 = vperm.xlu0 %230, %v98_v8  }
   0x7   :  { %217 = vmatprep.subr.mxu0 %v231_v0 }
   0x8   :  { %218 = vmatpush3.msra.mxu0 %v18_v4 }
   0x9   :  { %220 = vmatmul.mubr.msk.f32.vlgmr.msra.gmra.mxu0 %vm22_vm1, %v17_v5 }
   0xa   :  { %107 = vperm.xlu0 %230, %v99_v9  }
  0x81   :  { %v103_v13 = vpop.permute.xlu0 %102 }
  0x85   :  { %v108_v14 = vpop.permute.xlu0 %107 }
  0xc9   :  { %v92_v10 = vpop.f32.mrf.mxu0 }
  0xca   :  { %222 = vmatprep.subr.mxu1 %v92_v10 }
  0xcb   :  { %v221_v12 = vpop.f32.mrf.mxu0  ;;  %223 = vmatpush3.msra.mxu1 %v92_v10 }
  0xcc   :  { %225 = vmatmul.mubr.msk.f32.vlgmr.msra.gmra.mxu1 %vm110_vm2, %v97_v11 }
 0x18c   :  { %v226_v15 = vpop.f32.mrf.mxu1 }
 0x18d   :  { %v189_v16 = vadd.f32 %v226_v15, %v108_v14 }
 0x18e   :  { %v183_v17 = vpop.f32.mrf.mxu1 }
 0x18f   :  { %195 = vst.msk [vmem:[%s296_s4 + $0x8] sm:$0x3] %vm194_vm3, %v189_v16  ;;  %v184_v18 = vadd.f32 %v183_v17, %v103_v13 }
 0x191   :  { %193 = vst.msk [vmem:[%s296_s4] sm:$0xff] %vm192_vm4, %v184_v18 }

</bundles_post_ra>
